<compile_context>
chip_gen: v6e
topology: v6e:2x2x1
jax: 0.10.0
libtpu: 0.0.40
codegen_flags: <defaults>
</compile_context>

<pallas_src>
import math

import numpy as np

import jax
import jax.numpy as jnp
from jax.experimental import pallas as pl
from jax.experimental.pallas import tpu as pltpu

# MXU-native operand dtype for in-kernel matmuls; accumulation stays float32.
_DOT_DTYPE = jnp.bfloat16


# ----------------------------- config parsing ------------------------------

def parse_channel_string(s):
    channel_config = {}
    for ss in s.split(','):
        res, in_channels = ss.split(':')
        channel_config[int(res)] = int(in_channels)
    return channel_config


def parse_layer_string(s):
    layers = []
    for ss in s.split(','):
        if 'x' in ss:
            res, num = ss.split('x')
            layers += [(int(res), None) for _ in range(int(num))]
        elif 'u' in ss:
            res, mixin = [int(a) for a in ss.split('u')]
            layers.append((res, mixin))
        elif 'd' in ss:
            res, down_rate = [int(a) for a in ss.split('d')]
            layers.append((res, down_rate))
        elif 't' in ss:
            res1, res2 = [int(a) for a in ss.split('t')]
            layers.append(((res1, res2), None))
        else:
            layers.append((int(ss), None))
    return layers


# ----------------------------- in-kernel math -------------------------------

def _gelu(x):
    # tanh-approx GELU (== torch F.gelu(approximate='tanh')); tanh runs on the
    # EUP slot instead of a long dependent VALU polynomial chain.
    # TODO(synk): torch's default exact-erf GELU differs from this by <~1e-3.
    c = 0.7978845608028654  # sqrt(2/pi)
    return 0.5 * x * (1.0 + jnp.tanh(c * (x + 0.044715 * (x * x * x))))


def _sigmoid_ref(x):
    return 1.0 / (1.0 + jnp.exp(-x))


def _sigmoid_kernel(x):
    # exp and the approx reciprocal both land on the EUP slot (VALU-free);
    # clamp back to the exact sigmoid range despite the approx reciprocal.
    y = pl.reciprocal(1.0 + jnp.exp(-x), approx=True)
    return jnp.clip(y, 0.0, 1.0)


def _conv1x1(x, w_bf16, b):
    """x: (Cin, L) f32; w_bf16: (Cout, Cin) bf16; b: (Cout, 1) f32 or None."""
    y = jnp.dot(w_bf16, x.astype(_DOT_DTYPE), preferred_element_type=jnp.float32)
    if b is not None:
        y = y + b
    return y


def _conv3x3(x, wfold_bf16, b, scr_ref, scr9_ref, mask, W):
    """3x3 / stride 1 / pad 1 conv, folded-tap, padded-flattened layout.

    x:          (Cin, L) f32 value, L = G * (H+2)*(W+2) (G samples stacked on
                the lane axis, each with its own zero halo).
    wfold_bf16: (Cout, 9*Cin) bf16, columns ordered t*Cin + c (t = dy*3 + dx).
    scr_ref:    (>=Cin, 128 + L + 128) VMEM bf16 staging buffer; interior at
                lane offset 128 (lane-aligned store), margin strips pre-zeroed.
    scr9_ref:   (>=9*Cin, L) VMEM bf16 window stack (no init needed: fully
                overwritten before it is read).
    mask:       (1, L) bf16 interior mask -> enforces Conv2d(padding=1) zeros.

    Window reads that cross a sample boundary (or hit the zeroed margins) only
    ever feed *halo* output lanes; interior output lanes read exclusively the
    masked interior of their own sample, so interiors are exact.
    """
    Cin, L = x.shape
    Wp = W + 2
    M = 128                                        # lane-aligned interior
    scr_ref[0:Cin, M:M + L] = (x * mask).astype(scr_ref.dtype)
    for t in range(9):
        off = (t // 3 - 1) * Wp + (t % 3 - 1)
        scr9_ref[t * Cin:(t + 1) * Cin, 0:L] = scr_ref[0:Cin, M + off:M + off + L]
    y = jnp.dot(wfold_bf16, scr9_ref[0:9 * Cin, 0:L],
                preferred_element_type=jnp.float32)     # ONE deep MXU matmul
    if b is not None:
        y = y + b
    return y


# ------------------------------ plan & params -------------------------------

def build_decoder_plan(input_res, block_config_str, channel_config_str, input_hw):
    block_config = parse_layer_string(block_config_str)
    channel_config = parse_channel_string(channel_config_str)
    H, W = input_hw
    ops = []
    for res, up_rate in block_config:
        if isinstance(res, tuple):
            r1, r2 = res
            ops.append(dict(kind='trans', cin=channel_config[r1],
                            cout=channel_config[r2], H=H, W=W))
        elif up_rate is not None:
            ops.append(dict(kind='up', factor=up_rate, H=H, W=W))
            H, W = H * up_rate, W * up_rate
        else:
            cin = channel_config[res]
            ops.append(dict(kind='res', cin=cin, cmid=int(0.5 * cin), cout=cin,
                            use_3x3=res > 1, H=H, W=W))
    ops.append(dict(kind='last', cin=channel_config[input_res], cout=1, H=H, W=W))
    return ops


def _uniform(key, shape, fan_in):
    bound = 1.0 / math.sqrt(fan_in)
    return jax.random.uniform(key, shape, jnp.float32, -bound, bound)


def _conv_weight(key, cout, cin, k):
    """1x1 -> (Cout, Cin); 3x3 -> (9, Cout, Cin), tap-major (t = dy*3 + dx)."""
    if k == 1:
        return _uniform(key, (cout, cin), cin)
    return _uniform(key, (k * k, cout, cin), cin * k * k)


def init_decoder_params(key, ops):
    params = []
    for op in ops:
        key, k1, k2, k3, k4, k5 = jax.random.split(key, 6)
        if op['kind'] == 'res':
            kk = 3 if op['use_3x3'] else 1
            p = dict(
                c1_w=_conv_weight(k1, op['cmid'], op['cin'], 1),
                c1_b=jnp.zeros((op['cmid'], 1), jnp.float32),   # zero_bias=True
                c2_w=_conv_weight(k2, op['cmid'], op['cmid'], kk),
                c2_b=jnp.zeros((op['cmid'], 1), jnp.float32),
                c3_w=_conv_weight(k3, op['cmid'], op['cmid'], kk),
                c3_b=jnp.zeros((op['cmid'], 1), jnp.float32),
                c4_w=_conv_weight(k4, op['cout'], op['cmid'], 1),
                c4_b=jnp.zeros((op['cout'], 1), jnp.float32),
            )
        elif op['kind'] == 'trans':
            p = dict(w=_conv_weight(k1, op['cout'], op['cin'], 1))  # bias=False
        elif op['kind'] == 'last':
            p = dict(w=_conv_weight(k1, op['cout'], op['cin'], 3),
                     b=_uniform(k2, (op['cout'], 1), op['cin'] * 9))  # real bias
        else:
            p = dict()
        params.append(p)
    return params


# ------------------------------ host constants -------------------------------

def _interior_mask(H, W, G):
    m = np.zeros((H + 2, W + 2), np.float32)
    m[1:H + 1, 1:W + 1] = 1.0
    m = m.reshape(1, -1)
    if G > 1:
        m = np.tile(m, (1, G))
    return jnp.asarray(m, dtype=_DOT_DTYPE)         # 0/1 exact in bf16


def _upsample_matrix(H, W, r, G):
    """0/1 nearest-neighbour replication matrix, padded-in -> padded-out,
    block-diagonal over the G lane-stacked samples."""
    Wp, Wop = W + 2, W * r + 2
    U = np.zeros(((H + 2) * Wp, (H * r + 2) * Wop), np.float32)
    for ho in range(H * r):
        for wo in range(W * r):
            src = (ho // r + 1) * Wp + (wo // r + 1)
            dst = (ho + 1) * Wop + (wo + 1)
            U[src, dst] = 1.0
    if G > 1:
        U = np.kron(np.eye(G, dtype=np.float32), U)
    return jnp.asarray(U, dtype=_DOT_DTYPE)          # 0/1 exact in bf16


def _fold3x3(w9):
    """(9, Cout, Cin) tap-major -> (Cout, 9*Cin), column index t*Cin + c."""
    return jnp.transpose(w9, (1, 0, 2)).reshape(w9.shape[1], -1)


def _samples_per_block(n):
    """Chip-aware batching: v7x has 2 TensorCores/chip -> keep 1 sample per
    grid step so the batch shards across cores; single-TC chips (v5e/v6e)
    stack the whole batch along the lane axis in one grid step."""
    try:
        kind = jax.devices()[0].device_kind.lower()
    except Exception:
        kind = ""
    if "v7" in kind:
        return 1
    return n


# ------------------------------- forward ------------------------------------

def decoder_forward(x_nchw, ops, params, samples_per_block=None):
    N, C0, H0, W0 = x_nchw.shape
    SP0 = (H0 + 2) * (W0 + 2)

    G = _samples_per_block(N) if samples_per_block is None else samples_per_block
    if N % G != 0:
        G = 1
    NB = N // G

    # glue: zero-pad the spatial halo once, flatten, stack G samples on lanes.
    xpad = jnp.pad(x_nchw.astype(jnp.float32),
                   ((0, 0), (0, 0), (1, 1), (1, 1))).reshape(N, C0, SP0)
    xstk = (xpad.reshape(NB, G, C0, SP0)
                .transpose(0, 2, 1, 3)
                .reshape(NB, C0, G * SP0))

    # flatten weights + constants into one ordered input list (host-precast)
    extra, slots = [], []
    scr_req, mask_cache = {}, {}

    def add(arr):
        extra.append(arr)
        return len(extra) - 1

    def mask_idx(H, W):
        if (H, W) not in mask_cache:
            mask_cache[(H, W)] = add(_interior_mask(H, W, G))
        return mask_cache[(H, W)]

    def need_scratch(H, W, cin):
        scr_req[(H, W)] = max(scr_req.get((H, W), 0), cin)

    for op, p in zip(ops, params):
        s = {}
        if op['kind'] == 'res':
            s['c1_w'] = add(p['c1_w'].astype(_DOT_DTYPE))
            s['c1_b'] = add(p['c1_b'])
            if op['use_3x3']:
                s['c2_w'] = add(_fold3x3(p['c2_w']).astype(_DOT_DTYPE))
                s['c3_w'] = add(_fold3x3(p['c3_w']).astype(_DOT_DTYPE))
                s['mask'] = mask_idx(op['H'], op['W'])
                need_scratch(op['H'], op['W'], op['cmid'])
            else:
                s['c2_w'] = add(p['c2_w'].astype(_DOT_DTYPE))
                s['c3_w'] = add(p['c3_w'].astype(_DOT_DTYPE))
            s['c2_b'] = add(p['c2_b'])
            s['c3_b'] = add(p['c3_b'])
            s['c4_w'] = add(p['c4_w'].astype(_DOT_DTYPE))
            s['c4_b'] = add(p['c4_b'])
        elif op['kind'] == 'trans':
            s['w'] = add(p['w'].astype(_DOT_DTYPE))
        elif op['kind'] == 'up':
            s['U'] = add(_upsample_matrix(op['H'], op['W'], op['factor'], G))
        elif op['kind'] == 'last':
            s['w'] = add(_fold3x3(p['w']).astype(_DOT_DTYPE))
            s['b'] = add(p['b'])                                  # f32 bias
            s['mask'] = mask_idx(op['H'], op['W'])
            need_scratch(op['H'], op['W'], op['cin'])
        slots.append(s)

    # scratch: per (H, W) resolution, a margin staging buffer (interior at lane
    # 128) plus a (9*Cin, L) window stack for the folded-tap matmul.
    scr_keys = sorted(scr_req)
    scr_index = {k: i for i, k in enumerate(scr_keys)}
    scratch_shapes = []
    for (H, W) in scr_keys:
        L = G * (H + 2) * (W + 2)
        rows = scr_req[(H, W)]
        scratch_shapes.append(pltpu.VMEM((rows, 128 + L + 128), _DOT_DTYPE))
        scratch_shapes.append(pltpu.VMEM((9 * rows, L), _DOT_DTYPE))

    Hout, Wout = ops[-1]['H'], ops[-1]['W']
    SPout = (Hout + 2) * (Wout + 2)
    n_extra = len(extra)

    # ---- the single fused kernel: whole decoder, VMEM-resident -------------
    def kernel(*refs):
        x_ref = refs[0]
        e = refs[1:1 + n_extra]
        o_ref = refs[1 + n_extra]
        scrs = refs[2 + n_extra:]

        # Zero only the margin strips of the staging buffers (read by the
        # shifted-window loads but never written).  Not gated on program_id
        # so it stays correct under "parallel" grid sharding.
        for idx, (H, W) in enumerate(scr_keys):
            scr = scrs[2 * idx]
            rows = scr_req[(H, W)]
            L = G * (H + 2) * (W + 2)
            z = jnp.zeros((rows, 128), scr.dtype)
            scr[0:rows, 0:128] = z
            scr[0:rows, 128 + L:256 + L] = z

        a = x_ref[0]                                   # (C0, G*SP0), zero halo
        for op, s in zip(ops, slots):
            if op['kind'] == 'res':
                h = _conv1x1(_gelu(a), e[s['c1_w']][...], e[s['c1_b']][...])
                if op['use_3x3']:
                    si = scr_index[(op['H'], op['W'])]
                    scr, scr9 = scrs[2 * si], scrs[2 * si + 1]
                    mask = e[s['mask']][...]
                    h = _conv3x3(_gelu(h), e[s['c2_w']][...], e[s['c2_b']][...],
                                 scr, scr9, mask, op['W'])
                    h = _conv3x3(_gelu(h), e[s['c3_w']][...], e[s['c3_b']][...],
                                 scr, scr9, mask, op['W'])
                else:
                    h = _conv1x1(_gelu(h), e[s['c2_w']][...], e[s['c2_b']][...])
                    h = _conv1x1(_gelu(h), e[s['c3_w']][...], e[s['c3_b']][...])
                h = _conv1x1(_gelu(h), e[s['c4_w']][...], e[s['c4_b']][...])
                a = a + h                              # residual=True (f32)
            elif op['kind'] == 'trans':
                a = _conv1x1(a, e[s['w']][...], None)
            elif op['kind'] == 'up':
                # nearest-neighbour upsample == exact 0/1 replication matmul
                a = jnp.dot(a.astype(_DOT_DTYPE), e[s['U']][...],
                            preferred_element_type=jnp.float32)
            elif op['kind'] == 'last':
                si = scr_index[(op['H'], op['W'])]
                scr, scr9 = scrs[2 * si], scrs[2 * si + 1]
                mask = e[s['mask']][...]
                a = _conv3x3(a, e[s['w']][...], e[s['b']][...],
                             scr, scr9, mask, op['W'])
                a = _sigmoid_kernel(a)
        o_ref[0] = a

    in_specs = [pl.BlockSpec((1, C0, G * SP0), lambda n: (n, 0, 0))]
    for arr in extra:
        in_specs.append(
            pl.BlockSpec(arr.shape, lambda n, nd=arr.ndim: (0,) * nd))

    out_pad = pl.pallas_call(
        kernel,
        out_shape=jax.ShapeDtypeStruct((NB, 1, G * SPout), jnp.float32),
        grid=(NB,),
        in_specs=in_specs,
        out_specs=pl.BlockSpec((1, 1, G * SPout), lambda n: (n, 0, 0)),
        scratch_shapes=tuple(scratch_shapes),
        compiler_params=pltpu.CompilerParams(
            dimension_semantics=("parallel",)),   # batch -> v7x's 2 TCs
    )(xstk, *extra)

    # glue: un-stack samples, strip the halo, return NCHW
    out = (out_pad.reshape(NB, 1, G, SPout)
                  .transpose(0, 2, 1, 3)
                  .reshape(N, 1, Hout + 2, Wout + 2))
    return out[:, :, 1:Hout + 1, 1:Wout + 1]


# ----------------------------- pure-JAX reference ----------------------------

def reference_forward(x, ops, params):
    def to_oihw(w):
        if w.ndim == 2:                       # 1x1: (Cout, Cin)
            return w[:, :, None, None]
        return jnp.transpose(w, (1, 2, 0)).reshape(w.shape[1], w.shape[2], 3, 3)

    def conv(a, w, b):
        w4 = to_oihw(w)
        pad = w4.shape[2] // 2
        y = jax.lax.conv_general_dilated(
            a, w4, (1, 1), [(pad, pad), (pad, pad)],
            dimension_numbers=('NCHW', 'OIHW', 'NCHW'),
            precision=jax.lax.Precision.HIGHEST)
        if b is not None:
            y = y + b.reshape(1, -1, 1, 1)
        return y

    a = x.astype(jnp.float32)
    for op, p in zip(ops, params):
        if op['kind'] == 'res':
            h = conv(_gelu(a), p['c1_w'], p['c1_b'])
            h = conv(_gelu(h), p['c2_w'], p['c2_b'])
            h = conv(_gelu(h), p['c3_w'], p['c3_b'])
            h = conv(_gelu(h), p['c4_w'], p['c4_b'])
            a = a + h
        elif op['kind'] == 'trans':
            a = conv(a, p['w'], None)
        elif op['kind'] == 'up':
            a = jnp.repeat(jnp.repeat(a, op['factor'], axis=2),
                           op['factor'], axis=3)
        elif op['kind'] == 'last':
            a = conv(a, p['w'], p['b'])
            a = _sigmoid_ref(a)
    return a


# --------------------------------- main --------------------------------------

if __name__ == "__main__":
    key = jax.random.PRNGKey(0)
    k_params, k_x = jax.random.split(key)

    # Decoder(input_res=16, "8x1,8t16,8u2,16x1", "8:16,16:8"):
    #   ResBlock(16->8->16, residual, 3x3) @ 8x8
    #   Conv1x1 16->8 (bias=False)
    #   Upsample x2 nearest (8x8 -> 16x16)
    #   ResBlock(8->4->8, residual, 3x3) @ 16x16
    #   Conv3x3 8->1 (+bias), sigmoid
    input_res = 16
    block_config_str = "8x1,8t16,8u2,16x1"
    channel_config_str = "8:16,16:8"

    ops = build_decoder_plan(input_res, block_config_str, channel_config_str,
                             input_hw=(8, 8))
    params = init_decoder_params(k_params, ops)

    x = jax.random.normal(k_x, (2, 16, 8, 8), jnp.float32)   # NCHW

    out = jax.block_until_ready(decoder_forward(x, ops, params))
    assert out.shape == (2, 1, 16, 16), out.shape
    assert bool(jnp.all(jnp.isfinite(out)))
    assert bool(jnp.all((out >= 0.0) & (out <= 1.0)))

    # correctness vs a plain-JAX reference (diffs only from bf16 MXU operands)
    ref = jax.block_until_ready(reference_forward(x, ops, params))
    max_diff = float(jnp.max(jnp.abs(out - ref)))
    assert max_diff < 5e-2, f"kernel vs reference mismatch: {max_diff}"

    print("KERNEL_OK")
</pallas_src>

<mosaic_0001>
module attributes {stable_mosaic.version = 11 : i64} {
  func.func @kernel(%arg0: i32, %arg1: memref<1x16x200xf32, #tpu.memory_space<vmem>>, %arg2: memref<8x16xbf16, #tpu.memory_space<vmem>>, %arg3: memref<8x1xf32, #tpu.memory_space<vmem>>, %arg4: memref<8x72xbf16, #tpu.memory_space<vmem>>, %arg5: memref<8x72xbf16, #tpu.memory_space<vmem>>, %arg6: memref<1x200xbf16, #tpu.memory_space<vmem>>, %arg7: memref<8x1xf32, #tpu.memory_space<vmem>>, %arg8: memref<8x1xf32, #tpu.memory_space<vmem>>, %arg9: memref<16x8xbf16, #tpu.memory_space<vmem>>, %arg10: memref<16x1xf32, #tpu.memory_space<vmem>>, %arg11: memref<8x16xbf16, #tpu.memory_space<vmem>>, %arg12: memref<200x648xbf16, #tpu.memory_space<vmem>>, %arg13: memref<4x8xbf16, #tpu.memory_space<vmem>>, %arg14: memref<4x1xf32, #tpu.memory_space<vmem>>, %arg15: memref<4x36xbf16, #tpu.memory_space<vmem>>, %arg16: memref<4x36xbf16, #tpu.memory_space<vmem>>, %arg17: memref<1x648xbf16, #tpu.memory_space<vmem>>, %arg18: memref<4x1xf32, #tpu.memory_space<vmem>>, %arg19: memref<4x1xf32, #tpu.memory_space<vmem>>, %arg20: memref<8x4xbf16, #tpu.memory_space<vmem>>, %arg21: memref<8x1xf32, #tpu.memory_space<vmem>>, %arg22: memref<1x72xbf16, #tpu.memory_space<vmem>>, %arg23: memref<1x1xf32, #tpu.memory_space<vmem>>, %arg24: memref<1x1x648xf32, #tpu.memory_space<vmem>>, %arg25: memref<8x456xbf16, #tpu.memory_space<vmem>>, %arg26: memref<72x200xbf16, #tpu.memory_space<vmem>>, %arg27: memref<8x904xbf16, #tpu.memory_space<vmem>>, %arg28: memref<72x648xbf16, #tpu.memory_space<vmem>>) attributes {dimension_semantics = [#tpu.dimension_semantics<parallel>], iteration_bounds = array<i64: 1>, scalar_prefetch = 0 : i64, scratch_operands = 4 : i64, tpu.core_type = #tpu.core_type<tc>, window_params = [{transform_indices = @transform_0, window_bounds = array<i64: 1, 16, 200>}, {pipeline_mode = #tpu.pipeline_mode<synchronous>, transform_indices = @transform_1, window_bounds = array<i64: 8, 16>}, {pipeline_mode = #tpu.pipeline_mode<synchronous>, transform_indices = @transform_2, window_bounds = array<i64: 8, 1>}, {pipeline_mode = #tpu.pipeline_mode<synchronous>, transform_indices = @transform_3, window_bounds = array<i64: 8, 72>}, {pipeline_mode = #tpu.pipeline_mode<synchronous>, transform_indices = @transform_4, window_bounds = array<i64: 8, 72>}, {pipeline_mode = #tpu.pipeline_mode<synchronous>, transform_indices = @transform_5, window_bounds = array<i64: 1, 200>}, {pipeline_mode = #tpu.pipeline_mode<synchronous>, transform_indices = @transform_6, window_bounds = array<i64: 8, 1>}, {pipeline_mode = #tpu.pipeline_mode<synchronous>, transform_indices = @transform_7, window_bounds = array<i64: 8, 1>}, {pipeline_mode = #tpu.pipeline_mode<synchronous>, transform_indices = @transform_8, window_bounds = array<i64: 16, 8>}, {pipeline_mode = #tpu.pipeline_mode<synchronous>, transform_indices = @transform_9, window_bounds = array<i64: 16, 1>}, {pipeline_mode = #tpu.pipeline_mode<synchronous>, transform_indices = @transform_10, window_bounds = array<i64: 8, 16>}, {pipeline_mode = #tpu.pipeline_mode<synchronous>, transform_indices = @transform_11, window_bounds = array<i64: 200, 648>}, {pipeline_mode = #tpu.pipeline_mode<synchronous>, transform_indices = @transform_12, window_bounds = array<i64: 4, 8>}, {pipeline_mode = #tpu.pipeline_mode<synchronous>, transform_indices = @transform_13, window_bounds = array<i64: 4, 1>}, {pipeline_mode = #tpu.pipeline_mode<synchronous>, transform_indices = @transform_14, window_bounds = array<i64: 4, 36>}, {pipeline_mode = #tpu.pipeline_mode<synchronous>, transform_indices = @transform_15, window_bounds = array<i64: 4, 36>}, {pipeline_mode = #tpu.pipeline_mode<synchronous>, transform_indices = @transform_16, window_bounds = array<i64: 1, 648>}, {pipeline_mode = #tpu.pipeline_mode<synchronous>, transform_indices = @transform_17, window_bounds = array<i64: 4, 1>}, {pipeline_mode = #tpu.pipeline_mode<synchronous>, transform_indices = @transform_18, window_bounds = array<i64: 4, 1>}, {pipeline_mode = #tpu.pipeline_mode<synchronous>, transform_indices = @transform_19, window_bounds = array<i64: 8, 4>}, {pipeline_mode = #tpu.pipeline_mode<synchronous>, transform_indices = @transform_20, window_bounds = array<i64: 8, 1>}, {pipeline_mode = #tpu.pipeline_mode<synchronous>, transform_indices = @transform_21, window_bounds = array<i64: 1, 72>}, {pipeline_mode = #tpu.pipeline_mode<synchronous>, transform_indices = @transform_22, window_bounds = array<i64: 1, 1>}, {transform_indices = @transform_23, window_bounds = array<i64: 1, 1, 648>}]} {
    %cst = arith.constant 0.000000e+00 : bf16
    %0 = vector.broadcast %cst : bf16 to vector<8x128xbf16>
    %c0 = arith.constant 0 : index
    %c0_0 = arith.constant 0 : index
    %1 = vector.load %arg25[%c0, %c0_0] : memref<8x456xbf16, #tpu.memory_space<vmem>>, vector<8x128xbf16>
    tpu.vector_store %arg25[%c0, %c0_0], %0 {strides = array<i32>} : memref<8x456xbf16, #tpu.memory_space<vmem>>, vector<8x128xbf16>,
    %c0_1 = arith.constant 0 : index
    %c328 = arith.constant 328 : index
    %2 = vector.load %arg25[%c0_1, %c328] : memref<8x456xbf16, #tpu.memory_space<vmem>>, vector<8x128xbf16>
    tpu.vector_store %arg25[%c0_1, %c328], %0 {strides = array<i32>} : memref<8x456xbf16, #tpu.memory_space<vmem>>, vector<8x128xbf16>,
    %cst_2 = arith.constant 0.000000e+00 : bf16
    %3 = vector.broadcast %cst_2 : bf16 to vector<8x128xbf16>
    %c0_3 = arith.constant 0 : index
    %c0_4 = arith.constant 0 : index
    %4 = vector.load %arg27[%c0_3, %c0_4] : memref<8x904xbf16, #tpu.memory_space<vmem>>, vector<8x128xbf16>
    tpu.vector_store %arg27[%c0_3, %c0_4], %3 {strides = array<i32>} : memref<8x904xbf16, #tpu.memory_space<vmem>>, vector<8x128xbf16>,
    %c0_5 = arith.constant 0 : index
    %c776 = arith.constant 776 : index
    %5 = vector.load %arg27[%c0_5, %c776] : memref<8x904xbf16, #tpu.memory_space<vmem>>, vector<8x128xbf16>
    tpu.vector_store %arg27[%c0_5, %c776], %3 {strides = array<i32>} : memref<8x904xbf16, #tpu.memory_space<vmem>>, vector<8x128xbf16>,
    %c0_6 = arith.constant 0 : index
    %c0_7 = arith.constant 0 : index
    %c0_8 = arith.constant 0 : index
    %6 = vector.load %arg1[%c0_6, %c0_7, %c0_8] : memref<1x16x200xf32, #tpu.memory_space<vmem>>, vector<1x16x200xf32>
    %7 = vector.shape_cast %6 : vector<1x16x200xf32> to vector<16x200xf32>
    %cst_9 = arith.constant 5.000000e-01 : f32
    %8 = vector.broadcast %cst_9 : f32 to vector<16x200xf32>
    %9 = arith.mulf %8, %7 : vector<16x200xf32>
    %10 = arith.mulf %7, %7 : vector<16x200xf32>
    %11 = arith.mulf %10, %7 : vector<16x200xf32>
    %cst_10 = arith.constant 4.471500e-02 : f32
    %12 = vector.broadcast %cst_10 : f32 to vector<16x200xf32>
    %13 = arith.mulf %12, %11 : vector<16x200xf32>
    %14 = arith.addf %7, %13 : vector<16x200xf32>
    %cst_11 = arith.constant 0.797884583 : f32
    %15 = vector.broadcast %cst_11 : f32 to vector<16x200xf32>
    %16 = arith.mulf %15, %14 : vector<16x200xf32>
    %17 = math.tanh %16 : vector<16x200xf32>
    %cst_12 = arith.constant 1.000000e+00 : f32
    %18 = vector.broadcast %cst_12 : f32 to vector<16x200xf32>
    %19 = arith.addf %18, %17 : vector<16x200xf32>
    %20 = arith.mulf %9, %19 : vector<16x200xf32>
    %c0_13 = arith.constant 0 : index
    %c0_14 = arith.constant 0 : index
    %21 = vector.load %arg2[%c0_13, %c0_14] : memref<8x16xbf16, #tpu.memory_space<vmem>>, vector<8x16xbf16>
    %c0_15 = arith.constant 0 : index
    %c0_16 = arith.constant 0 : index
    %22 = vector.load %arg3[%c0_15, %c0_16] : memref<8x1xf32, #tpu.memory_space<vmem>>, vector<8x1xf32>
    %23 = arith.truncf %20 : vector<16x200xf32> to vector<16x200xbf16>
    %cst_17 = arith.constant dense<0.000000e+00> : vector<8x200xf32>
    %24 = tpu.matmul %21, %23, %cst_17 {dimension_numbers = #tpu.dot_dimension_numbers<[1], [0], [0], [1], [0, 0, 1, 1], [], []>} : vector<8x16xbf16>, vector<16x200xbf16>, vector<8x200xf32> -> vector<8x200xf32>
    %25 = vector.broadcast %22 : vector<8x1xf32> to vector<8x200xf32>
    %26 = arith.addf %24, %25 : vector<8x200xf32>
    %c0_18 = arith.constant 0 : index
    %c0_19 = arith.constant 0 : index
    %27 = vector.load %arg6[%c0_18, %c0_19] : memref<1x200xbf16, #tpu.memory_space<vmem>>, vector<1x200xbf16>
    %cst_20 = arith.constant 5.000000e-01 : f32
    %28 = vector.broadcast %cst_20 : f32 to vector<8x200xf32>
    %29 = arith.mulf %28, %26 : vector<8x200xf32>
    %30 = arith.mulf %26, %26 : vector<8x200xf32>
    %31 = arith.mulf %30, %26 : vector<8x200xf32>
    %cst_21 = arith.constant 4.471500e-02 : f32
    %32 = vector.broadcast %cst_21 : f32 to vector<8x200xf32>
    %33 = arith.mulf %32, %31 : vector<8x200xf32>
    %34 = arith.addf %26, %33 : vector<8x200xf32>
    %cst_22 = arith.constant 0.797884583 : f32
    %35 = vector.broadcast %cst_22 : f32 to vector<8x200xf32>
    %36 = arith.mulf %35, %34 : vector<8x200xf32>
    %37 = math.tanh %36 : vector<8x200xf32>
    %cst_23 = arith.constant 1.000000e+00 : f32
    %38 = vector.broadcast %cst_23 : f32 to vector<8x200xf32>
    %39 = arith.addf %38, %37 : vector<8x200xf32>
    %40 = arith.mulf %29, %39 : vector<8x200xf32>
    %c0_24 = arith.constant 0 : index
    %c0_25 = arith.constant 0 : index
    %41 = vector.load %arg4[%c0_24, %c0_25] : memref<8x72xbf16, #tpu.memory_space<vmem>>, vector<8x72xbf16>
    %c0_26 = arith.constant 0 : index
    %c0_27 = arith.constant 0 : index
    %42 = vector.load %arg7[%c0_26, %c0_27] : memref<8x1xf32, #tpu.memory_space<vmem>>, vector<8x1xf32>
    %43 = arith.extf %27 : vector<1x200xbf16> to vector<1x200xf32>
    %44 = vector.broadcast %43 : vector<1x200xf32> to vector<8x200xf32>
    %45 = arith.mulf %40, %44 : vector<8x200xf32>
    %46 = arith.truncf %45 : vector<8x200xf32> to vector<8x200xbf16>
    %c0_28 = arith.constant 0 : index
    %c128 = arith.constant 128 : index
    %47 = vector.load %arg25[%c0_28, %c128] : memref<8x456xbf16, #tpu.memory_space<vmem>>, vector<8x200xbf16>
    tpu.vector_store %arg25[%c0_28, %c128], %46 {strides = array<i32>} : memref<8x456xbf16, #tpu.memory_space<vmem>>, vector<8x200xbf16>,
    %c0_29 = arith.constant 0 : index
    %c117 = arith.constant 117 : index
    %48 = vector.load %arg25[%c0_29, %c117] : memref<8x456xbf16, #tpu.memory_space<vmem>>, vector<8x200xbf16>
    %c0_30 = arith.constant 0 : index
    %c0_31 = arith.constant 0 : index
    %49 = vector.load %arg26[%c0_30, %c0_31] : memref<72x200xbf16, #tpu.memory_space<vmem>>, vector<8x200xbf16>
    tpu.vector_store %arg26[%c0_30, %c0_31], %48 {strides = array<i32>} : memref<72x200xbf16, #tpu.memory_space<vmem>>, vector<8x200xbf16>,
    %c0_32 = arith.constant 0 : index
    %c118 = arith.constant 118 : index
    %50 = vector.load %arg25[%c0_32, %c118] : memref<8x456xbf16, #tpu.memory_space<vmem>>, vector<8x200xbf16>
    %c8 = arith.constant 8 : index
    %c0_33 = arith.constant 0 : index
    %51 = vector.load %arg26[%c8, %c0_33] : memref<72x200xbf16, #tpu.memory_space<vmem>>, vector<8x200xbf16>
    tpu.vector_store %arg26[%c8, %c0_33], %50 {strides = array<i32>} : memref<72x200xbf16, #tpu.memory_space<vmem>>, vector<8x200xbf16>,
    %c0_34 = arith.constant 0 : index
    %c119 = arith.constant 119 : index
    %52 = vector.load %arg25[%c0_34, %c119] : memref<8x456xbf16, #tpu.memory_space<vmem>>, vector<8x200xbf16>
    %c16 = arith.constant 16 : index
    %c0_35 = arith.constant 0 : index
    %53 = vector.load %arg26[%c16, %c0_35] : memref<72x200xbf16, #tpu.memory_space<vmem>>, vector<8x200xbf16>
    tpu.vector_store %arg26[%c16, %c0_35], %52 {strides = array<i32>} : memref<72x200xbf16, #tpu.memory_space<vmem>>, vector<8x200xbf16>,
    %c0_36 = arith.constant 0 : index
    %c127 = arith.constant 127 : index
    %54 = vector.load %arg25[%c0_36, %c127] : memref<8x456xbf16, #tpu.memory_space<vmem>>, vector<8x200xbf16>
    %c24 = arith.constant 24 : index
    %c0_37 = arith.constant 0 : index
    %55 = vector.load %arg26[%c24, %c0_37] : memref<72x200xbf16, #tpu.memory_space<vmem>>, vector<8x200xbf16>
    tpu.vector_store %arg26[%c24, %c0_37], %54 {strides = array<i32>} : memref<72x200xbf16, #tpu.memory_space<vmem>>, vector<8x200xbf16>,
    %c0_38 = arith.constant 0 : index
    %c128_39 = arith.constant 128 : index
    %56 = vector.load %arg25[%c0_38, %c128_39] : memref<8x456xbf16, #tpu.memory_space<vmem>>, vector<8x200xbf16>
    %c32 = arith.constant 32 : index
    %c0_40 = arith.constant 0 : index
    %57 = vector.load %arg26[%c32, %c0_40] : memref<72x200xbf16, #tpu.memory_space<vmem>>, vector<8x200xbf16>
    tpu.vector_store %arg26[%c32, %c0_40], %56 {strides = array<i32>} : memref<72x200xbf16, #tpu.memory_space<vmem>>, vector<8x200xbf16>,
    %c0_41 = arith.constant 0 : index
    %c129 = arith.constant 129 : index
    %58 = vector.load %arg25[%c0_41, %c129] : memref<8x456xbf16, #tpu.memory_space<vmem>>, vector<8x200xbf16>
    %c40 = arith.constant 40 : index
    %c0_42 = arith.constant 0 : index
    %59 = vector.load %arg26[%c40, %c0_42] : memref<72x200xbf16, #tpu.memory_space<vmem>>, vector<8x200xbf16>
    tpu.vector_store %arg26[%c40, %c0_42], %58 {strides = array<i32>} : memref<72x200xbf16, #tpu.memory_space<vmem>>, vector<8x200xbf16>,
    %c0_43 = arith.constant 0 : index
    %c137 = arith.constant 137 : index
    %60 = vector.load %arg25[%c0_43, %c137] : memref<8x456xbf16, #tpu.memory_space<vmem>>, vector<8x200xbf16>
    %c48 = arith.constant 48 : index
    %c0_44 = arith.constant 0 : index
    %61 = vector.load %arg26[%c48, %c0_44] : memref<72x200xbf16, #tpu.memory_space<vmem>>, vector<8x200xbf16>
    tpu.vector_store %arg26[%c48, %c0_44], %60 {strides = array<i32>} : memref<72x200xbf16, #tpu.memory_space<vmem>>, vector<8x200xbf16>,
    %c0_45 = arith.constant 0 : index
    %c138 = arith.constant 138 : index
    %62 = vector.load %arg25[%c0_45, %c138] : memref<8x456xbf16, #tpu.memory_space<vmem>>, vector<8x200xbf16>
    %c56 = arith.constant 56 : index
    %c0_46 = arith.constant 0 : index
    %63 = vector.load %arg26[%c56, %c0_46] : memref<72x200xbf16, #tpu.memory_space<vmem>>, vector<8x200xbf16>
    tpu.vector_store %arg26[%c56, %c0_46], %62 {strides = array<i32>} : memref<72x200xbf16, #tpu.memory_space<vmem>>, vector<8x200xbf16>,
    %c0_47 = arith.constant 0 : index
    %c139 = arith.constant 139 : index
    %64 = vector.load %arg25[%c0_47, %c139] : memref<8x456xbf16, #tpu.memory_space<vmem>>, vector<8x200xbf16>
    %c64 = arith.constant 64 : index
    %c0_48 = arith.constant 0 : index
    %65 = vector.load %arg26[%c64, %c0_48] : memref<72x200xbf16, #tpu.memory_space<vmem>>, vector<8x200xbf16>
    tpu.vector_store %arg26[%c64, %c0_48], %64 {strides = array<i32>} : memref<72x200xbf16, #tpu.memory_space<vmem>>, vector<8x200xbf16>,
    %c0_49 = arith.constant 0 : index
    %c0_50 = arith.constant 0 : index
    %66 = vector.load %arg26[%c0_49, %c0_50] : memref<72x200xbf16, #tpu.memory_space<vmem>>, vector<72x200xbf16>
    %cst_51 = arith.constant dense<0.000000e+00> : vector<8x200xf32>
    %67 = tpu.matmul %41, %66, %cst_51 {dimension_numbers = #tpu.dot_dimension_numbers<[1], [0], [0], [1], [0, 0, 1, 1], [], []>} : vector<8x72xbf16>, vector<72x200xbf16>, vector<8x200xf32> -> vector<8x200xf32>
    %68 = vector.broadcast %42 : vector<8x1xf32> to vector<8x200xf32>
    %69 = arith.addf %67, %68 : vector<8x200xf32>
    %cst_52 = arith.constant 5.000000e-01 : f32
    %70 = vector.broadcast %cst_52 : f32 to vector<8x200xf32>
    %71 = arith.mulf %70, %69 : vector<8x200xf32>
    %72 = arith.mulf %69, %69 : vector<8x200xf32>
    %73 = arith.mulf %72, %69 : vector<8x200xf32>
    %cst_53 = arith.constant 4.471500e-02 : f32
    %74 = vector.broadcast %cst_53 : f32 to vector<8x200xf32>
    %75 = arith.mulf %74, %73 : vector<8x200xf32>
    %76 = arith.addf %69, %75 : vector<8x200xf32>
    %cst_54 = arith.constant 0.797884583 : f32
    %77 = vector.broadcast %cst_54 : f32 to vector<8x200xf32>
    %78 = arith.mulf %77, %76 : vector<8x200xf32>
    %79 = math.tanh %78 : vector<8x200xf32>
    %cst_55 = arith.constant 1.000000e+00 : f32
    %80 = vector.broadcast %cst_55 : f32 to vector<8x200xf32>
    %81 = arith.addf %80, %79 : vector<8x200xf32>
    %82 = arith.mulf %71, %81 : vector<8x200xf32>
    %c0_56 = arith.constant 0 : index
    %c0_57 = arith.constant 0 : index
    %83 = vector.load %arg5[%c0_56, %c0_57] : memref<8x72xbf16, #tpu.memory_space<vmem>>, vector<8x72xbf16>
    %c0_58 = arith.constant 0 : index
    %c0_59 = arith.constant 0 : index
    %84 = vector.load %arg8[%c0_58, %c0_59] : memref<8x1xf32, #tpu.memory_space<vmem>>, vector<8x1xf32>
    %85 = arith.extf %27 : vector<1x200xbf16> to vector<1x200xf32>
    %86 = vector.broadcast %85 : vector<1x200xf32> to vector<8x200xf32>
    %87 = arith.mulf %82, %86 : vector<8x200xf32>
    %88 = arith.truncf %87 : vector<8x200xf32> to vector<8x200xbf16>
    %c0_60 = arith.constant 0 : index
    %c128_61 = arith.constant 128 : index
    %89 = vector.load %arg25[%c0_60, %c128_61] : memref<8x456xbf16, #tpu.memory_space<vmem>>, vector<8x200xbf16>
    tpu.vector_store %arg25[%c0_60, %c128_61], %88 {strides = array<i32>} : memref<8x456xbf16, #tpu.memory_space<vmem>>, vector<8x200xbf16>,
    %c0_62 = arith.constant 0 : index
    %c117_63 = arith.constant 117 : index
    %90 = vector.load %arg25[%c0_62, %c117_63] : memref<8x456xbf16, #tpu.memory_space<vmem>>, vector<8x200xbf16>
    %c0_64 = arith.constant 0 : index
    %c0_65 = arith.constant 0 : index
    %91 = vector.load %arg26[%c0_64, %c0_65] : memref<72x200xbf16, #tpu.memory_space<vmem>>, vector<8x200xbf16>
    tpu.vector_store %arg26[%c0_64, %c0_65], %90 {strides = array<i32>} : memref<72x200xbf16, #tpu.memory_space<vmem>>, vector<8x200xbf16>,
    %c0_66 = arith.constant 0 : index
    %c118_67 = arith.constant 118 : index
    %92 = vector.load %arg25[%c0_66, %c118_67] : memref<8x456xbf16, #tpu.memory_space<vmem>>, vector<8x200xbf16>
    %c8_68 = arith.constant 8 : index
    %c0_69 = arith.constant 0 : index
    %93 = vector.load %arg26[%c8_68, %c0_69] : memref<72x200xbf16, #tpu.memory_space<vmem>>, vector<8x200xbf16>
    tpu.vector_store %arg26[%c8_68, %c0_69], %92 {strides = array<i32>} : memref<72x200xbf16, #tpu.memory_space<vmem>>, vector<8x200xbf16>,
    %c0_70 = arith.constant 0 : index
    %c119_71 = arith.constant 119 : index
    %94 = vector.load %arg25[%c0_70, %c119_71] : memref<8x456xbf16, #tpu.memory_space<vmem>>, vector<8x200xbf16>
    %c16_72 = arith.constant 16 : index
    %c0_73 = arith.constant 0 : index
    %95 = vector.load %arg26[%c16_72, %c0_73] : memref<72x200xbf16, #tpu.memory_space<vmem>>, vector<8x200xbf16>
    tpu.vector_store %arg26[%c16_72, %c0_73], %94 {strides = array<i32>} : memref<72x200xbf16, #tpu.memory_space<vmem>>, vector<8x200xbf16>,
    %c0_74 = arith.constant 0 : index
    %c127_75 = arith.constant 127 : index
    %96 = vector.load %arg25[%c0_74, %c127_75] : memref<8x456xbf16, #tpu.memory_space<vmem>>, vector<8x200xbf16>
    %c24_76 = arith.constant 24 : index
    %c0_77 = arith.constant 0 : index
    %97 = vector.load %arg26[%c24_76, %c0_77] : memref<72x200xbf16, #tpu.memory_space<vmem>>, vector<8x200xbf16>
    tpu.vector_store %arg26[%c24_76, %c0_77], %96 {strides = array<i32>} : memref<72x200xbf16, #tpu.memory_space<vmem>>, vector<8x200xbf16>,
    %c0_78 = arith.constant 0 : index
    %c128_79 = arith.constant 128 : index
    %98 = vector.load %arg25[%c0_78, %c128_79] : memref<8x456xbf16, #tpu.memory_space<vmem>>, vector<8x200xbf16>
    %c32_80 = arith.constant 32 : index
    %c0_81 = arith.constant 0 : index
    %99 = vector.load %arg26[%c32_80, %c0_81] : memref<72x200xbf16, #tpu.memory_space<vmem>>, vector<8x200xbf16>
    tpu.vector_store %arg26[%c32_80, %c0_81], %98 {strides = array<i32>} : memref<72x200xbf16, #tpu.memory_space<vmem>>, vector<8x200xbf16>,
    %c0_82 = arith.constant 0 : index
    %c129_83 = arith.constant 129 : index
    %100 = vector.load %arg25[%c0_82, %c129_83] : memref<8x456xbf16, #tpu.memory_space<vmem>>, vector<8x200xbf16>
    %c40_84 = arith.constant 40 : index
    %c0_85 = arith.constant 0 : index
    %101 = vector.load %arg26[%c40_84, %c0_85] : memref<72x200xbf16, #tpu.memory_space<vmem>>, vector<8x200xbf16>
    tpu.vector_store %arg26[%c40_84, %c0_85], %100 {strides = array<i32>} : memref<72x200xbf16, #tpu.memory_space<vmem>>, vector<8x200xbf16>,
    %c0_86 = arith.constant 0 : index
    %c137_87 = arith.constant 137 : index
    %102 = vector.load %arg25[%c0_86, %c137_87] : memref<8x456xbf16, #tpu.memory_space<vmem>>, vector<8x200xbf16>
    %c48_88 = arith.constant 48 : index
    %c0_89 = arith.constant 0 : index
    %103 = vector.load %arg26[%c48_88, %c0_89] : memref<72x200xbf16, #tpu.memory_space<vmem>>, vector<8x200xbf16>
    tpu.vector_store %arg26[%c48_88, %c0_89], %102 {strides = array<i32>} : memref<72x200xbf16, #tpu.memory_space<vmem>>, vector<8x200xbf16>,
    %c0_90 = arith.constant 0 : index
    %c138_91 = arith.constant 138 : index
    %104 = vector.load %arg25[%c0_90, %c138_91] : memref<8x456xbf16, #tpu.memory_space<vmem>>, vector<8x200xbf16>
    %c56_92 = arith.constant 56 : index
    %c0_93 = arith.constant 0 : index
    %105 = vector.load %arg26[%c56_92, %c0_93] : memref<72x200xbf16, #tpu.memory_space<vmem>>, vector<8x200xbf16>
    tpu.vector_store %arg26[%c56_92, %c0_93], %104 {strides = array<i32>} : memref<72x200xbf16, #tpu.memory_space<vmem>>, vector<8x200xbf16>,
    %c0_94 = arith.constant 0 : index
    %c139_95 = arith.constant 139 : index
    %106 = vector.load %arg25[%c0_94, %c139_95] : memref<8x456xbf16, #tpu.memory_space<vmem>>, vector<8x200xbf16>
    %c64_96 = arith.constant 64 : index
    %c0_97 = arith.constant 0 : index
    %107 = vector.load %arg26[%c64_96, %c0_97] : memref<72x200xbf16, #tpu.memory_space<vmem>>, vector<8x200xbf16>
    tpu.vector_store %arg26[%c64_96, %c0_97], %106 {strides = array<i32>} : memref<72x200xbf16, #tpu.memory_space<vmem>>, vector<8x200xbf16>,
    %c0_98 = arith.constant 0 : index
    %c0_99 = arith.constant 0 : index
    %108 = vector.load %arg26[%c0_98, %c0_99] : memref<72x200xbf16, #tpu.memory_space<vmem>>, vector<72x200xbf16>
    %cst_100 = arith.constant dense<0.000000e+00> : vector<8x200xf32>
    %109 = tpu.matmul %83, %108, %cst_100 {dimension_numbers = #tpu.dot_dimension_numbers<[1], [0], [0], [1], [0, 0, 1, 1], [], []>} : vector<8x72xbf16>, vector<72x200xbf16>, vector<8x200xf32> -> vector<8x200xf32>
    %110 = vector.broadcast %84 : vector<8x1xf32> to vector<8x200xf32>
    %111 = arith.addf %109, %110 : vector<8x200xf32>
    %cst_101 = arith.constant 5.000000e-01 : f32
    %112 = vector.broadcast %cst_101 : f32 to vector<8x200xf32>
    %113 = arith.mulf %112, %111 : vector<8x200xf32>
    %114 = arith.mulf %111, %111 : vector<8x200xf32>
    %115 = arith.mulf %114, %111 : vector<8x200xf32>
    %cst_102 = arith.constant 4.471500e-02 : f32
    %116 = vector.broadcast %cst_102 : f32 to vector<8x200xf32>
    %117 = arith.mulf %116, %115 : vector<8x200xf32>
    %118 = arith.addf %111, %117 : vector<8x200xf32>
    %cst_103 = arith.constant 0.797884583 : f32
    %119 = vector.broadcast %cst_103 : f32 to vector<8x200xf32>
    %120 = arith.mulf %119, %118 : vector<8x200xf32>
    %121 = math.tanh %120 : vector<8x200xf32>
    %cst_104 = arith.constant 1.000000e+00 : f32
    %122 = vector.broadcast %cst_104 : f32 to vector<8x200xf32>
    %123 = arith.addf %122, %121 : vector<8x200xf32>
    %124 = arith.mulf %113, %123 : vector<8x200xf32>
    %c0_105 = arith.constant 0 : index
    %c0_106 = arith.constant 0 : index
    %125 = vector.load %arg9[%c0_105, %c0_106] : memref<16x8xbf16, #tpu.memory_space<vmem>>, vector<16x8xbf16>
    %c0_107 = arith.constant 0 : index
    %c0_108 = arith.constant 0 : index
    %126 = vector.load %arg10[%c0_107, %c0_108] : memref<16x1xf32, #tpu.memory_space<vmem>>, vector<16x1xf32>
    %127 = arith.truncf %124 : vector<8x200xf32> to vector<8x200xbf16>
    %cst_109 = arith.constant dense<0.000000e+00> : vector<16x200xf32>
    %128 = tpu.matmul %125, %127, %cst_109 {dimension_numbers = #tpu.dot_dimension_numbers<[1], [0], [0], [1], [0, 0, 1, 1], [], []>} : vector<16x8xbf16>, vector<8x200xbf16>, vector<16x200xf32> -> vector<16x200xf32>
    %129 = vector.broadcast %126 : vector<16x1xf32> to vector<16x200xf32>
    %130 = arith.addf %128, %129 : vector<16x200xf32>
    %131 = arith.addf %7, %130 : vector<16x200xf32>
    %c0_110 = arith.constant 0 : index
    %c0_111 = arith.constant 0 : index
    %132 = vector.load %arg11[%c0_110, %c0_111] : memref<8x16xbf16, #tpu.memory_space<vmem>>, vector<8x16xbf16>
    %133 = arith.truncf %131 : vector<16x200xf32> to vector<16x200xbf16>
    %cst_112 = arith.constant dense<0.000000e+00> : vector<8x200xf32>
    %134 = tpu.matmul %132, %133, %cst_112 {dimension_numbers = #tpu.dot_dimension_numbers<[1], [0], [0], [1], [0, 0, 1, 1], [], []>} : vector<8x16xbf16>, vector<16x200xbf16>, vector<8x200xf32> -> vector<8x200xf32>
    %135 = arith.truncf %134 : vector<8x200xf32> to vector<8x200xbf16>
    %c0_113 = arith.constant 0 : index
    %c0_114 = arith.constant 0 : index
    %136 = vector.load %arg12[%c0_113, %c0_114] : memref<200x648xbf16, #tpu.memory_space<vmem>>, vector<200x648xbf16>
    %cst_115 = arith.constant dense<0.000000e+00> : vector<8x648xf32>
    %137 = tpu.matmul %135, %136, %cst_115 {dimension_numbers = #tpu.dot_dimension_numbers<[1], [0], [0], [1], [0, 0, 1, 1], [], []>} : vector<8x200xbf16>, vector<200x648xbf16>, vector<8x648xf32> -> vector<8x648xf32>
    %cst_116 = arith.constant 5.000000e-01 : f32
    %138 = vector.broadcast %cst_116 : f32 to vector<8x648xf32>
    %139 = arith.mulf %138, %137 : vector<8x648xf32>
    %140 = arith.mulf %137, %137 : vector<8x648xf32>
    %141 = arith.mulf %140, %137 : vector<8x648xf32>
    %cst_117 = arith.constant 4.471500e-02 : f32
    %142 = vector.broadcast %cst_117 : f32 to vector<8x648xf32>
    %143 = arith.mulf %142, %141 : vector<8x648xf32>
    %144 = arith.addf %137, %143 : vector<8x648xf32>
    %cst_118 = arith.constant 0.797884583 : f32
    %145 = vector.broadcast %cst_118 : f32 to vector<8x648xf32>
    %146 = arith.mulf %145, %144 : vector<8x648xf32>
    %147 = math.tanh %146 : vector<8x648xf32>
    %cst_119 = arith.constant 1.000000e+00 : f32
    %148 = vector.broadcast %cst_119 : f32 to vector<8x648xf32>
    %149 = arith.addf %148, %147 : vector<8x648xf32>
    %150 = arith.mulf %139, %149 : vector<8x648xf32>
    %c0_120 = arith.constant 0 : index
    %c0_121 = arith.constant 0 : index
    %151 = vector.load %arg13[%c0_120, %c0_121] : memref<4x8xbf16, #tpu.memory_space<vmem>>, vector<4x8xbf16>
    %c0_122 = arith.constant 0 : index
    %c0_123 = arith.constant 0 : index
    %152 = vector.load %arg14[%c0_122, %c0_123] : memref<4x1xf32, #tpu.memory_space<vmem>>, vector<4x1xf32>
    %153 = arith.truncf %150 : vector<8x648xf32> to vector<8x648xbf16>
    %cst_124 = arith.constant dense<0.000000e+00> : vector<4x648xf32>
    %154 = tpu.matmul %151, %153, %cst_124 {dimension_numbers = #tpu.dot_dimension_numbers<[1], [0], [0], [1], [0, 0, 1, 1], [], []>} : vector<4x8xbf16>, vector<8x648xbf16>, vector<4x648xf32> -> vector<4x648xf32>
    %155 = vector.broadcast %152 : vector<4x1xf32> to vector<4x648xf32>
    %156 = arith.addf %154, %155 : vector<4x648xf32>
    %c0_125 = arith.constant 0 : index
    %c0_126 = arith.constant 0 : index
    %157 = vector.load %arg17[%c0_125, %c0_126] : memref<1x648xbf16, #tpu.memory_space<vmem>>, vector<1x648xbf16>
    %cst_127 = arith.constant 5.000000e-01 : f32
    %158 = vector.broadcast %cst_127 : f32 to vector<4x648xf32>
    %159 = arith.mulf %158, %156 : vector<4x648xf32>
    %160 = arith.mulf %156, %156 : vector<4x648xf32>
    %161 = arith.mulf %160, %156 : vector<4x648xf32>
    %cst_128 = arith.constant 4.471500e-02 : f32
    %162 = vector.broadcast %cst_128 : f32 to vector<4x648xf32>
    %163 = arith.mulf %162, %161 : vector<4x648xf32>
    %164 = arith.addf %156, %163 : vector<4x648xf32>
    %cst_129 = arith.constant 0.797884583 : f32
    %165 = vector.broadcast %cst_129 : f32 to vector<4x648xf32>
    %166 = arith.mulf %165, %164 : vector<4x648xf32>
    %167 = math.tanh %166 : vector<4x648xf32>
    %cst_130 = arith.constant 1.000000e+00 : f32
    %168 = vector.broadcast %cst_130 : f32 to vector<4x648xf32>
    %169 = arith.addf %168, %167 : vector<4x648xf32>
    %170 = arith.mulf %159, %169 : vector<4x648xf32>
    %c0_131 = arith.constant 0 : index
    %c0_132 = arith.constant 0 : index
    %171 = vector.load %arg15[%c0_131, %c0_132] : memref<4x36xbf16, #tpu.memory_space<vmem>>, vector<4x36xbf16>
    %c0_133 = arith.constant 0 : index
    %c0_134 = arith.constant 0 : index
    %172 = vector.load %arg18[%c0_133, %c0_134] : memref<4x1xf32, #tpu.memory_space<vmem>>, vector<4x1xf32>
    %173 = arith.extf %157 : vector<1x648xbf16> to vector<1x648xf32>
    %174 = vector.broadcast %173 : vector<1x648xf32> to vector<4x648xf32>
    %175 = arith.mulf %170, %174 : vector<4x648xf32>
    %176 = arith.truncf %175 : vector<4x648xf32> to vector<4x648xbf16>
    %c0_135 = arith.constant 0 : index
    %c128_136 = arith.constant 128 : index
    %177 = vector.load %arg27[%c0_135, %c128_136] : memref<8x904xbf16, #tpu.memory_space<vmem>>, vector<4x648xbf16>
    tpu.vector_store %arg27[%c0_135, %c128_136], %176 {strides = array<i32>} : memref<8x904xbf16, #tpu.memory_space<vmem>>, vector<4x648xbf16>,
    %c0_137 = arith.constant 0 : index
    %c109 = arith.constant 109 : index
    %178 = vector.load %arg27[%c0_137, %c109] : memref<8x904xbf16, #tpu.memory_space<vmem>>, vector<4x648xbf16>
    %c0_138 = arith.constant 0 : index
    %c0_139 = arith.constant 0 : index
    %179 = vector.load %arg28[%c0_138, %c0_139] : memref<72x648xbf16, #tpu.memory_space<vmem>>, vector<4x648xbf16>
    tpu.vector_store %arg28[%c0_138, %c0_139], %178 {strides = array<i32>} : memref<72x648xbf16, #tpu.memory_space<vmem>>, vector<4x648xbf16>,
    %c0_140 = arith.constant 0 : index
    %c110 = arith.constant 110 : index
    %180 = vector.load %arg27[%c0_140, %c110] : memref<8x904xbf16, #tpu.memory_space<vmem>>, vector<4x648xbf16>
    %c4 = arith.constant 4 : index
    %c0_141 = arith.constant 0 : index
    %181 = vector.load %arg28[%c4, %c0_141] : memref<72x648xbf16, #tpu.memory_space<vmem>>, vector<4x648xbf16>
    tpu.vector_store %arg28[%c4, %c0_141], %180 {strides = array<i32>} : memref<72x648xbf16, #tpu.memory_space<vmem>>, vector<4x648xbf16>,
    %c0_142 = arith.constant 0 : index
    %c111 = arith.constant 111 : index
    %182 = vector.load %arg27[%c0_142, %c111] : memref<8x904xbf16, #tpu.memory_space<vmem>>, vector<4x648xbf16>
    %c8_143 = arith.constant 8 : index
    %c0_144 = arith.constant 0 : index
    %183 = vector.load %arg28[%c8_143, %c0_144] : memref<72x648xbf16, #tpu.memory_space<vmem>>, vector<4x648xbf16>
    tpu.vector_store %arg28[%c8_143, %c0_144], %182 {strides = array<i32>} : memref<72x648xbf16, #tpu.memory_space<vmem>>, vector<4x648xbf16>,
    %c0_145 = arith.constant 0 : index
    %c127_146 = arith.constant 127 : index
    %184 = vector.load %arg27[%c0_145, %c127_146] : memref<8x904xbf16, #tpu.memory_space<vmem>>, vector<4x648xbf16>
    %c12 = arith.constant 12 : index
    %c0_147 = arith.constant 0 : index
    %185 = vector.load %arg28[%c12, %c0_147] : memref<72x648xbf16, #tpu.memory_space<vmem>>, vector<4x648xbf16>
    tpu.vector_store %arg28[%c12, %c0_147], %184 {strides = array<i32>} : memref<72x648xbf16, #tpu.memory_space<vmem>>, vector<4x648xbf16>,
    %c0_148 = arith.constant 0 : index
    %c128_149 = arith.constant 128 : index
    %186 = vector.load %arg27[%c0_148, %c128_149] : memref<8x904xbf16, #tpu.memory_space<vmem>>, vector<4x648xbf16>
    %c16_150 = arith.constant 16 : index
    %c0_151 = arith.constant 0 : index
    %187 = vector.load %arg28[%c16_150, %c0_151] : memref<72x648xbf16, #tpu.memory_space<vmem>>, vector<4x648xbf16>
    tpu.vector_store %arg28[%c16_150, %c0_151], %186 {strides = array<i32>} : memref<72x648xbf16, #tpu.memory_space<vmem>>, vector<4x648xbf16>,
    %c0_152 = arith.constant 0 : index
    %c129_153 = arith.constant 129 : index
    %188 = vector.load %arg27[%c0_152, %c129_153] : memref<8x904xbf16, #tpu.memory_space<vmem>>, vector<4x648xbf16>
    %c20 = arith.constant 20 : index
    %c0_154 = arith.constant 0 : index
    %189 = vector.load %arg28[%c20, %c0_154] : memref<72x648xbf16, #tpu.memory_space<vmem>>, vector<4x648xbf16>
    tpu.vector_store %arg28[%c20, %c0_154], %188 {strides = array<i32>} : memref<72x648xbf16, #tpu.memory_space<vmem>>, vector<4x648xbf16>,
    %c0_155 = arith.constant 0 : index
    %c145 = arith.constant 145 : index
    %190 = vector.load %arg27[%c0_155, %c145] : memref<8x904xbf16, #tpu.memory_space<vmem>>, vector<4x648xbf16>
    %c24_156 = arith.constant 24 : index
    %c0_157 = arith.constant 0 : index
    %191 = vector.load %arg28[%c24_156, %c0_157] : memref<72x648xbf16, #tpu.memory_space<vmem>>, vector<4x648xbf16>
    tpu.vector_store %arg28[%c24_156, %c0_157], %190 {strides = array<i32>} : memref<72x648xbf16, #tpu.memory_space<vmem>>, vector<4x648xbf16>,
    %c0_158 = arith.constant 0 : index
    %c146 = arith.constant 146 : index
    %192 = vector.load %arg27[%c0_158, %c146] : memref<8x904xbf16, #tpu.memory_space<vmem>>, vector<4x648xbf16>
    %c28 = arith.constant 28 : index
    %c0_159 = arith.constant 0 : index
    %193 = vector.load %arg28[%c28, %c0_159] : memref<72x648xbf16, #tpu.memory_space<vmem>>, vector<4x648xbf16>
    tpu.vector_store %arg28[%c28, %c0_159], %192 {strides = array<i32>} : memref<72x648xbf16, #tpu.memory_space<vmem>>, vector<4x648xbf16>,
    %c0_160 = arith.constant 0 : index
    %c147 = arith.constant 147 : index
    %194 = vector.load %arg27[%c0_160, %c147] : memref<8x904xbf16, #tpu.memory_space<vmem>>, vector<4x648xbf16>
    %c32_161 = arith.constant 32 : index
    %c0_162 = arith.constant 0 : index
    %195 = vector.load %arg28[%c32_161, %c0_162] : memref<72x648xbf16, #tpu.memory_space<vmem>>, vector<4x648xbf16>
    tpu.vector_store %arg28[%c32_161, %c0_162], %194 {strides = array<i32>} : memref<72x648xbf16, #tpu.memory_space<vmem>>, vector<4x648xbf16>,
    %c0_163 = arith.constant 0 : index
    %c0_164 = arith.constant 0 : index
    %196 = vector.load %arg28[%c0_163, %c0_164] : memref<72x648xbf16, #tpu.memory_space<vmem>>, vector<36x648xbf16>
    %cst_165 = arith.constant dense<0.000000e+00> : vector<4x648xf32>
    %197 = tpu.matmul %171, %196, %cst_165 {dimension_numbers = #tpu.dot_dimension_numbers<[1], [0], [0], [1], [0, 0, 1, 1], [], []>} : vector<4x36xbf16>, vector<36x648xbf16>, vector<4x648xf32> -> vector<4x648xf32>
    %198 = vector.broadcast %172 : vector<4x1xf32> to vector<4x648xf32>
    %199 = arith.addf %197, %198 : vector<4x648xf32>
    %cst_166 = arith.constant 5.000000e-01 : f32
    %200 = vector.broadcast %cst_166 : f32 to vector<4x648xf32>
    %201 = arith.mulf %200, %199 : vector<4x648xf32>
    %202 = arith.mulf %199, %199 : vector<4x648xf32>
    %203 = arith.mulf %202, %199 : vector<4x648xf32>
    %cst_167 = arith.constant 4.471500e-02 : f32
    %204 = vector.broadcast %cst_167 : f32 to vector<4x648xf32>
    %205 = arith.mulf %204, %203 : vector<4x648xf32>
    %206 = arith.addf %199, %205 : vector<4x648xf32>
    %cst_168 = arith.constant 0.797884583 : f32
    %207 = vector.broadcast %cst_168 : f32 to vector<4x648xf32>
    %208 = arith.mulf %207, %206 : vector<4x648xf32>
    %209 = math.tanh %208 : vector<4x648xf32>
    %cst_169 = arith.constant 1.000000e+00 : f32
    %210 = vector.broadcast %cst_169 : f32 to vector<4x648xf32>
    %211 = arith.addf %210, %209 : vector<4x648xf32>
    %212 = arith.mulf %201, %211 : vector<4x648xf32>
    %c0_170 = arith.constant 0 : index
    %c0_171 = arith.constant 0 : index
    %213 = vector.load %arg16[%c0_170, %c0_171] : memref<4x36xbf16, #tpu.memory_space<vmem>>, vector<4x36xbf16>
    %c0_172 = arith.constant 0 : index
    %c0_173 = arith.constant 0 : index
    %214 = vector.load %arg19[%c0_172, %c0_173] : memref<4x1xf32, #tpu.memory_space<vmem>>, vector<4x1xf32>
    %215 = arith.extf %157 : vector<1x648xbf16> to vector<1x648xf32>
    %216 = vector.broadcast %215 : vector<1x648xf32> to vector<4x648xf32>
    %217 = arith.mulf %212, %216 : vector<4x648xf32>
    %218 = arith.truncf %217 : vector<4x648xf32> to vector<4x648xbf16>
    %c0_174 = arith.constant 0 : index
    %c128_175 = arith.constant 128 : index
    %219 = vector.load %arg27[%c0_174, %c128_175] : memref<8x904xbf16, #tpu.memory_space<vmem>>, vector<4x648xbf16>
    tpu.vector_store %arg27[%c0_174, %c128_175], %218 {strides = array<i32>} : memref<8x904xbf16, #tpu.memory_space<vmem>>, vector<4x648xbf16>,
    %c0_176 = arith.constant 0 : index
    %c109_177 = arith.constant 109 : index
    %220 = vector.load %arg27[%c0_176, %c109_177] : memref<8x904xbf16, #tpu.memory_space<vmem>>, vector<4x648xbf16>
    %c0_178 = arith.constant 0 : index
    %c0_179 = arith.constant 0 : index
    %221 = vector.load %arg28[%c0_178, %c0_179] : memref<72x648xbf16, #tpu.memory_space<vmem>>, vector<4x648xbf16>
    tpu.vector_store %arg28[%c0_178, %c0_179], %220 {strides = array<i32>} : memref<72x648xbf16, #tpu.memory_space<vmem>>, vector<4x648xbf16>,
    %c0_180 = arith.constant 0 : index
    %c110_181 = arith.constant 110 : index
    %222 = vector.load %arg27[%c0_180, %c110_181] : memref<8x904xbf16, #tpu.memory_space<vmem>>, vector<4x648xbf16>
    %c4_182 = arith.constant 4 : index
    %c0_183 = arith.constant 0 : index
    %223 = vector.load %arg28[%c4_182, %c0_183] : memref<72x648xbf16, #tpu.memory_space<vmem>>, vector<4x648xbf16>
    tpu.vector_store %arg28[%c4_182, %c0_183], %222 {strides = array<i32>} : memref<72x648xbf16, #tpu.memory_space<vmem>>, vector<4x648xbf16>,
    %c0_184 = arith.constant 0 : index
    %c111_185 = arith.constant 111 : index
    %224 = vector.load %arg27[%c0_184, %c111_185] : memref<8x904xbf16, #tpu.memory_space<vmem>>, vector<4x648xbf16>
    %c8_186 = arith.constant 8 : index
    %c0_187 = arith.constant 0 : index
    %225 = vector.load %arg28[%c8_186, %c0_187] : memref<72x648xbf16, #tpu.memory_space<vmem>>, vector<4x648xbf16>
    tpu.vector_store %arg28[%c8_186, %c0_187], %224 {strides = array<i32>} : memref<72x648xbf16, #tpu.memory_space<vmem>>, vector<4x648xbf16>,
    %c0_188 = arith.constant 0 : index
    %c127_189 = arith.constant 127 : index
    %226 = vector.load %arg27[%c0_188, %c127_189] : memref<8x904xbf16, #tpu.memory_space<vmem>>, vector<4x648xbf16>
    %c12_190 = arith.constant 12 : index
    %c0_191 = arith.constant 0 : index
    %227 = vector.load %arg28[%c12_190, %c0_191] : memref<72x648xbf16, #tpu.memory_space<vmem>>, vector<4x648xbf16>
    tpu.vector_store %arg28[%c12_190, %c0_191], %226 {strides = array<i32>} : memref<72x648xbf16, #tpu.memory_space<vmem>>, vector<4x648xbf16>,
    %c0_192 = arith.constant 0 : index
    %c128_193 = arith.constant 128 : index
    %228 = vector.load %arg27[%c0_192, %c128_193] : memref<8x904xbf16, #tpu.memory_space<vmem>>, vector<4x648xbf16>
    %c16_194 = arith.constant 16 : index
    %c0_195 = arith.constant 0 : index
    %229 = vector.load %arg28[%c16_194, %c0_195] : memref<72x648xbf16, #tpu.memory_space<vmem>>, vector<4x648xbf16>
    tpu.vector_store %arg28[%c16_194, %c0_195], %228 {strides = array<i32>} : memref<72x648xbf16, #tpu.memory_space<vmem>>, vector<4x648xbf16>,
    %c0_196 = arith.constant 0 : index
    %c129_197 = arith.constant 129 : index
    %230 = vector.load %arg27[%c0_196, %c129_197] : memref<8x904xbf16, #tpu.memory_space<vmem>>, vector<4x648xbf16>
    %c20_198 = arith.constant 20 : index
    %c0_199 = arith.constant 0 : index
    %231 = vector.load %arg28[%c20_198, %c0_199] : memref<72x648xbf16, #tpu.memory_space<vmem>>, vector<4x648xbf16>
    tpu.vector_store %arg28[%c20_198, %c0_199], %230 {strides = array<i32>} : memref<72x648xbf16, #tpu.memory_space<vmem>>, vector<4x648xbf16>,
    %c0_200 = arith.constant 0 : index
    %c145_201 = arith.constant 145 : index
    %232 = vector.load %arg27[%c0_200, %c145_201] : memref<8x904xbf16, #tpu.memory_space<vmem>>, vector<4x648xbf16>
    %c24_202 = arith.constant 24 : index
    %c0_203 = arith.constant 0 : index
    %233 = vector.load %arg28[%c24_202, %c0_203] : memref<72x648xbf16, #tpu.memory_space<vmem>>, vector<4x648xbf16>
    tpu.vector_store %arg28[%c24_202, %c0_203], %232 {strides = array<i32>} : memref<72x648xbf16, #tpu.memory_space<vmem>>, vector<4x648xbf16>,
    %c0_204 = arith.constant 0 : index
    %c146_205 = arith.constant 146 : index
    %234 = vector.load %arg27[%c0_204, %c146_205] : memref<8x904xbf16, #tpu.memory_space<vmem>>, vector<4x648xbf16>
    %c28_206 = arith.constant 28 : index
    %c0_207 = arith.constant 0 : index
    %235 = vector.load %arg28[%c28_206, %c0_207] : memref<72x648xbf16, #tpu.memory_space<vmem>>, vector<4x648xbf16>
    tpu.vector_store %arg28[%c28_206, %c0_207], %234 {strides = array<i32>} : memref<72x648xbf16, #tpu.memory_space<vmem>>, vector<4x648xbf16>,
    %c0_208 = arith.constant 0 : index
    %c147_209 = arith.constant 147 : index
    %236 = vector.load %arg27[%c0_208, %c147_209] : memref<8x904xbf16, #tpu.memory_space<vmem>>, vector<4x648xbf16>
    %c32_210 = arith.constant 32 : index
    %c0_211 = arith.constant 0 : index
    %237 = vector.load %arg28[%c32_210, %c0_211] : memref<72x648xbf16, #tpu.memory_space<vmem>>, vector<4x648xbf16>
    tpu.vector_store %arg28[%c32_210, %c0_211], %236 {strides = array<i32>} : memref<72x648xbf16, #tpu.memory_space<vmem>>, vector<4x648xbf16>,
    %c0_212 = arith.constant 0 : index
    %c0_213 = arith.constant 0 : index
    %238 = vector.load %arg28[%c0_212, %c0_213] : memref<72x648xbf16, #tpu.memory_space<vmem>>, vector<36x648xbf16>
    %cst_214 = arith.constant dense<0.000000e+00> : vector<4x648xf32>
    %239 = tpu.matmul %213, %238, %cst_214 {dimension_numbers = #tpu.dot_dimension_numbers<[1], [0], [0], [1], [0, 0, 1, 1], [], []>} : vector<4x36xbf16>, vector<36x648xbf16>, vector<4x648xf32> -> vector<4x648xf32>
    %240 = vector.broadcast %214 : vector<4x1xf32> to vector<4x648xf32>
    %241 = arith.addf %239, %240 : vector<4x648xf32>
    %cst_215 = arith.constant 5.000000e-01 : f32
    %242 = vector.broadcast %cst_215 : f32 to vector<4x648xf32>
    %243 = arith.mulf %242, %241 : vector<4x648xf32>
    %244 = arith.mulf %241, %241 : vector<4x648xf32>
    %245 = arith.mulf %244, %241 : vector<4x648xf32>
    %cst_216 = arith.constant 4.471500e-02 : f32
    %246 = vector.broadcast %cst_216 : f32 to vector<4x648xf32>
    %247 = arith.mulf %246, %245 : vector<4x648xf32>
    %248 = arith.addf %241, %247 : vector<4x648xf32>
    %cst_217 = arith.constant 0.797884583 : f32
    %249 = vector.broadcast %cst_217 : f32 to vector<4x648xf32>
    %250 = arith.mulf %249, %248 : vector<4x648xf32>
    %251 = math.tanh %250 : vector<4x648xf32>
    %cst_218 = arith.constant 1.000000e+00 : f32
    %252 = vector.broadcast %cst_218 : f32 to vector<4x648xf32>
    %253 = arith.addf %252, %251 : vector<4x648xf32>
    %254 = arith.mulf %243, %253 : vector<4x648xf32>
    %c0_219 = arith.constant 0 : index
    %c0_220 = arith.constant 0 : index
    %255 = vector.load %arg20[%c0_219, %c0_220] : memref<8x4xbf16, #tpu.memory_space<vmem>>, vector<8x4xbf16>
    %c0_221 = arith.constant 0 : index
    %c0_222 = arith.constant 0 : index
    %256 = vector.load %arg21[%c0_221, %c0_222] : memref<8x1xf32, #tpu.memory_space<vmem>>, vector<8x1xf32>
    %257 = arith.truncf %254 : vector<4x648xf32> to vector<4x648xbf16>
    %cst_223 = arith.constant dense<0.000000e+00> : vector<8x648xf32>
    %258 = tpu.matmul %255, %257, %cst_223 {dimension_numbers = #tpu.dot_dimension_numbers<[1], [0], [0], [1], [0, 0, 1, 1], [], []>} : vector<8x4xbf16>, vector<4x648xbf16>, vector<8x648xf32> -> vector<8x648xf32>
    %259 = vector.broadcast %256 : vector<8x1xf32> to vector<8x648xf32>
    %260 = arith.addf %258, %259 : vector<8x648xf32>
    %261 = arith.addf %137, %260 : vector<8x648xf32>
    %c0_224 = arith.constant 0 : index
    %c0_225 = arith.constant 0 : index
    %262 = vector.load %arg17[%c0_224, %c0_225] : memref<1x648xbf16, #tpu.memory_space<vmem>>, vector<1x648xbf16>
    %c0_226 = arith.constant 0 : index
    %c0_227 = arith.constant 0 : index
    %263 = vector.load %arg22[%c0_226, %c0_227] : memref<1x72xbf16, #tpu.memory_space<vmem>>, vector<1x72xbf16>
    %c0_228 = arith.constant 0 : index
    %c0_229 = arith.constant 0 : index
    %264 = vector.load %arg23[%c0_228, %c0_229] : memref<1x1xf32, #tpu.memory_space<vmem>>, vector<1x1xf32>
    %265 = arith.extf %262 : vector<1x648xbf16> to vector<1x648xf32>
    %266 = vector.broadcast %265 : vector<1x648xf32> to vector<8x648xf32>
    %267 = arith.mulf %261, %266 : vector<8x648xf32>
    %268 = arith.truncf %267 : vector<8x648xf32> to vector<8x648xbf16>
    %c0_230 = arith.constant 0 : index
    %c128_231 = arith.constant 128 : index
    %269 = vector.load %arg27[%c0_230, %c128_231] : memref<8x904xbf16, #tpu.memory_space<vmem>>, vector<8x648xbf16>
    tpu.vector_store %arg27[%c0_230, %c128_231], %268 {strides = array<i32>} : memref<8x904xbf16, #tpu.memory_space<vmem>>, vector<8x648xbf16>,
    %c0_232 = arith.constant 0 : index
    %c109_233 = arith.constant 109 : index
    %270 = vector.load %arg27[%c0_232, %c109_233] : memref<8x904xbf16, #tpu.memory_space<vmem>>, vector<8x648xbf16>
    %c0_234 = arith.constant 0 : index
    %c0_235 = arith.constant 0 : index
    %271 = vector.load %arg28[%c0_234, %c0_235] : memref<72x648xbf16, #tpu.memory_space<vmem>>, vector<8x648xbf16>
    tpu.vector_store %arg28[%c0_234, %c0_235], %270 {strides = array<i32>} : memref<72x648xbf16, #tpu.memory_space<vmem>>, vector<8x648xbf16>,
    %c0_236 = arith.constant 0 : index
    %c110_237 = arith.constant 110 : index
    %272 = vector.load %arg27[%c0_236, %c110_237] : memref<8x904xbf16, #tpu.memory_space<vmem>>, vector<8x648xbf16>
    %c8_238 = arith.constant 8 : index
    %c0_239 = arith.constant 0 : index
    %273 = vector.load %arg28[%c8_238, %c0_239] : memref<72x648xbf16, #tpu.memory_space<vmem>>, vector<8x648xbf16>
    tpu.vector_store %arg28[%c8_238, %c0_239], %272 {strides = array<i32>} : memref<72x648xbf16, #tpu.memory_space<vmem>>, vector<8x648xbf16>,
    %c0_240 = arith.constant 0 : index
    %c111_241 = arith.constant 111 : index
    %274 = vector.load %arg27[%c0_240, %c111_241] : memref<8x904xbf16, #tpu.memory_space<vmem>>, vector<8x648xbf16>
    %c16_242 = arith.constant 16 : index
    %c0_243 = arith.constant 0 : index
    %275 = vector.load %arg28[%c16_242, %c0_243] : memref<72x648xbf16, #tpu.memory_space<vmem>>, vector<8x648xbf16>
    tpu.vector_store %arg28[%c16_242, %c0_243], %274 {strides = array<i32>} : memref<72x648xbf16, #tpu.memory_space<vmem>>, vector<8x648xbf16>,
    %c0_244 = arith.constant 0 : index
    %c127_245 = arith.constant 127 : index
    %276 = vector.load %arg27[%c0_244, %c127_245] : memref<8x904xbf16, #tpu.memory_space<vmem>>, vector<8x648xbf16>
    %c24_246 = arith.constant 24 : index
    %c0_247 = arith.constant 0 : index
    %277 = vector.load %arg28[%c24_246, %c0_247] : memref<72x648xbf16, #tpu.memory_space<vmem>>, vector<8x648xbf16>
    tpu.vector_store %arg28[%c24_246, %c0_247], %276 {strides = array<i32>} : memref<72x648xbf16, #tpu.memory_space<vmem>>, vector<8x648xbf16>,
    %c0_248 = arith.constant 0 : index
    %c128_249 = arith.constant 128 : index
    %278 = vector.load %arg27[%c0_248, %c128_249] : memref<8x904xbf16, #tpu.memory_space<vmem>>, vector<8x648xbf16>
    %c32_250 = arith.constant 32 : index
    %c0_251 = arith.constant 0 : index
    %279 = vector.load %arg28[%c32_250, %c0_251] : memref<72x648xbf16, #tpu.memory_space<vmem>>, vector<8x648xbf16>
    tpu.vector_store %arg28[%c32_250, %c0_251], %278 {strides = array<i32>} : memref<72x648xbf16, #tpu.memory_space<vmem>>, vector<8x648xbf16>,
    %c0_252 = arith.constant 0 : index
    %c129_253 = arith.constant 129 : index
    %280 = vector.load %arg27[%c0_252, %c129_253] : memref<8x904xbf16, #tpu.memory_space<vmem>>, vector<8x648xbf16>
    %c40_254 = arith.constant 40 : index
    %c0_255 = arith.constant 0 : index
    %281 = vector.load %arg28[%c40_254, %c0_255] : memref<72x648xbf16, #tpu.memory_space<vmem>>, vector<8x648xbf16>
    tpu.vector_store %arg28[%c40_254, %c0_255], %280 {strides = array<i32>} : memref<72x648xbf16, #tpu.memory_space<vmem>>, vector<8x648xbf16>,
    %c0_256 = arith.constant 0 : index
    %c145_257 = arith.constant 145 : index
    %282 = vector.load %arg27[%c0_256, %c145_257] : memref<8x904xbf16, #tpu.memory_space<vmem>>, vector<8x648xbf16>
    %c48_258 = arith.constant 48 : index
    %c0_259 = arith.constant 0 : index
    %283 = vector.load %arg28[%c48_258, %c0_259] : memref<72x648xbf16, #tpu.memory_space<vmem>>, vector<8x648xbf16>
    tpu.vector_store %arg28[%c48_258, %c0_259], %282 {strides = array<i32>} : memref<72x648xbf16, #tpu.memory_space<vmem>>, vector<8x648xbf16>,
    %c0_260 = arith.constant 0 : index
    %c146_261 = arith.constant 146 : index
    %284 = vector.load %arg27[%c0_260, %c146_261] : memref<8x904xbf16, #tpu.memory_space<vmem>>, vector<8x648xbf16>
    %c56_262 = arith.constant 56 : index
    %c0_263 = arith.constant 0 : index
    %285 = vector.load %arg28[%c56_262, %c0_263] : memref<72x648xbf16, #tpu.memory_space<vmem>>, vector<8x648xbf16>
    tpu.vector_store %arg28[%c56_262, %c0_263], %284 {strides = array<i32>} : memref<72x648xbf16, #tpu.memory_space<vmem>>, vector<8x648xbf16>,
    %c0_264 = arith.constant 0 : index
    %c147_265 = arith.constant 147 : index
    %286 = vector.load %arg27[%c0_264, %c147_265] : memref<8x904xbf16, #tpu.memory_space<vmem>>, vector<8x648xbf16>
    %c64_266 = arith.constant 64 : index
    %c0_267 = arith.constant 0 : index
    %287 = vector.load %arg28[%c64_266, %c0_267] : memref<72x648xbf16, #tpu.memory_space<vmem>>, vector<8x648xbf16>
    tpu.vector_store %arg28[%c64_266, %c0_267], %286 {strides = array<i32>} : memref<72x648xbf16, #tpu.memory_space<vmem>>, vector<8x648xbf16>,
    %c0_268 = arith.constant 0 : index
    %c0_269 = arith.constant 0 : index
    %288 = vector.load %arg28[%c0_268, %c0_269] : memref<72x648xbf16, #tpu.memory_space<vmem>>, vector<72x648xbf16>
    %cst_270 = arith.constant dense<0.000000e+00> : vector<1x648xf32>
    %289 = tpu.matmul %263, %288, %cst_270 {dimension_numbers = #tpu.dot_dimension_numbers<[1], [0], [0], [1], [0, 0, 1, 1], [], []>} : vector<1x72xbf16>, vector<72x648xbf16>, vector<1x648xf32> -> vector<1x648xf32>
    %290 = vector.broadcast %264 : vector<1x1xf32> to vector<1x648xf32>
    %291 = arith.addf %289, %290 : vector<1x648xf32>
    %cst_271 = arith.constant 0.000000e+00 : f32
    %292 = vector.broadcast %cst_271 : f32 to vector<1x648xf32>
    %293 = arith.subf %292, %291 : vector<1x648xf32>
    %294 = math.exp %293 : vector<1x648xf32>
    %cst_272 = arith.constant 1.000000e+00 : f32
    %295 = vector.broadcast %cst_272 : f32 to vector<1x648xf32>
    %296 = arith.addf %295, %294 : vector<1x648xf32>
    %297 = tpu.reciprocal %296 {approx = true} : vector<1x648xf32> -> vector<1x648xf32>
    %cst_273 = arith.constant 0.000000e+00 : f32
    %cst_274 = arith.constant 1.000000e+00 : f32
    %298 = vector.broadcast %cst_273 : f32 to vector<1x648xf32>
    %299 = arith.maximumf %298, %297 : vector<1x648xf32>
    %300 = vector.broadcast %cst_274 : f32 to vector<1x648xf32>
    %301 = arith.minimumf %300, %299 : vector<1x648xf32>
    %c0_275 = arith.constant 0 : index
    %c0_276 = arith.constant 0 : index
    %c0_277 = arith.constant 0 : index
    %302 = vector.load %arg24[%c0_275, %c0_276, %c0_277] : memref<1x1x648xf32, #tpu.memory_space<vmem>>, vector<1x1x648xf32>
    %303 = vector.shape_cast %302 : vector<1x1x648xf32> to vector<1x648xf32>
    %304 = vector.shape_cast %301 : vector<1x648xf32> to vector<1x1x648xf32>
    tpu.vector_store %arg24[%c0_275, %c0_276, %c0_277], %304 {strides = array<i32>} : memref<1x1x648xf32, #tpu.memory_space<vmem>>, vector<1x1x648xf32>,
    return
  }
  func.func @transform_0(%arg0: i32) -> (i32, i32, i32) {
    %c0_i32 = arith.constant 0 : i32
    %c0_i32_0 = arith.constant 0 : i32
    %c0_i32_1 = arith.constant 0 : i32
    return %arg0, %c0_i32, %c0_i32_0 : i32, i32, i32
  }
  func.func @transform_1(%arg0: i32) -> (i32, i32) {
    %c0_i32 = arith.constant 0 : i32
    %c0_i32_0 = arith.constant 0 : i32
    %c0_i32_1 = arith.constant 0 : i32
    return %c0_i32, %c0_i32_0 : i32, i32
  }
  func.func @transform_2(%arg0: i32) -> (i32, i32) {
    %c0_i32 = arith.constant 0 : i32
    %c0_i32_0 = arith.constant 0 : i32
    %c0_i32_1 = arith.constant 0 : i32
    return %c0_i32, %c0_i32_0 : i32, i32
  }
  func.func @transform_3(%arg0: i32) -> (i32, i32) {
    %c0_i32 = arith.constant 0 : i32
    %c0_i32_0 = arith.constant 0 : i32
    %c0_i32_1 = arith.constant 0 : i32
    return %c0_i32, %c0_i32_0 : i32, i32
  }
  func.func @transform_4(%arg0: i32) -> (i32, i32) {
    %c0_i32 = arith.constant 0 : i32
    %c0_i32_0 = arith.constant 0 : i32
    %c0_i32_1 = arith.constant 0 : i32
    return %c0_i32, %c0_i32_0 : i32, i32
  }
  func.func @transform_5(%arg0: i32) -> (i32, i32) {
    %c0_i32 = arith.constant 0 : i32
    %c0_i32_0 = arith.constant 0 : i32
    %c0_i32_1 = arith.constant 0 : i32
    return %c0_i32, %c0_i32_0 : i32, i32
  }
  func.func @transform_6(%arg0: i32) -> (i32, i32) {
    %c0_i32 = arith.constant 0 : i32
    %c0_i32_0 = arith.constant 0 : i32
    %c0_i32_1 = arith.constant 0 : i32
    return %c0_i32, %c0_i32_0 : i32, i32
  }
  func.func @transform_7(%arg0: i32) -> (i32, i32) {
    %c0_i32 = arith.constant 0 : i32
    %c0_i32_0 = arith.constant 0 : i32
    %c0_i32_1 = arith.constant 0 : i32
    return %c0_i32, %c0_i32_0 : i32, i32
  }
  func.func @transform_8(%arg0: i32) -> (i32, i32) {
    %c0_i32 = arith.constant 0 : i32
    %c0_i32_0 = arith.constant 0 : i32
    %c0_i32_1 = arith.constant 0 : i32
    return %c0_i32, %c0_i32_0 : i32, i32
  }
  func.func @transform_9(%arg0: i32) -> (i32, i32) {
    %c0_i32 = arith.constant 0 : i32
    %c0_i32_0 = arith.constant 0 : i32
    %c0_i32_1 = arith.constant 0 : i32
    return %c0_i32, %c0_i32_0 : i32, i32
  }
  func.func @transform_10(%arg0: i32) -> (i32, i32) {
    %c0_i32 = arith.constant 0 : i32
    %c0_i32_0 = arith.constant 0 : i32
    %c0_i32_1 = arith.constant 0 : i32
    return %c0_i32, %c0_i32_0 : i32, i32
  }
  func.func @transform_11(%arg0: i32) -> (i32, i32) {
    %c0_i32 = arith.constant 0 : i32
    %c0_i32_0 = arith.constant 0 : i32
    %c0_i32_1 = arith.constant 0 : i32
    return %c0_i32, %c0_i32_0 : i32, i32
  }
  func.func @transform_12(%arg0: i32) -> (i32, i32) {
    %c0_i32 = arith.constant 0 : i32
    %c0_i32_0 = arith.constant 0 : i32
    %c0_i32_1 = arith.constant 0 : i32
    return %c0_i32, %c0_i32_0 : i32, i32
  }
  func.func @transform_13(%arg0: i32) -> (i32, i32) {
    %c0_i32 = arith.constant 0 : i32
    %c0_i32_0 = arith.constant 0 : i32
    %c0_i32_1 = arith.constant 0 : i32
    return %c0_i32, %c0_i32_0 : i32, i32
  }
  func.func @transform_14(%arg0: i32) -> (i32, i32) {
    %c0_i32 = arith.constant 0 : i32
    %c0_i32_0 = arith.constant 0 : i32
    %c0_i32_1 = arith.constant 0 : i32
    return %c0_i32, %c0_i32_0 : i32, i32
  }
  func.func @transform_15(%arg0: i32) -> (i32, i32) {
    %c0_i32 = arith.constant 0 : i32
    %c0_i32_0 = arith.constant 0 : i32
    %c0_i32_1 = arith.constant 0 : i32
    return %c0_i32, %c0_i32_0 : i32, i32
  }
  func.func @transform_16(%arg0: i32) -> (i32, i32) {
    %c0_i32 = arith.constant 0 : i32
    %c0_i32_0 = arith.constant 0 : i32
    %c0_i32_1 = arith.constant 0 : i32
    return %c0_i32, %c0_i32_0 : i32, i32
  }
  func.func @transform_17(%arg0: i32) -> (i32, i32) {
    %c0_i32 = arith.constant 0 : i32
    %c0_i32_0 = arith.constant 0 : i32
    %c0_i32_1 = arith.constant 0 : i32
    return %c0_i32, %c0_i32_0 : i32, i32
  }
  func.func @transform_18(%arg0: i32) -> (i32, i32) {
    %c0_i32 = arith.constant 0 : i32
    %c0_i32_0 = arith.constant 0 : i32
    %c0_i32_1 = arith.constant 0 : i32
    return %c0_i32, %c0_i32_0 : i32, i32
  }
  func.func @transform_19(%arg0: i32) -> (i32, i32) {
    %c0_i32 = arith.constant 0 : i32
    %c0_i32_0 = arith.constant 0 : i32
    %c0_i32_1 = arith.constant 0 : i32
    return %c0_i32, %c0_i32_0 : i32, i32
  }
  func.func @transform_20(%arg0: i32) -> (i32, i32) {
    %c0_i32 = arith.constant 0 : i32
    %c0_i32_0 = arith.constant 0 : i32
    %c0_i32_1 = arith.constant 0 : i32
    return %c0_i32, %c0_i32_0 : i32, i32
  }
  func.func @transform_21(%arg0: i32) -> (i32, i32) {
    %c0_i32 = arith.constant 0 : i32
    %c0_i32_0 = arith.constant 0 : i32
    %c0_i32_1 = arith.constant 0 : i32
    return %c0_i32, %c0_i32_0 : i32, i32
  }
  func.func @transform_22(%arg0: i32) -> (i32, i32) {
    %c0_i32 = arith.constant 0 : i32
    %c0_i32_0 = arith.constant 0 : i32
    %c0_i32_1 = arith.constant 0 : i32
    return %c0_i32, %c0_i32_0 : i32, i32
  }
  func.func @transform_23(%arg0: i32) -> (i32, i32, i32) {
    %c0_i32 = arith.constant 0 : i32
    %c0_i32_0 = arith.constant 0 : i32
    %c0_i32_1 = arith.constant 0 : i32
    return %arg0, %c0_i32, %c0_i32_0 : i32, i32, i32
  }
}

</mosaic_0001>

<bundles_post_ra>
// kernel: tpu_custom_call.1
= control target key start
LH: loop header
LB: loop body
LE: loop exit
PB: predicated region body
PF: predicated region fallthrough
CT: control target
= control target key end

     0   :  { %s5396_s0 = inlined_call_operand.vmem [shape: f32[1,16,200], index: 0, kind: input, shape index: {}]   ;;  %s5397_s1 = inlined_call_operand.vmem [shape: bf16[8,16], index: 1, kind: input, shape index: {}]   ;;  %s5398_s2 = inlined_call_operand.vmem [shape: f32[8,1], index: 2, kind: input, shape index: {}]   ;;  %s5399_s3 = inlined_call_operand.vmem [shape: bf16[8,72], index: 3, kind: input, shape index: {}]   ;;  %s5400_s4 = inlined_call_operand.vmem [shape: bf16[8,72], index: 4, kind: input, shape index: {}]   ;;  %s5401_s5 = inlined_call_operand.vmem [shape: bf16[1,200], index: 5, kind: input, shape index: {}]   ;;  %s5402_s6 = inlined_call_operand.vmem [shape: f32[8,1], index: 6, kind: input, shape index: {}]   ;;  %s5403_s7 = inlined_call_operand.vmem [shape: f32[8,1], index: 7, kind: input, shape index: {}]   ;;  %s5404_s8 = inlined_call_operand.vmem [shape: bf16[16,8], index: 8, kind: input, shape index: {}]   ;;  %s5405_s9 = inlined_call_operand.vmem [shape: f32[16,1], index: 9, kind: input, shape index: {}]   ;;  %s5406_s10 = inlined_call_operand.vmem [shape: bf16[8,16], index: 10, kind: input, shape index: {}]   ;;  %s5407_s11 = inlined_call_operand.hbm [shape: bf16[200,648], index: 11, kind: input, shape index: {}]   ;;  %s5408_s12 = inlined_call_operand.vmem [shape: bf16[4,8], index: 12, kind: input, shape index: {}]   ;;  %s5409_s13 = inlined_call_operand.vmem [shape: f32[4,1], index: 13, kind: input, shape index: {}]   ;;  %s5410_s14 = inlined_call_operand.vmem [shape: bf16[4,36], index: 14, kind: input, shape index: {}]   ;;  %s5411_s15 = inlined_call_operand.vmem [shape: bf16[4,36], index: 15, kind: input, shape index: {}]   ;;  %s5412_s16 = inlined_call_operand.vmem [shape: bf16[1,648], index: 16, kind: input, shape index: {}]   ;;  %s5413_s17 = inlined_call_operand.vmem [shape: f32[4,1], index: 17, kind: input, shape index: {}]   ;;  %s5414_s18 = inlined_call_operand.vmem [shape: f32[4,1], index: 18, kind: input, shape index: {}]   ;;  %s5415_s19 = inlined_call_operand.vmem [shape: bf16[8,4], index: 19, kind: input, shape index: {}]   ;;  %s5416_s20 = inlined_call_operand.vmem [shape: f32[8,1], index: 20, kind: input, shape index: {}]   ;;  %s5417_s21 = inlined_call_operand.vmem [shape: bf16[1,72], index: 21, kind: input, shape index: {}]   ;;  %s5418_s22 = inlined_call_operand.<no memory space> [shape: f32[1,1], index: 22, kind: input, shape index: {}]   ;;  %s5419_s23 = inlined_call_operand.hbm [shape: f32[1,1,648], index: 23, kind: output, shape index: {}]  }
   0x1   :  { %5422 = sst [smem:[#allocation13_spill]] %s5396_s0  ;;  %v28_v0 = vstv %s5418_s22 }
   0x2   :  { %5423 = sst [smem:[#allocation14_spill]] %s5397_s1  ;;  %29 = vst [vmem:[#allocation6] sm:$0x1] %v28_v0 }
   0x3   :  { %5424 = sst [smem:[#allocation15_spill]] %s5398_s2 }
   0x4   :  { %5425 = sst [smem:[#allocation16_spill]] %s5399_s3 }
   0x5   :  { %5426 = sst [smem:[#allocation17_spill]] %s5400_s4 }
   0x6   :  { %5427 = sst [smem:[#allocation18_spill]] %s5401_s5 }
   0x7   :  { %5428 = sst [smem:[#allocation19_spill]] %s5402_s6 }
   0x8   :  { %5429 = sst [smem:[#allocation20_spill]] %s5403_s7 }
   0x9   :  { %30 = vsyncpa [#allocation8], 0 }
   0xa   :  { %31 = vsyncpa [#allocation9], 0  ;;  %s4385_s24 = smov [#allocation7]  }
   0xb   :  { %s59_s25 = sshll.u32 %s4385_s24, 4  ;;  %s60_s25 = int_to_ptr.vmem [resolvable:$true] %s59_s25 }
   0xc   :  { %s4349_s5 = scalar_lea.vmem %s60_s25, 9600  ;;  %p4354_p1 = scmp.lt.s32.totalorder %s60_s25, %s60_s25 }
   0xd   :  { %p4350_p0 = scmp.ne.s32.totalorder %s60_s25, %s4349_s5  ;;  %p4355_p2 = scmp.lt.s32.totalorder %s4349_s5, %s4349_s5 }
   0xf   :  { %p4356_p3 = por %p4355_p2, %p4354_p1 }
  0x11   :  { %p4357_p4 = pnand %p4356_p3, %p4350_p0 }
  0x13   :  { %4360 = shalt.err (!%p4357_p4)
}
  0x14   :  { %s4386_s1 = smov 384   ;;  %s4387_s26 = smov 24  }
  0x15   :  { %65 = dma.hbm_to_vmem [thread:$0]  %s5407_s11, 9600, %s60_s25, [#allocation8], %s4386_s1, %s4386_s1, %s4387_s26  }
  0x16   :  { %4381 = dma.done.wait [#allocation8], 9600  }
  0x17   :  { %4382 = vsyncadd [#allocation8], 4294957696  ;;  %v4388_v1 = vmov 0   ;;  %s5430_s7 = sld [smem:[#allocation13_spill]]  ;;  %vm151_vm0 = vcmask 130048   ;;  %vm93_vm1 = vcmask 1044032   ;;  %v219_v62 = vlaneseq }
  0x18   :  { %187 = vmatprep.mubr.bf16.mxu0 %v4388_v1  ;;  %92 = vst [vmem:[#allocation2] sm:$0xf] %v4388_v1  ;;  %97 = vst [vmem:[#allocation4] sm:$0xf] %v4388_v1  ;;  %4041 = vset.pattern.permute.xlu0 %v4388_v1  ;;  %s5431_s25 = sld [smem:[#allocation15_spill]]  ;;  %vm94_vm2 = vcmask 588804  }
  0x19   :  { %450 = vmatprep.mubr.bf16.mxu1 %v4388_v1  ;;  %4042 = vset.pattern.permute.xlu1 %v4388_v1  ;;  %s5432_s26 = sld [smem:[#allocation14_spill]]  ;;  %vm95_vm3 = vmor %vm94_vm2, %vm93_vm1  ;;  %v4560_v0 = vshrl.u32 %v219_v62, 7  ;;  %vm247_vm4 = vcmask 1043456   ;;  %s4389_s27 = smov 117   ;;  %vm345_vm6 = vcmask 957440   ;;  %vm327_vm7 = vcmask 973824  }
  0x1a   :  { %96 = vst.msk [vmem:[#allocation2 + $0x8] sm:$0xff] %vm95_vm3, %v4388_v1  ;;  %s5433_s22 = sld [smem:[#allocation18_spill]]  ;;  %vm4583_vm5 = vmor %vm94_vm2, %vm247_vm4  ;;  %s4390_s11 = smov 119   ;;  %vm336_vm8 = vcmask 965632   ;;  %vm318_vm9 = vcmask 1039360   ;;  %vm292_vm10 = vcmask 72704  }
  0x1b   :  { %s4391_s28 = smov 118   ;;  %s4392_s29 = smov 127   ;;  %vm307_vm11 = vcmask 7168   ;;  %vm262_vm12 = vcmask 89088   ;;  %vm277_vm13 = vcmask 80896   ;;  %vm5421_vm14 = vcmask 588800  }
  0x1c   :  { %s4393_s3 = smov 9   ;;  %s4394_s0 = smov 1   ;;  %vm728_vm15 = vcmask 64512   ;;  %vm99_vm1 = vcmask 64516   ;;  %vm1786_vm3 = vcmask 1041408  }
  0x1d   :  { %v103_v2 = vld [vmem:[%s5430_s7 + $0x8] sm:$0xff]  ;;  %v105_v3 = vld [vmem:[%s5430_s7 + $0x18] sm:$0xff]  ;;  %v102_v4 = vld [vmem:[%s5430_s7] sm:$0xff]  ;;  %s4395_s4 = smov 11   ;;  %s4396_s30 = smov 10  }
  0x1e   :  { %v111_v5 = vmul.f32 %v103_v2, %v103_v2  ;;  %v113_v6 = vmul.f32 %v105_v3, %v105_v3  ;;  %v104_v7 = vld [vmem:[%s5430_s7 + $0x10] sm:$0xff]  ;;  %v143_v8 = vld [vmem:[%s5431_s25] sm:$0xff]  ;;  %v110_v9 = vmul.f32 %v102_v4, %v102_v4  ;;  %v107_v27 = vmul.f32 0.5, %v103_v2  ;;  %s5436_s5 = sld [smem:[#allocation19_spill]]  ;;  %s4397_s25 = smov 109  }
  0x1f   :  { %v112_v10 = vmul.f32 %v104_v7, %v104_v7  ;;  %148 = vperm.xlu0 %4041, %v143_v8   ;;  %v109_v29 = vmul.f32 0.5, %v105_v3  ;;  %v106_v32 = vmul.f32 0.5, %v102_v4  ;;  %v108_v35 = vmul.f32 0.5, %v104_v7  ;;  %v142_v45 = vld [vmem:[%s5432_s26] sm:$0xf]  ;;  %s5437_s2 = sld [smem:[#allocation16_spill]] }
  0x20   :  { %v115_v11 = vmul.f32 %v111_v5, %v103_v2  ;;  %v117_v12 = vmul.f32 %v113_v6, %v105_v3  ;;  %v114_v13 = vmul.f32 %v110_v9, %v102_v4  ;;  %v4569_v5 = vsub.s32 2, %v4560_v0  ;;  %s4402_s1 = smov 18  }
  0x21   :  { %v116_v14 = vmul.f32 %v112_v10, %v104_v7 }
  0x22   :  { %v119_v15 = vmul.f32 0.044715, %v115_v11  ;;  %v121_v16 = vmul.f32 0.044715, %v117_v12  ;;  %v118_v17 = vmul.f32 0.044715, %v114_v13 }
  0x23   :  { %v120_v18 = vmul.f32 0.044715, %v116_v14 }
  0x24   :  { %v123_v19 = vadd.f32 %v119_v15, %v103_v2  ;;  %v125_v20 = vadd.f32 %v121_v16, %v105_v3  ;;  %v122_v21 = vadd.f32 %v118_v17, %v102_v4  ;;  %v196_v2 = vld [vmem:[%s5433_s22] sm:$0x3]  ;;  %v4566_v4 = vsub.s32 0, %v4560_v0 }
  0x25   :  { %v124_v22 = vadd.f32 %v120_v18, %v104_v7  ;;  %v217_v3 = vunpack.c.l.bf16 %v196_v2 }
  0x26   :  { %v127_v23 = vmul.f32 0.7978846, %v123_v19  ;;  %v129_v24 = vmul.f32 0.7978846, %v125_v20  ;;  %v126_v25 = vmul.f32 0.7978846, %v122_v21 }
  0x27   :  { %v128_v26 = vmul.f32 0.7978846, %v124_v22  ;;  %v222_v6 = vrot.slane %v217_v3, %v4566_v4  ;;  %v226_v7 = vrot.slane %v217_v3, %v4569_v5 }
  0x28   :  { %4245 = vtanh.f32 %v127_v23 }
  0x29   :  { %4247 = vtanh.f32 %v129_v24  ;;  %v4574_v12 = vrot.slane %v222_v6, %v4566_v4  ;;  %v4577_v16 = vrot.slane %v226_v7, %v4566_v4 }
  0x2a   :  { %4249 = vtanh.f32 %v126_v25 }
  0x2b   :  { %4251 = vtanh.f32 %v128_v26 }
  0x35   :  { %v4246_v28 = vpop.eup %4245 }
  0x36   :  { %v4248_v30 = vpop.eup %4247  ;;  %v135_v31 = vadd.f32 1.0, %v4246_v28  ;;  %v216_v28 = vld [vmem:[%s5436_s5] sm:$0xff]  ;;  %s4401_s5 = smov 110  }
  0x37   :  { %v4250_v33 = vpop.eup %4249  ;;  %v137_v34 = vadd.f32 1.0, %v4248_v30 }
  0x38   :  { %v4252_v36 = vpop.eup %4251  ;;  %v139_v37 = vmul.f32 %v135_v31, %v107_v27  ;;  %v134_v38 = vadd.f32 1.0, %v4250_v33 }
  0x39   :  { %v141_v39 = vmul.f32 %v137_v34, %v109_v29  ;;  %v136_v40 = vadd.f32 1.0, %v4252_v36 }
  0x3a   :  { %v138_v41 = vmul.f32 %v134_v38, %v106_v32 }
  0x3b   :  { %v145_v42 = vpack.c.bf16 %v141_v39, %v139_v37  ;;  %v140_v43 = vmul.f32 %v136_v40, %v108_v35 }
  0x3d   :  { %169 = vmatprep.subr.bf16.mxu0 %v145_v42  ;;  %v144_v44 = vpack.c.bf16 %v140_v43, %v138_v41 }
  0x3f   :  { %170 = vmatpush1.bf16.msra.mxu0 %v144_v44 }
  0x42   :  { %3790 = vmatmul.mubr.msk.bf16.vlgmr.msra.gmra.mxu0 %vm151_vm0, %v142_v45 }
  0x43   :  { %680 = vmatprep.mubr.bf16.mxu0 %v4388_v1 }
  0x9a   :  { %v149_v46 = vpop.permute.xlu0 %148 }
 0x102   :  { %v189_v47 = vpop.f32.mrf.mxu0 }
 0x103   :  { %v190_v48 = vadd.f32 %v189_v47, %v149_v46 }
 0x104   :  { %v191_v49 = vpop.f32.mrf.mxu0 }
 0x105   :  { %v199_v50 = vmul.f32 %v190_v48, %v190_v48  ;;  %v192_v51 = vadd.f32 %v191_v49, %v149_v46  ;;  %v197_v9 = vmul.f32 0.5, %v190_v48 }
 0x106   :  { %v193_v52 = vpop.f32.mrf.mxu0 }
 0x107   :  { %v201_v53 = vmul.f32 %v199_v50, %v190_v48  ;;  %v200_v54 = vmul.f32 %v192_v51, %v192_v51  ;;  %v198_v14 = vmul.f32 0.5, %v192_v51 }
 0x108   :  { %v194_v55 = vpop.f32.mrf.mxu0 }
 0x109   :  { %v203_v56 = vmul.f32 0.044715, %v201_v53  ;;  %v202_v57 = vmul.f32 %v200_v54, %v192_v51 }
 0x10b   :  { %v205_v58 = vadd.f32 %v203_v56, %v190_v48  ;;  %v204_v59 = vmul.f32 0.044715, %v202_v57 }
 0x10d   :  { %v207_v60 = vmul.f32 0.7978846, %v205_v58  ;;  %v206_v61 = vadd.f32 %v204_v59, %v192_v51 }
 0x10f   :  { %4253 = vtanh.f32 %v207_v60  ;;  %v208_v63 = vmul.f32 0.7978846, %v206_v61 }
 0x111   :  { %4255 = vtanh.f32 %v208_v63 }
 0x11c   :  { %v4254_v8 = vpop.eup %4253 }
 0x11d   :  { %v211_v10 = vadd.f32 1.0, %v4254_v8 }
 0x11e   :  { %v4256_v11 = vpop.eup %4255 }
 0x11f   :  { %v213_v13 = vmul.f32 %v211_v10, %v197_v9  ;;  %v212_v15 = vadd.f32 1.0, %v4256_v11 }
 0x121   :  { %v214_v17 = vmul.f32 %v212_v15, %v198_v14  ;;  %v237_v18 = vmul.f32 %v4574_v12, %v213_v13 }
 0x123   :  { %v238_v19 = vmul.f32 %v4577_v16, %v214_v17 }
 0x125   :  { %v4010_v21 = vpack.c.bf16 %v238_v19, %v237_v18 }
 0x127   :  { %249 = vst.msk [vmem:[#allocation2 + $0x4] sm:$0xff] %vm4583_vm5, %v4010_v21 }
 0x12e   :  { %v340_v22 = vld [vmem:[#allocation2 + $0x4] sm:$0xff] }
 0x12f   :  { %342 = vrot.lane.b32.xlu0 %v340_v22, %s4389_s27  ;;  %324 = vrot.lane.b32.xlu1 %v340_v22, %s4390_s11  ;;  %312 = vst.msk [vmem:[#allocation3 + $0x20] sm:$0xff] %vm4583_vm5, %v340_v22  ;;  %v282_v23 = vld [vmem:[#allocation2 + $0x8] sm:$0xf]  ;;  %v281_v24 = vld [vmem:[#allocation2] sm:$0xff] }
 0x130   :  { %v297_v25 = vld [vmem:[#allocation2 + $0x8] sm:$0xf] }
 0x131   :  { %v251_v26 = vld [vmem:[#allocation2 + $0x8] sm:$0xf] }
 0x132   :  { %v267_v27 = vld [vmem:[#allocation2 + $0x8] sm:$0xf] }
 0x133   :  { %333 = vrot.lane.b32.xlu1 %v340_v22, %s4391_s28  ;;  %315 = vrot.lane.b32.xlu0 %v340_v22, %s4392_s29 }
 0x136   :  { %v353_v8 = vld [vmem:[#allocation3 + $0x20] sm:$0xff] }
 0x137   :  { %287 = vrot.lane.b32.xlu0 %v282_v23, %s4393_s3  ;;  %285 = vrot.lane.b32.xlu1 %v281_v24, %s4393_s3  ;;  %v215_v23 = vld [vmem:[%s5437_s2] sm:$0xf] }
 0x13b   :  { %302 = vrot.lane.b32.xlu0 %v297_v25, %s4394_s0  ;;  %300 = vrot.lane.b32.xlu1 %v281_v24, %s4394_s0 }
 0x13f   :  { %256 = vrot.lane.b32.xlu0 %v251_v26, %s4395_s4  ;;  %254 = vrot.lane.b32.xlu1 %v281_v24, %s4395_s4 }
 0x143   :  { %272 = vrot.lane.b32.xlu0 %v267_v27, %s4396_s30  ;;  %270 = vrot.lane.b32.xlu1 %v281_v24, %s4396_s30 }
 0x147   :  { %360 = vperm.xlu1 %4042, %v216_v28  }
 0x1a1   :  { %v343_v29 = vpop.permute.xlu0 %342  ;;  %v325_v30 = vpop.permute.xlu1 %324 }
 0x1a2   :  { %v344_v31 = vrot.slane %v343_v29, 4  ;;  %v326_v32 = vrot.slane %v325_v30, 4 }
 0x1a4   :  { %v346_v33 = vsel %vm345_vm6, %v343_v29, %v344_v31  ;;  %v328_v34 = vsel %vm327_vm7, %v325_v30, %v326_v32 }
 0x1a5   :  { %348 = vst.msk [vmem:[#allocation3 + $0x40] sm:$0xff] %vm4583_vm5, %v346_v33  ;;  %330 = vst.msk [vmem:[#allocation3 + $0x30] sm:$0xff] %vm4583_vm5, %v328_v34  ;;  %v334_v35 = vpop.permute.xlu1 %333  ;;  %v316_v36 = vpop.permute.xlu0 %315 }
 0x1a6   :  { %v335_v37 = vrot.slane %v334_v35, 4  ;;  %v317_v38 = vrot.slane %v316_v36, 4 }
 0x1a8   :  { %v337_v39 = vsel %vm336_vm8, %v334_v35, %v335_v37  ;;  %v319_v40 = vsel %vm318_vm9, %v316_v36, %v317_v38 }
 0x1a9   :  { %339 = vst.msk [vmem:[#allocation3 + $0x38] sm:$0xff] %vm4583_vm5, %v337_v39  ;;  %321 = vst.msk [vmem:[#allocation3 + $0x28] sm:$0xff] %vm4583_vm5, %v319_v40  ;;  %v288_v41 = vpop.permute.xlu0 %287  ;;  %v286_v42 = vpop.permute.xlu1 %285 }
 0x1aa   :  { %v290_v43 = vrot.slane %v288_v41, 4  ;;  %v289_v44 = vrot.slane %v286_v42, 4 }
 0x1ac   :  { %v291_v45 = vsel %vm247_vm4, %v289_v44, %v290_v43  ;;  %v357_v46 = vld [vmem:[#allocation3 + $0x40] sm:$0xff] }
 0x1ad   :  { %v293_v47 = vsel %vm292_vm10, %v286_v42, %v291_v45  ;;  %v303_v48 = vpop.permute.xlu0 %302  ;;  %v301_v49 = vpop.permute.xlu1 %300  ;;  %v3801_v50 = vcombine.high %v357_v46, %v357_v46  ;;  %v3800_v51 = vcombine.low %v357_v46, %v357_v46 }
 0x1ae   :  { %295 = vst.msk [vmem:[#allocation3 + $0x10] sm:$0xff] %vm4583_vm5, %v293_v47  ;;  %v305_v52 = vrot.slane %v303_v48, 4  ;;  %v304_v53 = vrot.slane %v301_v49, 4 }
 0x1af   :  { %3802 = vmatprep.subr.msk.bf16.mxu1 %vm247_vm4, %v3801_v50  ;;  %v413_v54 = vsel %vm247_vm4, %v3800_v51, 0 }
 0x1b0   :  { %v306_v55 = vsel %vm247_vm4, %v304_v53, %v305_v52  ;;  %425 = vmatpush1.bf16.msra.mxu1 %v413_v54  ;;  %v4045_v56 = vld [vmem:[#allocation3 + $0x34] ss:$8 sps:$4 sm:$0xff]   ;;  %v4047_v63 = vld [vmem:[#allocation3 + $0x30] ss:$8 sps:$4 sm:$0xff]   ;;  %v354_v2 = vld [vmem:[#allocation3 + $0x28] sm:$0xff] }
 0x1b1   :  { %v308_v57 = vsel %vm307_vm11, %v301_v49, %v306_v55  ;;  %v257_v58 = vpop.permute.xlu0 %256  ;;  %v255_v59 = vpop.permute.xlu1 %254  ;;  %426 = vmatprep.subr.bf16.mxu1 %v4045_v56  ;;  %v4048_v3 = vld [vmem:[#allocation3 + $0x24] ss:$8 sps:$4 sm:$0xff]   ;;  %v3796_v14 = vcombine.low %v353_v8, %v354_v2  ;;  %v709_v56 = vld [vmem:[%s5405_s9] sm:$0xff] }
 0x1b2   :  { %310 = vst.msk [vmem:[#allocation3 + $0x18] sm:$0xff] %vm4583_vm5, %v308_v57  ;;  %v259_v60 = vrot.slane %v257_v58, 4  ;;  %v258_v61 = vrot.slane %v255_v59, 4  ;;  %v1483_v58 = vld [vmem:[%s5409_s13] sm:$0xf]  ;;  %s4399_s13 = smov 19  }
 0x1b4   :  { %v261_v6 = vsel %vm247_vm4, %v258_v61, %v259_v60  ;;  %427 = vmatpush1.bf16.msra.mxu1 %v4047_v63 }
 0x1b5   :  { %v263_v7 = vsel %vm262_vm12, %v255_v59, %v261_v6  ;;  %428 = vmatprep.subr.bf16.mxu1 %v4048_v3  ;;  %v273_v9 = vpop.permute.xlu0 %272  ;;  %v271_v10 = vpop.permute.xlu1 %270  ;;  %v710_v59 = vld [vmem:[%s5405_s9 + $0x8] sm:$0xff]  ;;  %s4398_s9 = smov 111  }
 0x1b6   :  { %265 = vst.msk [vmem:[#allocation3] sm:$0xff] %vm4583_vm5, %v263_v7  ;;  %v275_v11 = vrot.slane %v273_v9, 4  ;;  %v274_v13 = vrot.slane %v271_v10, 4 }
 0x1b8   :  { %v276_v15 = vsel %vm247_vm4, %v274_v13, %v275_v11  ;;  %429 = vmatpush1.bf16.msra.mxu1 %v3796_v14 }
 0x1b9   :  { %v278_v17 = vsel %vm277_vm13, %v271_v10, %v276_v15  ;;  %v4050_v18 = vld [vmem:[#allocation3 + $0x14] ss:$8 sps:$4 sm:$0xff]   ;;  %v4052_v19 = vld [vmem:[#allocation3 + $0x10] ss:$8 sps:$4 sm:$0xff]  }
 0x1ba   :  { %280 = vst.msk [vmem:[#allocation3 + $0x8] sm:$0xff] %vm4583_vm5, %v278_v17  ;;  %430 = vmatprep.subr.bf16.mxu1 %v4050_v18 }
 0x1bc   :  { %431 = vmatpush1.bf16.msra.mxu1 %v4052_v19 }
 0x1c1   :  { %v4053_v21 = vld [vmem:[#allocation3 + $0x4] ss:$8 sps:$4 sm:$0xff]   ;;  %v4055_v22 = vld [vmem:[#allocation3] ss:$8 sps:$4 sm:$0xff]  }
 0x1c2   :  { %432 = vmatprep.subr.bf16.mxu1 %v4053_v21  ;;  %v361_v24 = vpop.permute.xlu1 %360 }
 0x1c3   :  { %433 = vmatpush1.bf16.msra.mxu1 %v4055_v22 }
 0x1c6   :  { %3803 = vmatmul.mubr.msk.bf16.vlgmr.msra.gmra.mxu1 %vm5421_vm14, %v215_v23 }
 0x286   :  { %v452_v25 = vpop.f32.mrf.mxu1 }
 0x287   :  { %v453_v26 = vadd.f32 %v452_v25, %v361_v24 }
 0x288   :  { %v454_v27 = vpop.f32.mrf.mxu1 }
 0x289   :  { %v461_v28 = vmul.f32 %v453_v26, %v453_v26  ;;  %v455_v29 = vadd.f32 %v454_v27, %v361_v24  ;;  %v459_v42 = vmul.f32 0.5, %v453_v26 }
 0x28a   :  { %v456_v30 = vpop.f32.mrf.mxu1 }
 0x28b   :  { %v463_v31 = vmul.f32 %v461_v28, %v453_v26  ;;  %v462_v32 = vmul.f32 %v455_v29, %v455_v29  ;;  %v460_v46 = vmul.f32 0.5, %v455_v29 }
 0x28c   :  { %v457_v33 = vpop.f32.mrf.mxu1 }
 0x28d   :  { %v465_v34 = vmul.f32 0.044715, %v463_v31  ;;  %v464_v35 = vmul.f32 %v462_v32, %v455_v29 }
 0x28f   :  { %v467_v36 = vadd.f32 %v465_v34, %v453_v26  ;;  %v466_v37 = vmul.f32 0.044715, %v464_v35 }
 0x291   :  { %v469_v38 = vmul.f32 0.7978846, %v467_v36  ;;  %v468_v39 = vadd.f32 %v466_v37, %v455_v29 }
 0x293   :  { %4257 = vtanh.f32 %v469_v38  ;;  %v470_v40 = vmul.f32 0.7978846, %v468_v39 }
 0x295   :  { %4259 = vtanh.f32 %v470_v40 }
 0x2a0   :  { %v4258_v41 = vpop.eup %4257 }
 0x2a1   :  { %v473_v43 = vadd.f32 1.0, %v4258_v41 }
 0x2a2   :  { %v4260_v44 = vpop.eup %4259 }
 0x2a3   :  { %v475_v45 = vmul.f32 %v473_v43, %v459_v42  ;;  %v474_v47 = vadd.f32 1.0, %v4260_v44 }
 0x2a5   :  { %v476_v48 = vmul.f32 %v474_v47, %v460_v46  ;;  %v479_v49 = vmul.f32 %v475_v45, %v4574_v12 }
 0x2a7   :  { %v480_v50 = vmul.f32 %v476_v48, %v4577_v16 }
 0x2a9   :  { %v4011_v51 = vpack.c.bf16 %v480_v50, %v479_v49 }
 0x2ab   :  { %489 = vst.msk [vmem:[#allocation2 + $0x4] sm:$0xff] %vm4583_vm5, %v4011_v51 }
 0x2b2   :  { %v572_v52 = vld [vmem:[#allocation2 + $0x4] sm:$0xff] }
 0x2b3   :  { %574 = vrot.lane.b32.xlu0 %v572_v52, %s4389_s27  ;;  %558 = vrot.lane.b32.xlu1 %v572_v52, %s4390_s11  ;;  %547 = vst.msk [vmem:[#allocation3 + $0x20] sm:$0xff] %vm4583_vm5, %v572_v52  ;;  %v519_v53 = vld [vmem:[#allocation2 + $0x8] sm:$0xf]  ;;  %v518_v12 = vld [vmem:[#allocation2] sm:$0xff] }
 0x2b4   :  { %v533_v16 = vld [vmem:[#allocation2 + $0x8] sm:$0xf] }
 0x2b5   :  { %v491_v54 = vld [vmem:[#allocation2 + $0x8] sm:$0xf] }
 0x2b6   :  { %v505_v55 = vld [vmem:[#allocation2 + $0x8] sm:$0xf] }
 0x2b7   :  { %566 = vrot.lane.b32.xlu0 %v572_v52, %s4391_s28  ;;  %550 = vrot.lane.b32.xlu1 %v572_v52, %s4392_s29  ;;  %s5438_s28 = sld [smem:[#allocation20_spill]] }
 0x2bb   :  { %524 = vrot.lane.b32.xlu1 %v519_v53, %s4393_s3  ;;  %522 = vrot.lane.b32.xlu0 %v518_v12, %s4393_s3 }
 0x2bd   :  { %v478_v57 = vld [vmem:[%s5438_s28] sm:$0xff] }
 0x2bf   :  { %538 = vrot.lane.b32.xlu1 %v533_v16, %s4394_s0  ;;  %536 = vrot.lane.b32.xlu0 %v518_v12, %s4394_s0 }
 0x2c3   :  { %496 = vrot.lane.b32.xlu1 %v491_v54, %s4395_s4  ;;  %494 = vrot.lane.b32.xlu0 %v518_v12, %s4395_s4 }
 0x2c7   :  { %510 = vrot.lane.b32.xlu1 %v505_v55, %s4396_s30  ;;  %508 = vrot.lane.b32.xlu0 %v518_v12, %s4396_s30  ;;  %s5439_s30 = sld [smem:[#allocation17_spill]] }
 0x2cb   :  { %715 = vperm.xlu1 %4042, %v709_v56   ;;  %591 = vperm.xlu0 %4041, %v478_v57  }
 0x2cd   :  { %v477_v52 = vld [vmem:[%s5439_s30] sm:$0xf]  ;;  %s4400_s30 = smov 17  }
 0x2cf   :  { %1492 = vperm.xlu1 %4042, %v1483_v58   ;;  %720 = vperm.xlu0 %4041, %v710_v59  }
 0x325   :  { %v575_v60 = vpop.permute.xlu0 %574  ;;  %v559_v61 = vpop.permute.xlu1 %558 }
 0x326   :  { %v576_v63 = vrot.slane %v575_v60, 4  ;;  %v560_v2 = vrot.slane %v559_v61, 4 }
 0x328   :  { %v577_v3 = vsel %vm345_vm6, %v575_v60, %v576_v63  ;;  %v561_v6 = vsel %vm327_vm7, %v559_v61, %v560_v2  ;;  %vm2021_vm7 = vcmask 891904  }
 0x329   :  { %579 = vst.msk [vmem:[#allocation3 + $0x40] sm:$0xff] %vm4583_vm5, %v577_v3  ;;  %563 = vst.msk [vmem:[#allocation3 + $0x30] sm:$0xff] %vm4583_vm5, %v561_v6  ;;  %v567_v7 = vpop.permute.xlu0 %566  ;;  %v551_v8 = vpop.permute.xlu1 %550 }
 0x32a   :  { %v568_v9 = vrot.slane %v567_v7, 4  ;;  %v552_v10 = vrot.slane %v551_v8, 4 }
 0x32c   :  { %v569_v11 = vsel %vm336_vm8, %v567_v7, %v568_v9  ;;  %v553_v13 = vsel %vm318_vm9, %v551_v8, %v552_v10  ;;  %vm1964_vm8 = vcmask 908288  }
 0x32d   :  { %571 = vst.msk [vmem:[#allocation3 + $0x38] sm:$0xff] %vm4583_vm5, %v569_v11  ;;  %555 = vst.msk [vmem:[#allocation3 + $0x28] sm:$0xff] %vm4583_vm5, %v553_v13  ;;  %v525_v14 = vpop.permute.xlu1 %524  ;;  %v523_v15 = vpop.permute.xlu0 %522 }
 0x32e   :  { %v527_v17 = vrot.slane %v525_v14, 4  ;;  %v526_v18 = vrot.slane %v523_v15, 4 }
 0x330   :  { %v528_v19 = vsel %vm247_vm4, %v526_v18, %v527_v17  ;;  %v588_v21 = vld [vmem:[#allocation3 + $0x40] sm:$0xff] }
 0x331   :  { %v529_v22 = vsel %vm292_vm10, %v523_v15, %v528_v19  ;;  %v539_v23 = vpop.permute.xlu1 %538  ;;  %v537_v24 = vpop.permute.xlu0 %536  ;;  %v3814_v25 = vcombine.high %v588_v21, %v588_v21  ;;  %v3813_v26 = vcombine.low %v588_v21, %v588_v21  ;;  %vm1806_vm10 = vcmask 154624  }
 0x332   :  { %531 = vst.msk [vmem:[#allocation3 + $0x10] sm:$0xff] %vm4583_vm5, %v529_v22  ;;  %v541_v27 = vrot.slane %v539_v23, 4  ;;  %v540_v28 = vrot.slane %v537_v24, 4  ;;  %v4070_v22 = vld [vmem:[%s5404_s8] sm:$0xff]  }
 0x333   :  { %3815 = vmatprep.subr.msk.bf16.mxu0 %vm247_vm4, %v3814_v25  ;;  %v643_v29 = vsel %vm247_vm4, %v3813_v26, 0  ;;  %v4071_v23 = vld [vmem:[#allocation7 + $0x150] ss:$24 sps:$4 sm:$0xff]   ;;  %v4079_v25 = vld [vmem:[#allocation7 + $0x124] ss:$24 sps:$4 sm:$0xff]  }
 0x334   :  { %v542_v30 = vsel %vm247_vm4, %v540_v28, %v541_v27  ;;  %655 = vmatpush1.bf16.msra.mxu0 %v643_v29  ;;  %v4060_v31 = vld [vmem:[#allocation3 + $0x34] ss:$8 sps:$4 sm:$0xff]   ;;  %v4058_v37 = vld [vmem:[#allocation3 + $0x30] ss:$8 sps:$4 sm:$0xff]   ;;  %v4063_v38 = vld [vmem:[#allocation3 + $0x24] ss:$8 sps:$4 sm:$0xff]  }
 0x335   :  { %v543_v32 = vsel %vm307_vm11, %v537_v24, %v542_v30  ;;  %v497_v33 = vpop.permute.xlu1 %496  ;;  %v495_v34 = vpop.permute.xlu0 %494  ;;  %656 = vmatprep.subr.bf16.mxu0 %v4060_v31  ;;  %v4061_v43 = vld [vmem:[#allocation3 + $0x20] ss:$8 sps:$4 sm:$0xff]   ;;  %v4073_v24 = vld [vmem:[#allocation7 + $0x154] ss:$24 sps:$4 sm:$0xff]  }
 0x336   :  { %545 = vst.msk [vmem:[#allocation3 + $0x18] sm:$0xff] %vm4583_vm5, %v543_v32  ;;  %v499_v35 = vrot.slane %v497_v33, 4  ;;  %v498_v36 = vrot.slane %v495_v34, 4  ;;  %1305 = vmatprep.subr.bf16.mxu1 %v4073_v24  ;;  %v4077_v26 = vld [vmem:[#allocation7 + $0x120] ss:$24 sps:$4 sm:$0xff]  }
 0x337   :  { %1306 = vmatpush1.bf16.msra.mxu1 %v4071_v23  ;;  %v4085_v27 = vld [vmem:[#allocation7 + $0xf4] ss:$24 sps:$4 sm:$0xff]   ;;  %v4083_v28 = vld [vmem:[#allocation7 + $0xf0] ss:$24 sps:$4 sm:$0xff]   ;;  %v4091_v29 = vld [vmem:[#allocation7 + $0xc4] ss:$24 sps:$4 sm:$0xff]  }
 0x338   :  { %v500_v39 = vsel %vm247_vm4, %v498_v36, %v499_v35  ;;  %657 = vmatpush1.bf16.msra.mxu0 %v4058_v37  ;;  %1307 = vmatprep.subr.bf16.mxu1 %v4079_v25  ;;  %v4089_v30 = vld [vmem:[#allocation7 + $0xc0] ss:$24 sps:$4 sm:$0xff]   ;;  %v4097_v31 = vld [vmem:[#allocation7 + $0x94] ss:$24 sps:$4 sm:$0xff]   ;;  %v4095_v32 = vld [vmem:[#allocation7 + $0x90] ss:$24 sps:$4 sm:$0xff]  }
 0x339   :  { %v501_v40 = vsel %vm262_vm12, %v495_v34, %v500_v39  ;;  %658 = vmatprep.subr.bf16.mxu0 %v4063_v38  ;;  %v511_v41 = vpop.permute.xlu1 %510  ;;  %v509_v42 = vpop.permute.xlu0 %508  ;;  %v4103_v33 = vld [vmem:[#allocation7 + $0x64] ss:$24 sps:$4 sm:$0xff]   ;;  %v4101_v34 = vld [vmem:[#allocation7 + $0x60] ss:$24 sps:$4 sm:$0xff]   ;;  %v4109_v35 = vld [vmem:[#allocation7 + $0x34] ss:$24 sps:$4 sm:$0xff]  }
 0x33a   :  { %503 = vst.msk [vmem:[#allocation3] sm:$0xff] %vm4583_vm5, %v501_v40  ;;  %v513_v44 = vrot.slane %v511_v41, 4  ;;  %v512_v45 = vrot.slane %v509_v42, 4  ;;  %v4107_v36 = vld [vmem:[#allocation7 + $0x30] ss:$24 sps:$4 sm:$0xff]   ;;  %v906_v39 = vld [vmem:[#allocation7 + $0x240] sm:$0xff] }
 0x33b   :  { %1308 = vmatpush1.bf16.msra.mxu1 %v4077_v26  ;;  %v4115_v37 = vld [vmem:[#allocation7 + $0x4] ss:$24 sps:$4 sm:$0xff]   ;;  %v4113_v38 = vld [vmem:[#allocation7] ss:$24 sps:$4 sm:$0xff]   ;;  %v3894_v40 = vcombine.high %v906_v39, %v906_v39  ;;  %v3893_v41 = vcombine.low %v906_v39, %v906_v39  ;;  %v907_v26 = vld [vmem:[#allocation7 + $0x248] sm:$0xff]  ;;  %vm1866_vm12 = vcmask 138240  }
 0x33c   :  { %v514_v46 = vsel %vm247_vm4, %v512_v45, %v513_v44  ;;  %659 = vmatpush1.bf16.msra.mxu0 %v4061_v43  ;;  %1309 = vmatprep.subr.bf16.mxu1 %v4085_v27  ;;  %v4125_v43 = vld [vmem:[#allocation7 + $0x214] ss:$24 sps:$4 sm:$0xff]   ;;  %v4123_v44 = vld [vmem:[#allocation7 + $0x210] ss:$24 sps:$4 sm:$0xff]   ;;  %v4131_v45 = vld [vmem:[#allocation7 + $0x1e4] ss:$24 sps:$4 sm:$0xff]  }
 0x33d   :  { %v515_v47 = vsel %vm277_vm13, %v509_v42, %v514_v46  ;;  %v4064_v48 = vld [vmem:[#allocation3 + $0x10] ss:$8 sps:$4 sm:$0xff]   ;;  %v4066_v49 = vld [vmem:[#allocation3 + $0x14] ss:$8 sps:$4 sm:$0xff]   ;;  %v1288_v42 = vsel %vm247_vm4, %v3893_v41, 0  ;;  %vm1994_vm13 = vcmask 900096  }
 0x33e   :  { %517 = vst.msk [vmem:[#allocation3 + $0x8] sm:$0xff] %vm4583_vm5, %v515_v47  ;;  %660 = vmatprep.subr.bf16.mxu0 %v4066_v49  ;;  %v4129_v46 = vld [vmem:[#allocation7 + $0x1e0] ss:$24 sps:$4 sm:$0xff]   ;;  %v4137_v47 = vld [vmem:[#allocation7 + $0x1b4] ss:$24 sps:$4 sm:$0xff]   ;;  %vm1787_vm5 = vcmask 62468  }
 0x33f   :  { %1310 = vmatpush1.bf16.msra.mxu1 %v4083_v28  ;;  %v4112_v23 = vld [vmem:[#allocation7 + $0x3c] ss:$24 sps:$4 sm:$0xff]   ;;  %v4110_v24 = vld [vmem:[#allocation7 + $0x38] ss:$24 sps:$4 sm:$0xff]   ;;  %v4118_v25 = vld [vmem:[#allocation7 + $0xc] ss:$24 sps:$4 sm:$0xff]   ;;  %v3896_v28 = vcombine.high %v907_v26, %v907_v26 }
 0x340   :  { %661 = vmatpush1.bf16.msra.mxu0 %v4064_v48  ;;  %1311 = vmatprep.subr.bf16.mxu1 %v4091_v29  ;;  %v4135_v48 = vld [vmem:[#allocation7 + $0x1b0] ss:$24 sps:$4 sm:$0xff]   ;;  %v3895_v29 = vcombine.low %v907_v26, %v907_v26  ;;  %v4146_v39 = vld [vmem:[#allocation7 + $0x18c] ss:$24 sps:$4 sm:$0xff]   ;;  %vm4864_vm6 = vmor %vm1787_vm5, %vm1786_vm3  ;;  %vm2127_vm5 = vcmask 293888  }
 0x341   :  { %v4116_v27 = vld [vmem:[#allocation7 + $0x8] ss:$24 sps:$4 sm:$0xff]   ;;  %v4149_v41 = vld [vmem:[#allocation7 + $0x164] ss:$24 sps:$4 sm:$0xff]  }
 0x343   :  { %1312 = vmatpush1.bf16.msra.mxu1 %v4089_v30  ;;  %v1294_v30 = vsel %vm247_vm4, %v3895_v29, 0 }
 0x344   :  { %1313 = vmatprep.subr.bf16.mxu1 %v4097_v31  ;;  %v4128_v31 = vld [vmem:[#allocation7 + $0x21c] ss:$24 sps:$4 sm:$0xff]  }
 0x345   :  { %v4067_v50 = vld [vmem:[#allocation3] ss:$8 sps:$4 sm:$0xff]   ;;  %v4069_v51 = vld [vmem:[#allocation3 + $0x4] ss:$8 sps:$4 sm:$0xff]  }
 0x346   :  { %662 = vmatprep.subr.bf16.mxu0 %v4069_v51  ;;  %v592_v53 = vpop.permute.xlu0 %591  ;;  %v716_v51 = vpop.permute.xlu1 %715 }
 0x347   :  { %663 = vmatpush1.bf16.msra.mxu0 %v4067_v50  ;;  %1314 = vmatpush1.bf16.msra.mxu1 %v4095_v32  ;;  %v4126_v32 = vld [vmem:[#allocation7 + $0x218] ss:$24 sps:$4 sm:$0xff]  }
 0x348   :  { %1315 = vmatprep.subr.bf16.mxu1 %v4103_v33  ;;  %v4134_v33 = vld [vmem:[#allocation7 + $0x1ec] ss:$24 sps:$4 sm:$0xff]  }
 0x34a   :  { %3816 = vmatmul.mubr.msk.bf16.vlgmr.msra.gmra.mxu0 %vm5421_vm14, %v477_v52  ;;  %v721_v52 = vpop.permute.xlu0 %720 }
 0x34b   :  { %770 = vmatprep.mubr.bf16.mxu0 %v4388_v1  ;;  %1316 = vmatpush1.bf16.msra.mxu1 %v4101_v34  ;;  %v4132_v34 = vld [vmem:[#allocation7 + $0x1e8] ss:$24 sps:$4 sm:$0xff]  }
 0x34c   :  { %1317 = vmatprep.subr.bf16.mxu1 %v4109_v35  ;;  %v4140_v35 = vld [vmem:[#allocation7 + $0x1bc] ss:$24 sps:$4 sm:$0xff]  }
 0x34f   :  { %1318 = vmatpush1.bf16.msra.mxu1 %v4107_v36  ;;  %v4138_v36 = vld [vmem:[#allocation7 + $0x1b8] ss:$24 sps:$4 sm:$0xff]  }
 0x350   :  { %1319 = vmatprep.subr.bf16.mxu1 %v4115_v37  ;;  %v4143_v37 = vld [vmem:[#allocation7 + $0x184] ss:$24 sps:$4 sm:$0xff]  }
 0x353   :  { %1320 = vmatpush1.bf16.msra.mxu1 %v4113_v38  ;;  %v4141_v38 = vld [vmem:[#allocation7 + $0x180] ss:$24 sps:$4 sm:$0xff]  }
 0x354   :  { %3899 = vmatprep.subr.msk.bf16.mxu1 %vm247_vm4, %v3894_v40  ;;  %v4144_v40 = vld [vmem:[#allocation7 + $0x188] ss:$24 sps:$4 sm:$0xff]  }
 0x357   :  { %1328 = vmatpush2.bf16.msra.mxu1 %v1288_v42 }
 0x358   :  { %1329 = vmatprep.subr.bf16.mxu1 %v4125_v43 }
 0x35b   :  { %1330 = vmatpush2.bf16.msra.mxu1 %v4123_v44 }
 0x35c   :  { %1331 = vmatprep.subr.bf16.mxu1 %v4131_v45  ;;  %v4147_v45 = vld [vmem:[#allocation7 + $0x160] ss:$24 sps:$4 sm:$0xff]  }
 0x35f   :  { %1332 = vmatpush2.bf16.msra.mxu1 %v4129_v46 }
 0x360   :  { %1333 = vmatprep.subr.bf16.mxu1 %v4137_v47 }
 0x363   :  { %1334 = vmatpush2.bf16.msra.mxu1 %v4135_v48  ;;  %v4152_v48 = vld [vmem:[#allocation7 + $0x134] ss:$24 sps:$4 sm:$0xff]  }
 0x364   :  { %1335 = vmatprep.subr.bf16.mxu1 %v4143_v37 }
 0x367   :  { %1336 = vmatpush2.bf16.msra.mxu1 %v4141_v38 }
 0x368   :  { %1387 = vmatprep.subr.bf16.mxu1 %v4149_v41 }
 0x40a   :  { %v682_v12 = vpop.f32.mrf.mxu0 }
 0x40b   :  { %v683_v16 = vadd.f32 %v682_v12, %v592_v53 }
 0x40c   :  { %v684_v54 = vpop.f32.mrf.mxu0 }
 0x40d   :  { %v691_v20 = vmul.f32 %v683_v16, %v683_v16  ;;  %v685_v55 = vadd.f32 %v684_v54, %v592_v53  ;;  %v689_v9 = vmul.f32 0.5, %v683_v16 }
 0x40e   :  { %v686_v56 = vpop.f32.mrf.mxu0 }
 0x40f   :  { %v693_v57 = vmul.f32 %v691_v20, %v683_v16  ;;  %v692_v58 = vmul.f32 %v685_v55, %v685_v55  ;;  %v690_v13 = vmul.f32 0.5, %v685_v55  ;;  %v4337_v56 = vld [vmem:[%s5430_s7 + $0x10] sm:$0xff] }
 0x410   :  { %v687_v59 = vpop.f32.mrf.mxu0 }
 0x411   :  { %v695_v60 = vmul.f32 0.044715, %v693_v57  ;;  %v694_v61 = vmul.f32 %v692_v58, %v685_v55  ;;  %v4338_v58 = vld [vmem:[%s5430_s7 + $0x8] sm:$0xff] }
 0x413   :  { %v697_v63 = vadd.f32 %v695_v60, %v683_v16  ;;  %v696_v2 = vmul.f32 0.044715, %v694_v61  ;;  %v4339_v60 = vld [vmem:[%s5430_s7 + $0x18] sm:$0xff] }
 0x415   :  { %v699_v3 = vmul.f32 0.7978846, %v697_v63  ;;  %v698_v6 = vadd.f32 %v696_v2, %v685_v55  ;;  %v4340_v63 = vld [vmem:[%s5430_s7] sm:$0xff] }
 0x417   :  { %4261 = vtanh.f32 %v699_v3  ;;  %v700_v7 = vmul.f32 0.7978846, %v698_v6  ;;  %v4076_v6 = vld [vmem:[#allocation7 + $0x15c] ss:$24 sps:$4 sm:$0xff]  }
 0x419   :  { %4263 = vtanh.f32 %v700_v7 }
 0x424   :  { %v4262_v8 = vpop.eup %4261 }
 0x425   :  { %v703_v10 = vadd.f32 1.0, %v4262_v8  ;;  %v785_v8 = vld [vmem:[%s5406_s10] sm:$0xf] }
 0x426   :  { %v4264_v11 = vpop.eup %4263 }
 0x427   :  { %v704_v14 = vadd.f32 1.0, %v4264_v11  ;;  %v705_v15 = vmul.f32 %v703_v10, %v689_v9  ;;  %v4074_v9 = vld [vmem:[#allocation7 + $0x158] ss:$24 sps:$4 sm:$0xff]   ;;  %v4082_v10 = vld [vmem:[#allocation7 + $0x12c] ss:$24 sps:$4 sm:$0xff]  }
 0x428   :  { %v4080_v11 = vld [vmem:[#allocation7 + $0x128] ss:$24 sps:$4 sm:$0xff]  }
 0x429   :  { %v706_v17 = vmul.f32 %v704_v14, %v690_v13  ;;  %v711_v18 = vpack.c.bf16 %v705_v15, %v705_v15  ;;  %v4088_v13 = vld [vmem:[#allocation7 + $0xfc] ss:$24 sps:$4 sm:$0xff]   ;;  %v4086_v14 = vld [vmem:[#allocation7 + $0xf8] ss:$24 sps:$4 sm:$0xff]   ;;  %v4094_v15 = vld [vmem:[#allocation7 + $0xcc] ss:$24 sps:$4 sm:$0xff]  }
 0x42b   :  { %v712_v19 = vpack.c.bf16 %v706_v17, %v706_v17  ;;  %v733_v21 = vsel %vm247_vm4, %v711_v18, 0  ;;  %v4092_v17 = vld [vmem:[#allocation7 + $0xc8] ss:$24 sps:$4 sm:$0xff]   ;;  %v4100_v18 = vld [vmem:[#allocation7 + $0x9c] ss:$24 sps:$4 sm:$0xff]  }
 0x42d   :  { %3818 = vmatprep.subr.msk.bf16.mxu0 %vm247_vm4, %v712_v19  ;;  %v4098_v19 = vld [vmem:[#allocation7 + $0x98] ss:$24 sps:$4 sm:$0xff]  }
 0x42e   :  { %753 = vmatpush1.bf16.msra.mxu0 %v733_v21  ;;  %v4106_v21 = vld [vmem:[#allocation7 + $0x6c] ss:$24 sps:$4 sm:$0xff]  }
 0x431   :  { %3819 = vmatmul.mubr.msk.bf16.vlgmr.msra.gmra.mxu0 %vm728_vm15, %v4070_v22  ;;  %v4104_v22 = vld [vmem:[#allocation7 + $0x68] ss:$24 sps:$4 sm:$0xff]  }
 0x432   :  { %823 = vmatprep.mubr.bf16.mxu0 %v4388_v1 }
 0x4f1   :  { %v772_v49 = vpop.f32.mrf.mxu0 }
 0x4f2   :  { %v773_v54 = vadd.f32 %v772_v49, %v716_v51 }
 0x4f3   :  { %v774_v50 = vpop.f32.mrf.mxu0 }
 0x4f4   :  { %v775_v12 = vadd.f32 %v774_v50, %v716_v51  ;;  %v781_v2 = vadd.f32 %v4340_v63, %v773_v54  ;;  %v4150_v50 = vld [vmem:[#allocation7 + $0x130] ss:$24 sps:$4 sm:$0xff]   ;;  %v4155_v51 = vld [vmem:[#allocation7 + $0x104] ss:$24 sps:$4 sm:$0xff]   ;;  %v4159_v54 = vld [vmem:[#allocation7 + $0xa0] ss:$24 sps:$4 sm:$0xff]  }
 0x4f5   :  { %v776_v53 = vpop.f32.mrf.mxu0 }
 0x4f6   :  { %v777_v16 = vadd.f32 %v776_v53, %v721_v52  ;;  %v782_v59 = vadd.f32 %v4338_v58, %v775_v12  ;;  %v4158_v53 = vld [vmem:[#allocation7 + $0xd4] ss:$24 sps:$4 sm:$0xff]   ;;  %v4156_v12 = vld [vmem:[#allocation7 + $0xd0] ss:$24 sps:$4 sm:$0xff]  }
 0x4f7   :  { %v778_v20 = vpop.f32.mrf.mxu0  ;;  %v4170_v58 = vld [vmem:[#allocation7 + $0x14] ss:$24 sps:$4 sm:$0xff]  }
 0x4f8   :  { %v779_v55 = vadd.f32 %v778_v20, %v721_v52  ;;  %v783_v57 = vadd.f32 %v4337_v56, %v777_v16  ;;  %v4153_v52 = vld [vmem:[#allocation7 + $0x100] ss:$24 sps:$4 sm:$0xff]   ;;  %v4161_v16 = vld [vmem:[#allocation7 + $0xa4] ss:$24 sps:$4 sm:$0xff]   ;;  %v4164_v20 = vld [vmem:[#allocation7 + $0x74] ss:$24 sps:$4 sm:$0xff]  }
 0x4f9   :  { %v4167_v56 = vld [vmem:[#allocation7 + $0x44] ss:$24 sps:$4 sm:$0xff]  }
 0x4fa   :  { %v784_v61 = vadd.f32 %v4339_v60, %v779_v55  ;;  %v786_v7 = vpack.c.bf16 %v783_v57, %v781_v2  ;;  %v4162_v55 = vld [vmem:[#allocation7 + $0x70] ss:$24 sps:$4 sm:$0xff]   ;;  %v4165_v57 = vld [vmem:[#allocation7 + $0x40] ss:$24 sps:$4 sm:$0xff]  }
 0x4fb   :  { %v4168_v60 = vld [vmem:[#allocation7 + $0x10] ss:$24 sps:$4 sm:$0xff]  }
 0x4fc   :  { %v787_v3 = vpack.c.bf16 %v784_v61, %v782_v59  ;;  %v908_v59 = vld [vmem:[#allocation7 + $0x250] sm:$0xff] }
 0x4fd   :  { %v3898_v61 = vcombine.high %v908_v59, %v908_v59  ;;  %v3897_v63 = vcombine.low %v908_v59, %v908_v59 }
 0x4fe   :  { %805 = vmatprep.subr.bf16.mxu0 %v787_v3  ;;  %v4175_v3 = vld [vmem:[#allocation7 + $0x224] ss:$24 sps:$4 sm:$0xff]  }
 0x4ff   :  { %806 = vmatpush1.bf16.msra.mxu0 %v786_v7  ;;  %v1300_v2 = vsel %vm247_vm4, %v3897_v63, 0  ;;  %v4178_v7 = vld [vmem:[#allocation7 + $0x1f4] ss:$24 sps:$4 sm:$0xff]  }
 0x500   :  { %1346 = vmatprep.subr.bf16.mxu0 %v4076_v6  ;;  %v4173_v6 = vld [vmem:[#allocation7 + $0x220] ss:$24 sps:$4 sm:$0xff]   ;;  %v1482_v63 = vld [vmem:[%s5408_s12] sm:$0x3] }
 0x502   :  { %3820 = vmatmul.mubr.msk.bf16.vlgmr.msra.gmra.mxu0 %vm151_vm0, %v785_v8  ;;  %v4176_v8 = vld [vmem:[#allocation7 + $0x1f0] ss:$24 sps:$4 sm:$0xff]   ;;  %vm98_vm0 = vcmask 1043520  }
 0x503   :  { %1347 = vmatpush1.bf16.msra.mxu0 %v4074_v9  ;;  %v4181_v9 = vld [vmem:[#allocation7 + $0x1c4] ss:$24 sps:$4 sm:$0xff]   ;;  %vm100_vm2 = vmor %vm99_vm1, %vm98_vm0  ;;  %vm1846_vm0 = vcmask 1043458  }
 0x504   :  { %1348 = vmatprep.subr.bf16.mxu0 %v4082_v10  ;;  %v4179_v10 = vld [vmem:[#allocation7 + $0x1c0] ss:$24 sps:$4 sm:$0xff]   ;;  %101 = vst.msk [vmem:[#allocation4 + $0x18] sm:$0xff] %vm100_vm2, %v4388_v1  ;;  %vm1847_vm2 = vcmask 64518  }
 0x507   :  { %1349 = vmatpush1.bf16.msra.mxu0 %v4080_v11  ;;  %v4184_v11 = vld [vmem:[#allocation7 + $0x194] ss:$24 sps:$4 sm:$0xff]  }
 0x508   :  { %1350 = vmatprep.subr.bf16.mxu0 %v4088_v13  ;;  %v4182_v13 = vld [vmem:[#allocation7 + $0x190] ss:$24 sps:$4 sm:$0xff]  }
 0x50b   :  { %1351 = vmatpush1.bf16.msra.mxu0 %v4086_v14 }
 0x50c   :  { %1352 = vmatprep.subr.bf16.mxu0 %v4094_v15 }
 0x50f   :  { %1353 = vmatpush1.bf16.msra.mxu0 %v4092_v17 }
 0x510   :  { %1354 = vmatprep.subr.bf16.mxu0 %v4100_v18 }
 0x513   :  { %1355 = vmatpush1.bf16.msra.mxu0 %v4098_v19 }
 0x514   :  { %1356 = vmatprep.subr.bf16.mxu0 %v4106_v21 }
 0x517   :  { %1357 = vmatpush1.bf16.msra.mxu0 %v4104_v22 }
 0x518   :  { %1358 = vmatprep.subr.bf16.mxu0 %v4112_v23 }
 0x51b   :  { %1359 = vmatpush1.bf16.msra.mxu0 %v4110_v24 }
 0x51c   :  { %1360 = vmatprep.subr.bf16.mxu0 %v4118_v25 }
 0x51f   :  { %1361 = vmatpush1.bf16.msra.mxu0 %v4116_v27 }
 0x520   :  { %3901 = vmatprep.subr.msk.bf16.mxu0 %vm247_vm4, %v3896_v28 }
 0x523   :  { %1369 = vmatpush2.bf16.msra.mxu0 %v1294_v30 }
 0x524   :  { %1370 = vmatprep.subr.bf16.mxu0 %v4128_v31 }
 0x527   :  { %1371 = vmatpush2.bf16.msra.mxu0 %v4126_v32 }
 0x528   :  { %1372 = vmatprep.subr.bf16.mxu0 %v4134_v33 }
 0x52b   :  { %1373 = vmatpush2.bf16.msra.mxu0 %v4132_v34 }
 0x52c   :  { %1374 = vmatprep.subr.bf16.mxu0 %v4140_v35 }
 0x52f   :  { %1375 = vmatpush2.bf16.msra.mxu0 %v4138_v36 }
 0x530   :  { %1376 = vmatprep.subr.bf16.mxu0 %v4146_v39 }
 0x533   :  { %1377 = vmatpush2.bf16.msra.mxu0 %v4144_v40 }
 0x5c2   :  { %v825_v42 = vpop.f32.mrf.mxu0 }
 0x5c3   :  { %v832_v46 = vpack.c.bf16 %v825_v42, %v825_v42 }
 0x5c4   :  { %v827_v43 = vpop.f32.mrf.mxu0 }
 0x5c5   :  { %v833_v44 = vpack.c.bf16 %v827_v43, %v827_v43 }
 0x5c6   :  { %v829_v47 = vpop.f32.mrf.mxu0 }
 0x5c7   :  { %3900 = vmatprep.mubr.msk.bf16.mxu1 %vm5421_vm14, %v833_v44  ;;  %3902 = vmatprep.mubr.msk.bf16.mxu0 %vm5421_vm14, %v833_v44 }
 0x5c8   :  { %v830_v49 = vpop.f32.mrf.mxu0  ;;  %1338 = vmatmul.mubr.bf16.vlgmr.msra.gmra.mxu1 %v832_v46  ;;  %1379 = vmatmul.mubr.bf16.vlgmr.msra.gmra.mxu0 %v832_v46 }
 0x5c9   :  { %1388 = vmatpush1.bf16.msra.mxu1 %v4147_v45  ;;  %3904 = vmatprep.mubr.msk.bf16.mxu1 %vm5421_vm14, %v833_v44  ;;  %vm4944_vm14 = vmor %vm1847_vm2, %vm1846_vm0 }
 0x5ca   :  { %1389 = vmatprep.subr.bf16.mxu1 %v4152_v48  ;;  %1548 = vmatprep.mubr.bf16.mxu0 %v4388_v1 }
 0x5cd   :  { %1390 = vmatpush1.bf16.msra.mxu1 %v4150_v50 }
 0x5ce   :  { %1391 = vmatprep.subr.bf16.mxu1 %v4155_v51 }
 0x5d1   :  { %1392 = vmatpush1.bf16.msra.mxu1 %v4153_v52 }
 0x5d2   :  { %1393 = vmatprep.subr.bf16.mxu1 %v4158_v53 }
 0x5d5   :  { %1394 = vmatpush1.bf16.msra.mxu1 %v4156_v12 }
 0x5d6   :  { %1395 = vmatprep.subr.bf16.mxu1 %v4161_v16 }
 0x5d9   :  { %1396 = vmatpush1.bf16.msra.mxu1 %v4159_v54 }
 0x5da   :  { %1397 = vmatprep.subr.bf16.mxu1 %v4164_v20 }
 0x5dd   :  { %1398 = vmatpush1.bf16.msra.mxu1 %v4162_v55 }
 0x5de   :  { %1399 = vmatprep.subr.bf16.mxu1 %v4167_v56 }
 0x5e1   :  { %1400 = vmatpush1.bf16.msra.mxu1 %v4165_v57 }
 0x5e2   :  { %1401 = vmatprep.subr.bf16.mxu1 %v4170_v58 }
 0x5e5   :  { %1402 = vmatpush1.bf16.msra.mxu1 %v4168_v60 }
 0x5e6   :  { %3903 = vmatprep.subr.msk.bf16.mxu1 %vm247_vm4, %v3898_v61 }
 0x5e9   :  { %1410 = vmatpush2.bf16.msra.mxu1 %v1300_v2 }
 0x5ea   :  { %1411 = vmatprep.subr.bf16.mxu1 %v4175_v3 }
 0x5ed   :  { %1412 = vmatpush2.bf16.msra.mxu1 %v4173_v6 }
 0x5ee   :  { %1413 = vmatprep.subr.bf16.mxu1 %v4178_v7 }
 0x5f1   :  { %1414 = vmatpush2.bf16.msra.mxu1 %v4176_v8 }
 0x5f2   :  { %1415 = vmatprep.subr.bf16.mxu1 %v4181_v9 }
 0x5f5   :  { %1416 = vmatpush2.bf16.msra.mxu1 %v4179_v10 }
 0x5f6   :  { %1417 = vmatprep.subr.bf16.mxu1 %v4184_v11 }
 0x5f9   :  { %1418 = vmatpush2.bf16.msra.mxu1 %v4182_v13 }
 0x5fc   :  { %1420 = vmatmul.mubr.bf16.vlgmr.msra.gmra.mxu1 %v832_v46 }
 0x5fd   :  { %2742 = vmatprep.mubr.bf16.mxu1 %v4388_v1 }
 0x688   :  { %v4739_v14 = vpop.f32.mrf.mxu1  ;;  %v4741_v15 = vpop.f32.mrf.mxu0 }
 0x689   :  { %v1434_v17 = vmul.f32 %v4739_v14, %v4739_v14  ;;  %v1436_v18 = vmul.f32 %v4741_v15, %v4741_v15  ;;  %v1428_v46 = vmul.f32 0.5, %v4739_v14  ;;  %v1430_v12 = vmul.f32 0.5, %v4741_v15 }
 0x68a   :  { %v4747_v19 = vpop.f32.mrf.mxu1  ;;  %v4749_v21 = vpop.f32.mrf.mxu0 }
 0x68b   :  { %v1440_v22 = vmul.f32 %v1434_v17, %v4739_v14  ;;  %v1442_v23 = vmul.f32 %v1436_v18, %v4741_v15  ;;  %v1435_v24 = vmul.f32 %v4747_v19, %v4747_v19  ;;  %v1437_v25 = vmul.f32 %v4749_v21, %v4749_v21 }
 0x68c   :  { %v1343_v26 = vpop.f32.mrf.mxu1  ;;  %v1384_v27 = vpop.f32.mrf.mxu0  ;;  %v1429_v51 = vmul.f32 0.5, %v4747_v19  ;;  %v1431_v16 = vmul.f32 0.5, %v4749_v21 }
 0x68d   :  { %v1446_v28 = vmul.f32 0.044715, %v1440_v22  ;;  %v1448_v29 = vmul.f32 0.044715, %v1442_v23  ;;  %v1441_v30 = vmul.f32 %v1435_v24, %v4747_v19  ;;  %v1443_v31 = vmul.f32 %v1437_v25, %v4749_v21 }
 0x68e   :  { %v1344_v32 = vpop.f32.mrf.mxu1  ;;  %v1385_v33 = vpop.f32.mrf.mxu0 }
 0x68f   :  { %v1452_v34 = vadd.f32 %v1446_v28, %v4739_v14  ;;  %v1454_v35 = vadd.f32 %v1448_v29, %v4741_v15  ;;  %v1447_v36 = vmul.f32 0.044715, %v1441_v30  ;;  %v1449_v37 = vmul.f32 0.044715, %v1443_v31 }
 0x691   :  { %v1458_v38 = vmul.f32 0.7978846, %v1452_v34  ;;  %v1460_v39 = vmul.f32 0.7978846, %v1454_v35  ;;  %v1453_v40 = vadd.f32 %v1447_v36, %v4747_v19  ;;  %v1455_v41 = vadd.f32 %v1449_v37, %v4749_v21  ;;  %v4798_v37 = vpop.permute.xlu1 %1492 }
 0x693   :  { %4265 = vtanh.f32 %v1458_v38  ;;  %v1459_v42 = vmul.f32 0.7978846, %v1453_v40  ;;  %v1461_v43 = vmul.f32 0.7978846, %v1455_v41 }
 0x694   :  { %4267 = vtanh.f32 %v1460_v39 }
 0x695   :  { %4269 = vtanh.f32 %v1459_v42 }
 0x696   :  { %4271 = vtanh.f32 %v1461_v43 }
 0x6a0   :  { %v4266_v44 = vpop.eup %4265 }
 0x6a1   :  { %v4268_v45 = vpop.eup %4267  ;;  %v1470_v47 = vadd.f32 1.0, %v4266_v44 }
 0x6a2   :  { %v4270_v48 = vpop.eup %4269  ;;  %v1472_v49 = vadd.f32 1.0, %v4268_v45 }
 0x6a3   :  { %v4272_v50 = vpop.eup %4271  ;;  %v1471_v52 = vadd.f32 1.0, %v4270_v48  ;;  %v1476_v53 = vmul.f32 %v1470_v47, %v1428_v46 }
 0x6a4   :  { %v1473_v54 = vadd.f32 1.0, %v4272_v50  ;;  %v1478_v56 = vmul.f32 %v1472_v49, %v1430_v12 }
 0x6a5   :  { %v1477_v20 = vmul.f32 %v1471_v52, %v1429_v51  ;;  %v1484_v55 = vpack.c.bf16 %v1476_v53, %v1476_v53 }
 0x6a6   :  { %v1479_v57 = vmul.f32 %v1473_v54, %v1431_v16  ;;  %v1486_v61 = vpack.c.bf16 %v1478_v56, %v1478_v56 }
 0x6a7   :  { %v1485_v58 = vpack.c.bf16 %v1477_v20, %v1477_v20  ;;  %v1499_v59 = vsel %vm247_vm4, %v1484_v55, 0 }
 0x6a8   :  { %v1487_v60 = vpack.c.bf16 %v1479_v57, %v1479_v57  ;;  %v1505_v2 = vsel %vm247_vm4, %v1486_v61, 0 }
 0x6a9   :  { %3905 = vmatprep.subr.msk.bf16.mxu0 %vm247_vm4, %v1485_v58 }
 0x6aa   :  { %1531 = vmatpush1.bf16.msra.mxu0 %v1499_v59 }
 0x6ab   :  { %3907 = vmatprep.subr.msk.bf16.mxu0 %vm247_vm4, %v1487_v60 }
 0x6ad   :  { %3906 = vmatmul.mubr.msk.bf16.vlgmr.msra.gmra.mxu0 %vm728_vm15, %v1482_v63 }
 0x6ae   :  { %1572 = vmatpush1.bf16.msra.mxu0 %v1505_v2  ;;  %1589 = vmatprep.mubr.bf16.mxu0 %v4388_v1 }
 0x6b5   :  { %3908 = vmatmul.mubr.msk.bf16.vlgmr.msra.gmra.mxu0 %vm728_vm15, %v1482_v63 }
 0x6b6   :  { %1630 = vmatprep.mubr.bf16.mxu0 %v4388_v1 }
 0x6bc   :  { %v4778_v3 = vpop.f32.mrf.mxu1 }
 0x6bd   :  { %v1438_v6 = vmul.f32 %v4778_v3, %v4778_v3  ;;  %v1432_v27 = vmul.f32 0.5, %v4778_v3 }
 0x6be   :  { %v4782_v7 = vpop.f32.mrf.mxu1 }
 0x6bf   :  { %v1444_v8 = vmul.f32 %v1438_v6, %v4778_v3  ;;  %v1439_v9 = vmul.f32 %v4782_v7, %v4782_v7  ;;  %v1433_v30 = vmul.f32 0.5, %v4782_v7 }
 0x6c0   :  { %v1425_v10 = vpop.f32.mrf.mxu1 }
 0x6c1   :  { %v1450_v11 = vmul.f32 0.044715, %v1444_v8  ;;  %v1445_v13 = vmul.f32 %v1439_v9, %v4782_v7 }
 0x6c2   :  { %v1426_v17 = vpop.f32.mrf.mxu1 }
 0x6c3   :  { %v1456_v18 = vadd.f32 %v1450_v11, %v4778_v3  ;;  %v1451_v22 = vmul.f32 0.044715, %v1445_v13 }
 0x6c5   :  { %v1462_v23 = vmul.f32 0.7978846, %v1456_v18  ;;  %v1457_v24 = vadd.f32 %v1451_v22, %v4782_v7 }
 0x6c7   :  { %4273 = vtanh.f32 %v1462_v23  ;;  %v1463_v25 = vmul.f32 0.7978846, %v1457_v24 }
 0x6c9   :  { %4275 = vtanh.f32 %v1463_v25 }
 0x6d4   :  { %v4274_v26 = vpop.eup %4273 }
 0x6d5   :  { %v1474_v28 = vadd.f32 1.0, %v4274_v26 }
 0x6d6   :  { %v4276_v29 = vpop.eup %4275 }
 0x6d7   :  { %v1475_v31 = vadd.f32 1.0, %v4276_v29  ;;  %v1480_v32 = vmul.f32 %v1474_v28, %v1432_v27 }
 0x6d9   :  { %v1481_v33 = vmul.f32 %v1475_v31, %v1433_v30  ;;  %v1488_v34 = vpack.c.bf16 %v1480_v32, %v1480_v32  ;;  %v1710_v30 = vsub.s32 4, %v4560_v0  ;;  %v1714_v31 = vsub.s32 6, %v4560_v0 }
 0x6db   :  { %v1489_v35 = vpack.c.bf16 %v1481_v33, %v1481_v33  ;;  %v1511_v36 = vsel %vm247_vm4, %v1488_v34, 0 }
 0x6dd   :  { %3909 = vmatprep.subr.msk.bf16.mxu0 %vm247_vm4, %v1489_v35 }
 0x6de   :  { %1613 = vmatpush1.bf16.msra.mxu0 %v1511_v36 }
 0x6e1   :  { %3910 = vmatmul.mubr.msk.bf16.vlgmr.msra.gmra.mxu0 %vm728_vm15, %v1482_v63  ;;  %v4807_v63 = vld [vmem:[%s5412_s16] sm:$0x3f]  ;;  %vm1836_vm15 = vcmask 146432  }
 0x6e2   :  { %2181 = vmatprep.mubr.bf16.mxu0 %v4388_v1  ;;  %v1696_v9 = vunpack.c.l.bf16 %v4807_v63 }
 0x6e4   :  { %v1703_v13 = vrot.slane %v1696_v9, %v4566_v4  ;;  %v1707_v17 = vrot.slane %v1696_v9, %v4569_v5  ;;  %v1711_v35 = vrot.slane %v1696_v9, %v1710_v30 }
 0x6e6   :  { %v4813_v25 = vrot.slane %v1703_v13, %v4566_v4  ;;  %v4816_v26 = vrot.slane %v1707_v17, %v4566_v4 }
 0x76d   :  { %v1550_v38 = vpop.f32.mrf.mxu0 }
 0x76e   :  { %v1551_v39 = vadd.f32 %v1550_v38, %v4798_v37  ;;  %v1715_v38 = vrot.slane %v1696_v9, %v1714_v31 }
 0x76f   :  { %v1552_v40 = vpop.f32.mrf.mxu0 }
 0x770   :  { %v1646_v41 = vmul.f32 %v1551_v39, %v1551_v39  ;;  %v1553_v42 = vadd.f32 %v1552_v40, %v4798_v37  ;;  %v1640_v22 = vmul.f32 0.5, %v1551_v39 }
 0x771   :  { %v1554_v43 = vpop.f32.mrf.mxu0 }
 0x772   :  { %v1652_v44 = vmul.f32 %v1646_v41, %v1551_v39  ;;  %v1647_v45 = vmul.f32 %v1553_v42, %v1553_v42  ;;  %v1641_v28 = vmul.f32 0.5, %v1553_v42  ;;  %v4827_v43 = vrot.slane %v1711_v35, %v4566_v4 }
 0x773   :  { %v1555_v46 = vpop.f32.mrf.mxu0 }
 0x774   :  { %v1658_v47 = vmul.f32 0.044715, %v1652_v44  ;;  %v1653_v48 = vmul.f32 %v1647_v45, %v1553_v42 }
 0x775   :  { %v1591_v49 = vpop.f32.mrf.mxu0 }
 0x776   :  { %v1664_v50 = vadd.f32 %v1658_v47, %v1551_v39  ;;  %v1659_v51 = vmul.f32 0.044715, %v1653_v48  ;;  %v1592_v52 = vadd.f32 %v1591_v49, %v4798_v37  ;;  %v4830_v47 = vrot.slane %v1715_v38, %v4566_v4 }
 0x777   :  { %v1593_v53 = vpop.f32.mrf.mxu0 }
 0x778   :  { %v1670_v12 = vmul.f32 0.7978846, %v1664_v50  ;;  %v1665_v16 = vadd.f32 %v1659_v51, %v1553_v42  ;;  %v1648_v54 = vmul.f32 %v1592_v52, %v1592_v52  ;;  %v1594_v20 = vadd.f32 %v1593_v53, %v4798_v37 }
 0x779   :  { %v1595_v55 = vpop.f32.mrf.mxu0  ;;  %v1642_v41 = vmul.f32 0.5, %v1592_v52 }
 0x77a   :  { %4277 = vtanh.f32 %v1670_v12  ;;  %v1671_v56 = vmul.f32 0.7978846, %v1665_v16  ;;  %v1654_v57 = vmul.f32 %v1648_v54, %v1592_v52  ;;  %v1649_v58 = vmul.f32 %v1594_v20, %v1594_v20 }
 0x77b   :  { %v1596_v59 = vpop.f32.mrf.mxu0  ;;  %v1643_v45 = vmul.f32 0.5, %v1594_v20 }
 0x77c   :  { %4279 = vtanh.f32 %v1671_v56  ;;  %v1660_v60 = vmul.f32 0.044715, %v1654_v57  ;;  %v1655_v61 = vmul.f32 %v1649_v58, %v1594_v20 }
 0x77e   :  { %v1666_v2 = vadd.f32 %v1660_v60, %v1592_v52  ;;  %v1661_v6 = vmul.f32 0.044715, %v1655_v61 }
 0x780   :  { %v1672_v8 = vmul.f32 0.7978846, %v1666_v2  ;;  %v1667_v10 = vadd.f32 %v1661_v6, %v1594_v20 }
 0x782   :  { %4281 = vtanh.f32 %v1672_v8  ;;  %v1673_v11 = vmul.f32 0.7978846, %v1667_v10 }
 0x784   :  { %4283 = vtanh.f32 %v1673_v11 }
 0x787   :  { %v4278_v18 = vpop.eup %4277 }
 0x788   :  { %v1682_v23 = vadd.f32 1.0, %v4278_v18 }
 0x789   :  { %v4280_v24 = vpop.eup %4279 }
 0x78a   :  { %v1688_v27 = vmul.f32 %v1682_v23, %v1640_v22  ;;  %v1683_v29 = vadd.f32 1.0, %v4280_v24 }
 0x78c   :  { %v1689_v32 = vmul.f32 %v1683_v29, %v1641_v28  ;;  %v1754_v33 = vmul.f32 %v4813_v25, %v1688_v27 }
 0x78e   :  { %v1755_v34 = vmul.f32 %v4816_v26, %v1689_v32 }
 0x78f   :  { %v4282_v36 = vpop.eup %4281 }
 0x790   :  { %v4012_v39 = vpack.c.bf16 %v1755_v34, %v1754_v33  ;;  %v1684_v40 = vadd.f32 1.0, %v4282_v36 }
 0x791   :  { %v4284_v42 = vpop.eup %4283 }
 0x792   :  { %1784 = vst [vmem:[#allocation4 + $0x4] sm:$0x33] %v4012_v39  ;;  %v1690_v44 = vmul.f32 %v1684_v40, %v1642_v41  ;;  %v1685_v46 = vadd.f32 1.0, %v4284_v42  ;;  %v1697_v41 = vunpack.c.h.bf16 %v4807_v63 }
 0x794   :  { %v1691_v48 = vmul.f32 %v1685_v46, %v1643_v45  ;;  %v1756_v49 = vmul.f32 %v4827_v43, %v1690_v44  ;;  %v1719_v45 = vrot.slane %v1697_v41, %v4566_v4 }
 0x796   :  { %v1757_v50 = vmul.f32 %v4830_v47, %v1691_v48  ;;  %v1723_v48 = vrot.slane %v1697_v41, %v4569_v5  ;;  %v4855_v63 = vrot.slane %v1719_v45, %v4566_v4 }
 0x798   :  { %v4013_v51 = vpack.c.bf16 %v1757_v50, %v1756_v49 }
 0x799   :  { %v2005_v53 = vld [vmem:[#allocation4 + $0x4] sm:$0x33] }
 0x79a   :  { %2011 = vrot.lane.b32.xlu0 %v2005_v53, %s4397_s25  ;;  %1785 = vst [vmem:[#allocation4 + $0xc] sm:$0x33] %v4013_v51  ;;  %v1913_v52 = vld [vmem:[#allocation4 + $0x4] sm:$0x33] }
 0x79b   :  { %v1948_v12 = vld [vmem:[#allocation4 + $0x4] sm:$0x33]  ;;  %1916 = vst [vmem:[#allocation5 + $0x30] sm:$0x33] %v1913_v52 }
 0x79c   :  { %v1790_v54 = vld [vmem:[#allocation4] sm:$0x33] }
 0x79d   :  { %v1850_v60 = vld [vmem:[#allocation4] sm:$0x33] }
 0x79e   :  { %1954 = vrot.lane.b32.xlu0 %v1948_v12, %s4398_s9  ;;  %v1919_v61 = vld [vmem:[#allocation4 + $0x4] sm:$0x33] }
 0x79f   :  { %v1925_v17 = vrot.slane %v1919_v61, 6  ;;  %v1975_v18 = vld [vmem:[#allocation4 + $0x4] sm:$0x33] }
 0x7a0   :  { %v1981_v28 = vrot.slane %v1975_v18, 6  ;;  %v1817_v29 = vld [vmem:[#allocation4] sm:$0x33] }
 0x7a1   :  { %v1632_v16 = vpop.f32.mrf.mxu0  ;;  %v2006_v55 = vld [vmem:[#allocation4 + $0xc] sm:$0x33]  ;;  %v1823_v35 = vrot.slane %v1817_v29, 6  ;;  %v1877_v38 = vld [vmem:[#allocation4] sm:$0x33] }
 0x7a2   :  { %v1633_v20 = vadd.f32 %v1632_v16, %v4798_v37  ;;  %1796 = vrot.lane.b32.xlu0 %v1790_v54, %s4399_s13  ;;  %2013 = vrot.lane.b32.xlu1 %v2006_v55, %s4397_s25  ;;  %v1914_v2 = vld [vmem:[#allocation4 + $0xc] sm:$0x33]  ;;  %v1885_v40 = vrot.slane %v1877_v38, 6 }
 0x7a3   :  { %v1634_v56 = vpop.f32.mrf.mxu0  ;;  %v1949_v9 = vld [vmem:[#allocation4 + $0xc] sm:$0x33]  ;;  %1917 = vst [vmem:[#allocation5 + $0x38] sm:$0x33] %v1914_v2 }
 0x7a4   :  { %v1650_v57 = vmul.f32 %v1633_v20, %v1633_v20  ;;  %v1635_v58 = vadd.f32 %v1634_v56, %v4798_v37  ;;  %v1791_v23 = vld [vmem:[#allocation4 + $0x8] sm:$0x33]  ;;  %v1644_v51 = vmul.f32 0.5, %v1633_v20  ;;  %v4858_v56 = vrot.slane %v1723_v48, %v4566_v4 }
 0x7a5   :  { %v1636_v59 = vpop.f32.mrf.mxu0  ;;  %v1851_v33 = vld [vmem:[#allocation4 + $0x8] sm:$0x33] }
 0x7a6   :  { %v1656_v6 = vmul.f32 %v1650_v57, %v1633_v20  ;;  %v1651_v8 = vmul.f32 %v1635_v58, %v1635_v58  ;;  %1856 = vrot.lane.b32.xlu0 %v1850_v60, %s4400_s30  ;;  %1956 = vrot.lane.b32.xlu1 %v1949_v9, %s4398_s9  ;;  %v1920_v34 = vld [vmem:[#allocation4 + $0xc] sm:$0x33]  ;;  %v1645_v54 = vmul.f32 0.5, %v1635_v58 }
 0x7a7   :  { %v1637_v10 = vpop.f32.mrf.mxu0  ;;  %v1926_v36 = vrot.slane %v1920_v34, 6  ;;  %v1976_v39 = vld [vmem:[#allocation4 + $0xc] sm:$0x33] }
 0x7a8   :  { %v1662_v11 = vmul.f32 0.044715, %v1656_v6  ;;  %v1657_v13 = vmul.f32 %v1651_v8, %v1635_v58  ;;  %v1982_v42 = vrot.slane %v1976_v39, 6  ;;  %v1818_v44 = vld [vmem:[#allocation4 + $0x8] sm:$0x33] }
 0x7a9   :  { %v1824_v46 = vrot.slane %v1818_v44, 6  ;;  %v1878_v49 = vld [vmem:[#allocation4 + $0x8] sm:$0x33] }
 0x7aa   :  { %v1668_v22 = vadd.f32 %v1662_v11, %v1633_v20  ;;  %v1663_v37 = vmul.f32 0.044715, %v1657_v13  ;;  %1928 = vrot.lane.b32.xlu0 %v1925_v17, %s4392_s29  ;;  %1798 = vrot.lane.b32.xlu1 %v1791_v23, %s4399_s13  ;;  %v1886_v12 = vrot.slane %v1878_v49, 6 }
 0x7ac   :  { %v1674_v24 = vmul.f32 0.7978846, %v1668_v22  ;;  %v1669_v27 = vadd.f32 %v1663_v37, %v1635_v58 }
 0x7ae   :  { %4285 = vtanh.f32 %v1674_v24  ;;  %v1675_v32 = vmul.f32 0.7978846, %v1669_v27  ;;  %1984 = vrot.lane.b32.xlu0 %v1981_v28, %s4401_s5  ;;  %1858 = vrot.lane.b32.xlu1 %v1851_v33, %s4400_s30  ;;  %v1695_v28 = vld [vmem:[%s5413_s17] sm:$0xf] }
 0x7b0   :  { %4287 = vtanh.f32 %v1675_v32 }
 0x7b2   :  { %1826 = vrot.lane.b32.xlu0 %v1823_v35, %s4402_s1  ;;  %1930 = vrot.lane.b32.xlu1 %v1926_v36, %s4392_s29 }
 0x7b6   :  { %1889 = vrot.lane.b32.xlu0 %v1885_v40, %s4394_s0  ;;  %1986 = vrot.lane.b32.xlu1 %v1982_v42, %s4401_s5 }
 0x7ba   :  { %1828 = vrot.lane.b32.xlu1 %v1824_v46, %s4402_s1 }
 0x7bb   :  { %v4286_v50 = vpop.eup %4285 }
 0x7bc   :  { %v1686_v53 = vadd.f32 1.0, %v4286_v50 }
 0x7bd   :  { %v4288_v52 = vpop.eup %4287 }
 0x7be   :  { %v1692_v16 = vmul.f32 %v1686_v53, %v1644_v51  ;;  %v1687_v55 = vadd.f32 1.0, %v4288_v52  ;;  %1891 = vrot.lane.b32.xlu1 %v1886_v12, %s4394_s0 }
 0x7c0   :  { %v1693_v57 = vmul.f32 %v1687_v55, %v1645_v54  ;;  %v1758_v59 = vmul.f32 %v4855_v63, %v1692_v16 }
 0x7c2   :  { %v1759_v20 = vmul.f32 %v4858_v56, %v1693_v57 }
 0x7c4   :  { %v4014_v61 = vpack.c.bf16 %v1759_v20, %v1758_v59 }
 0x7c6   :  { %1789 = vst.msk [vmem:[#allocation4 + $0x14] sm:$0x33] %vm4864_vm6, %v4014_v61 }
 0x7cd   :  { %v2007_v58 = vld [vmem:[#allocation4 + $0x14] sm:$0x33] }
 0x7ce   :  { %v1921_v2 = vld [vmem:[#allocation4 + $0x14] sm:$0x33]  ;;  %2015 = vrot.lane.b32.xlu0 %v2007_v58, %s4397_s25 }
 0x7cf   :  { %v1927_v6 = vrot.slane %v1921_v2, 6  ;;  %v1977_v8 = vld [vmem:[#allocation4 + $0x14] sm:$0x33] }
 0x7d0   :  { %v1950_v9 = vld [vmem:[#allocation4 + $0x14] sm:$0x33]  ;;  %v1983_v11 = vrot.slane %v1977_v8, 6 }
 0x7d1   :  { %1932 = vrot.lane.b32.xlu1 %v1927_v6, %s4392_s29  ;;  %v1915_v10 = vld [vmem:[#allocation4 + $0x14] sm:$0x33] }
 0x7d2   :  { %1958 = vrot.lane.b32.xlu0 %v1950_v9, %s4398_s9  ;;  %1918 = vst.msk [vmem:[#allocation5 + $0x40] sm:$0x33] %vm4864_vm6, %v1915_v10  ;;  %v1819_v13 = vld [vmem:[#allocation4 + $0x10] sm:$0x33]  ;;  %v1880_v23 = vld [vmem:[#allocation4 + $0x18] sm:$0x3] }
 0x7d3   :  { %v1792_v17 = vld [vmem:[#allocation4 + $0x10] sm:$0x33]  ;;  %v1825_v18 = vrot.slane %v1819_v13, 6  ;;  %v1888_v27 = vrot.slane %v1880_v23, 6 }
 0x7d4   :  { %v1879_v22 = vld [vmem:[#allocation4 + $0x10] sm:$0x33] }
 0x7d5   :  { %1988 = vrot.lane.b32.xlu1 %v1983_v11, %s4401_s5  ;;  %v1852_v37 = vld [vmem:[#allocation4 + $0x10] sm:$0x33]  ;;  %v1887_v24 = vrot.slane %v1879_v22, 6 }
 0x7d6   :  { %1800 = vrot.lane.b32.xlu0 %v1792_v17, %s4399_s13 }
 0x7d9   :  { %1830 = vrot.lane.b32.xlu1 %v1825_v18, %s4402_s1 }
 0x7da   :  { %1860 = vrot.lane.b32.xlu0 %v1852_v37, %s4400_s30 }
 0x7dd   :  { %1893 = vrot.lane.b32.xlu1 %v1887_v24, %s4394_s0 }
 0x7de   :  { %1895 = vrot.lane.b32.xlu0 %v1888_v27, %s4394_s0 }
 0x7e1   :  { %2049 = vperm.xlu1 %4042, %v1695_v28  }
 0x80c   :  { %v2012_v29 = vpop.permute.xlu0 %2011 }
 0x80d   :  { %v2017_v35 = vrot.slane %v2012_v29, 4 }
 0x810   :  { %v1955_v32 = vpop.permute.xlu0 %1954 }
 0x811   :  { %v1960_v42 = vrot.slane %v1955_v32, 4 }
 0x814   :  { %v1797_v33 = vpop.permute.xlu0 %1796  ;;  %v4884_v34 = vpop.permute.xlu1 %2013 }
 0x815   :  { %v2018_v36 = vrot.slane %v4884_v34, 4  ;;  %v1802_v50 = vrot.slane %v1797_v33, 4 }
 0x817   :  { %v2020_v38 = vsel %vm247_vm4, %v2017_v35, %v2018_v36 }
 0x818   :  { %v1857_v39 = vpop.permute.xlu0 %1856  ;;  %v2022_v40 = vsel %vm2021_vm7, %v2012_v29, %v2020_v38  ;;  %v4891_v41 = vpop.permute.xlu1 %1956 }
 0x819   :  { %2029 = vst [vmem:[#allocation5 + $0x60] sm:$0x33] %v2022_v40  ;;  %v1961_v44 = vrot.slane %v4891_v41, 4  ;;  %v1862_v54 = vrot.slane %v1857_v39, 4 }
 0x81b   :  { %v1963_v45 = vsel %vm247_vm4, %v1960_v42, %v1961_v44 }
 0x81c   :  { %v1965_v46 = vsel %vm1964_vm8, %v1955_v32, %v1963_v45  ;;  %v4898_v48 = vpop.permute.xlu1 %1798  ;;  %v1929_v49 = vpop.permute.xlu0 %1928 }
 0x81d   :  { %1972 = vst [vmem:[#allocation5 + $0x48] sm:$0x33] %v1965_v46  ;;  %v1803_v51 = vrot.slane %v4898_v48, 4  ;;  %v1934_v8 = vrot.slane %v1929_v49, 4 }
 0x81f   :  { %v1805_v53 = vsel %vm247_vm4, %v1802_v50, %v1803_v51 }
 0x820   :  { %v1807_v52 = vsel %vm1806_vm10, %v1797_v33, %v1805_v53  ;;  %v4905_v12 = vpop.permute.xlu1 %1858  ;;  %v2044_v16 = vld [vmem:[#allocation5 + $0x60] sm:$0x33]  ;;  %v1985_v20 = vpop.permute.xlu0 %1984 }
 0x821   :  { %1814 = vst [vmem:[#allocation5] sm:$0x33] %v1807_v52  ;;  %v1863_v55 = vrot.slane %v4905_v12, 4  ;;  %v3927_v57 = vcombine.high %v2044_v16, %v2044_v16  ;;  %v3926_v59 = vcombine.low %v2044_v16, %v2044_v16  ;;  %v1990_v18 = vrot.slane %v1985_v20, 4 }
 0x823   :  { %v1865_v61 = vsel %vm247_vm4, %v1862_v54, %v1863_v55  ;;  %3932 = vmatprep.subr.msk.bf16.mxu0 %vm1786_vm3, %v3927_v57  ;;  %v2132_v58 = vsel %vm1786_vm3, %v3926_v59, 0  ;;  %v4938_v54 = vld [vmem:[%s5410_s14] sm:$0x3] }
 0x824   :  { %v1867_v2 = vsel %vm1866_vm12, %v1857_v39, %v1865_v61  ;;  %2160 = vmatpush1.bf16.msra.mxu0 %v2132_v58  ;;  %v1931_v6 = vpop.permute.xlu1 %1930  ;;  %v1827_v13 = vpop.permute.xlu0 %1826 }
 0x825   :  { %1874 = vst [vmem:[#allocation5 + $0x18] sm:$0x33] %v1867_v2  ;;  %v1935_v9 = vrot.slane %v1931_v6, 4  ;;  %v1832_v27 = vrot.slane %v1827_v13, 4 }
 0x827   :  { %v1937_v10 = vsel %vm247_vm4, %v1934_v8, %v1935_v9 }
 0x828   :  { %v1938_v11 = vsel %vm318_vm9, %v1929_v49, %v1937_v10  ;;  %v4916_v17 = vpop.permute.xlu1 %1986  ;;  %v1890_v29 = vpop.permute.xlu0 %1889 }
 0x829   :  { %1945 = vst [vmem:[#allocation5 + $0x30] sm:$0xcc] %v1938_v11  ;;  %v1991_v22 = vrot.slane %v4916_v17, 4  ;;  %v1897_v38 = vrot.slane %v1890_v29, 4 }
 0x82b   :  { %v1993_v37 = vsel %vm247_vm4, %v1990_v18, %v1991_v22 }
 0x82c   :  { %v1995_v23 = vsel %vm1994_vm13, %v1985_v20, %v1993_v37  ;;  %v4921_v24 = vpop.permute.xlu1 %1828 }
 0x82d   :  { %2002 = vst [vmem:[#allocation5 + $0x48] sm:$0xcc] %v1995_v23  ;;  %v1833_v28 = vrot.slane %v4921_v24, 4 }
 0x82f   :  { %v1835_v32 = vsel %vm247_vm4, %v1832_v27, %v1833_v28 }
 0x830   :  { %v1837_v33 = vsel %vm1836_vm15, %v1827_v13, %v1835_v32  ;;  %v4928_v35 = vpop.permute.xlu1 %1891 }
 0x831   :  { %1844 = vst [vmem:[#allocation5] sm:$0xcc] %v1837_v33  ;;  %v1898_v39 = vrot.slane %v4928_v35, 4 }
 0x833   :  { %v1901_v40 = vsel %vm247_vm4, %v1897_v38, %v1898_v39 }
 0x834   :  { %v1902_v42 = vsel %vm307_vm11, %v1890_v29, %v1901_v40  ;;  %v4187_v45 = vld [vmem:[#allocation5 + $0x34] ss:$24 sps:$4 sm:$0xff]   ;;  %v4189_v46 = vld [vmem:[#allocation5 + $0x30] ss:$24 sps:$4 sm:$0xff]  }
 0x835   :  { %1910 = vst [vmem:[#allocation5 + $0x18] sm:$0xcc] %v1902_v42  ;;  %2161 = vmatprep.subr.bf16.mxu0 %v4187_v45 }
 0x836   :  { %2162 = vmatpush1.bf16.msra.mxu0 %v4189_v46 }
 0x838   :  { %v2032_v49 = vld [vmem:[#allocation5] sm:$0xff] }
 0x83c   :  { %v2035_v50 = vld [vmem:[#allocation5 + $0x18] sm:$0xff] }
 0x83d   :  { %v4190_v53 = vld [vmem:[#allocation5 + $0x4] ss:$24 sps:$4 sm:$0xff]   ;;  %v3914_v52 = vcombine.low %v2032_v49, %v2035_v50 }
 0x83e   :  { %2163 = vmatprep.subr.bf16.mxu0 %v4190_v53 }
 0x83f   :  { %2164 = vmatpush1.bf16.msra.mxu0 %v3914_v52 }
 0x840   :  { %v2016_v16 = vpop.permute.xlu0 %2015 }
 0x841   :  { %v2019_v57 = vrot.slane %v2016_v16, 4 }
 0x842   :  { %3933 = vmatmul.mubr.msk.bf16.vlgmr.msra.gmra.mxu0 %vm2127_vm5, %v4938_v54 }
 0x843   :  { %v1933_v59 = vpop.permute.xlu1 %1932  ;;  %v2023_v20 = vsel %vm247_vm4, %v2018_v36, %v2019_v57  ;;  %v2025_v61 = vsel %vm2021_vm7, %v2016_v16, %v2019_v57  ;;  %2222 = vmatprep.mubr.bf16.mxu0 %v4388_v1 }
 0x844   :  { %v1936_v2 = vrot.slane %v1933_v59, 4  ;;  %v2024_v8 = vsel %vm2021_vm7, %v4884_v34, %v2023_v20  ;;  %2031 = vst.msk [vmem:[#allocation5 + $0x70] sm:$0x33] %vm4864_vm6, %v2025_v61  ;;  %v1959_v10 = vpop.permute.xlu0 %1958 }
 0x845   :  { %2030 = vst [vmem:[#allocation5 + $0x68] sm:$0x33] %v2024_v8  ;;  %v1962_v13 = vrot.slane %v1959_v10, 4 }
 0x846   :  { %v1939_v36 = vsel %vm247_vm4, %v1935_v9, %v1936_v2  ;;  %v1941_v11 = vsel %vm318_vm9, %v1933_v59, %v1936_v2 }
 0x847   :  { %v1940_v18 = vsel %vm318_vm9, %v1931_v6, %v1939_v36  ;;  %1947 = vst.msk [vmem:[#allocation5 + $0x40] sm:$0xcc] %vm4944_vm14, %v1941_v11  ;;  %v1989_v37 = vpop.permute.xlu1 %1988  ;;  %v1966_v34 = vsel %vm247_vm4, %v1961_v44, %v1962_v13  ;;  %v1968_v23 = vsel %vm1964_vm8, %v1959_v10, %v1962_v13 }
 0x848   :  { %1946 = vst [vmem:[#allocation5 + $0x38] sm:$0xcc] %v1940_v18  ;;  %v1992_v27 = vrot.slane %v1989_v37, 4  ;;  %v1967_v9 = vsel %vm1964_vm8, %v4891_v41, %v1966_v34  ;;  %1974 = vst.msk [vmem:[#allocation5 + $0x58] sm:$0x33] %vm4864_vm6, %v1968_v23  ;;  %v1801_v29 = vpop.permute.xlu0 %1800 }
 0x849   :  { %1973 = vst [vmem:[#allocation5 + $0x50] sm:$0x33] %v1967_v9  ;;  %v1804_v33 = vrot.slane %v1801_v29, 4 }
 0x84a   :  { %v1996_v6 = vsel %vm247_vm4, %v1991_v22, %v1992_v27  ;;  %v1998_v32 = vsel %vm1994_vm13, %v1989_v37, %v1992_v27 }
 0x84b   :  { %v1997_v38 = vsel %vm1994_vm13, %v4916_v17, %v1996_v6  ;;  %2004 = vst.msk [vmem:[#allocation5 + $0x58] sm:$0xcc] %vm4944_vm14, %v1998_v32  ;;  %v1831_v44 = vpop.permute.xlu1 %1830  ;;  %v1808_v41 = vsel %vm247_vm4, %v1803_v51, %v1804_v33  ;;  %v1810_v40 = vsel %vm1806_vm10, %v1801_v29, %v1804_v33  ;;  %v2046_v11 = vld [vmem:[#allocation5 + $0x70] sm:$0x33] }
 0x84c   :  { %2003 = vst [vmem:[#allocation5 + $0x50] sm:$0xcc] %v1997_v38  ;;  %v1834_v42 = vrot.slane %v1831_v44, 4  ;;  %v1809_v22 = vsel %vm1806_vm10, %v4898_v48, %v1808_v41  ;;  %1816 = vst.msk [vmem:[#allocation5 + $0x10] sm:$0x33] %vm4864_vm6, %v1810_v40  ;;  %v1861_v45 = vpop.permute.xlu0 %1860  ;;  %v3931_v18 = vcombine.high %v2046_v11, %v2046_v11  ;;  %v3930_v37 = vcombine.low %v2046_v11, %v2046_v11 }
 0x84d   :  { %v2045_v17 = vld [vmem:[#allocation5 + $0x68] sm:$0x33]  ;;  %1815 = vst [vmem:[#allocation5 + $0x8] sm:$0x33] %v1809_v22  ;;  %v1864_v50 = vrot.slane %v1861_v45, 4 }
 0x84e   :  { %v1838_v46 = vsel %vm247_vm4, %v1833_v28, %v1834_v42  ;;  %v1840_v49 = vsel %vm1836_vm15, %v1831_v44, %v1834_v42  ;;  %v3929_v51 = vcombine.high %v2045_v17, %v2045_v17  ;;  %v3928_v52 = vcombine.low %v2045_v17, %v2045_v17 }
 0x84f   :  { %v1839_v53 = vsel %vm1836_vm15, %v4921_v24, %v1838_v46  ;;  %1849 = vst.msk [vmem:[#allocation5 + $0x10] sm:$0xcc] %vm4944_vm14, %v1840_v49  ;;  %v1894_v48 = vpop.permute.xlu1 %1893  ;;  %v1868_v16 = vsel %vm247_vm4, %v1863_v55, %v1864_v50  ;;  %v1870_v57 = vsel %vm1866_vm12, %v1861_v45, %v1864_v50 }
 0x850   :  { %1845 = vst [vmem:[#allocation5 + $0x8] sm:$0xcc] %v1839_v53  ;;  %v1899_v28 = vrot.slane %v1894_v48, 4  ;;  %3934 = vmatprep.subr.msk.bf16.mxu0 %vm1786_vm3, %v3929_v51  ;;  %v1869_v59 = vsel %vm1866_vm12, %v4905_v12, %v1868_v16  ;;  %1876 = vst.msk [vmem:[#allocation5 + $0x28] sm:$0x33] %vm4864_vm6, %v1870_v57  ;;  %v2138_v24 = vsel %vm1786_vm3, %v3928_v52, 0  ;;  %v1896_v20 = vpop.permute.xlu0 %1895 }
 0x851   :  { %1875 = vst [vmem:[#allocation5 + $0x20] sm:$0x33] %v1869_v59  ;;  %2201 = vmatpush1.bf16.msra.mxu0 %v2138_v24  ;;  %v1900_v55 = vrot.slane %v1896_v20, 4 }
 0x852   :  { %v1903_v61 = vsel %vm247_vm4, %v1898_v39, %v1899_v28  ;;  %v4202_v34 = vld [vmem:[#allocation5 + $0x44] ss:$24 sps:$4 sm:$0xff]   ;;  %v4204_v23 = vld [vmem:[#allocation5 + $0x40] ss:$24 sps:$4 sm:$0xff]  }
 0x853   :  { %v1904_v2 = vsel %vm307_vm11, %v4928_v35, %v1903_v61  ;;  %v4194_v8 = vld [vmem:[#allocation5 + $0x3c] ss:$24 sps:$4 sm:$0xff]   ;;  %v4196_v10 = vld [vmem:[#allocation5 + $0x38] ss:$24 sps:$4 sm:$0xff]   ;;  %v1905_v12 = vsel %vm247_vm4, %v1899_v28, %v1900_v55  ;;  %v2144_v35 = vsel %vm1786_vm3, %v3930_v37, 0 }
 0x854   :  { %1911 = vst [vmem:[#allocation5 + $0x20] sm:$0xcc] %v1904_v2  ;;  %v1906_v36 = vsel %vm307_vm11, %v1894_v48, %v1905_v12  ;;  %2202 = vmatprep.subr.bf16.mxu0 %v4194_v8 }
 0x855   :  { %1912 = vst.msk [vmem:[#allocation5 + $0x28] sm:$0xcc] %vm4944_vm14, %v1906_v36  ;;  %2203 = vmatpush1.bf16.msra.mxu0 %v4196_v10 }
 0x85b   :  { %v4197_v13 = vld [vmem:[#allocation5 + $0xc] ss:$24 sps:$4 sm:$0xff]   ;;  %v4199_v39 = vld [vmem:[#allocation5 + $0x8] ss:$24 sps:$4 sm:$0xff]  }
 0x85c   :  { %2204 = vmatprep.subr.bf16.mxu0 %v4197_v13  ;;  %v4205_v27 = vld [vmem:[#allocation5 + $0x14] ss:$24 sps:$4 sm:$0xff]   ;;  %v4207_v9 = vld [vmem:[#allocation5 + $0x10] ss:$24 sps:$4 sm:$0xff]   ;;  %v2050_v29 = vpop.permute.xlu1 %2049 }
 0x85d   :  { %2205 = vmatpush1.bf16.msra.mxu0 %v4199_v39 }
 0x85e   :  { %3936 = vmatprep.subr.msk.bf16.mxu0 %vm1786_vm3, %v3931_v18 }
 0x860   :  { %3935 = vmatmul.mubr.msk.bf16.vlgmr.msra.gmra.mxu0 %vm2127_vm5, %v4938_v54 }
 0x861   :  { %2242 = vmatpush1.bf16.msra.mxu0 %v2144_v35  ;;  %2263 = vmatprep.mubr.bf16.mxu0 %v4388_v1 }
 0x862   :  { %2243 = vmatprep.subr.bf16.mxu0 %v4202_v34 }
 0x865   :  { %2244 = vmatpush1.bf16.msra.mxu0 %v4204_v23 }
 0x866   :  { %2245 = vmatprep.subr.bf16.mxu0 %v4205_v27 }
 0x869   :  { %2246 = vmatpush1.bf16.msra.mxu0 %v4207_v9 }
 0x86c   :  { %3937 = vmatmul.mubr.msk.bf16.vlgmr.msra.gmra.mxu0 %vm2127_vm5, %v4938_v54 }
 0x86d   :  { %2783 = vmatprep.mubr.bf16.mxu0 %v4388_v1 }
 0x902   :  { %v2183_v6 = vpop.f32.mrf.mxu0 }
 0x903   :  { %v2184_v32 = vadd.f32 %v2183_v6, %v2050_v29 }
 0x904   :  { %v2185_v33 = vpop.f32.mrf.mxu0 }
 0x905   :  { %v2278_v38 = vmul.f32 %v2184_v32, %v2184_v32  ;;  %v2186_v44 = vadd.f32 %v2185_v33, %v2050_v29  ;;  %v2272_v48 = vmul.f32 0.5, %v2184_v32 }
 0x906   :  { %v2187_v41 = vpop.f32.mrf.mxu0 }
 0x907   :  { %v2284_v40 = vmul.f32 %v2278_v38, %v2184_v32  ;;  %v2279_v42 = vmul.f32 %v2186_v44, %v2186_v44  ;;  %v2273_v28 = vmul.f32 0.5, %v2186_v44 }
 0x908   :  { %v2188_v22 = vpop.f32.mrf.mxu0 }
 0x909   :  { %v2290_v45 = vmul.f32 0.044715, %v2284_v40  ;;  %v2285_v17 = vmul.f32 %v2279_v42, %v2186_v44 }
 0x90b   :  { %v2296_v46 = vadd.f32 %v2290_v45, %v2184_v32  ;;  %v2291_v49 = vmul.f32 0.044715, %v2285_v17 }
 0x90d   :  { %v2302_v50 = vmul.f32 0.7978846, %v2296_v46  ;;  %v2297_v51 = vadd.f32 %v2291_v49, %v2186_v44 }
 0x90f   :  { %4289 = vtanh.f32 %v2302_v50  ;;  %v2303_v54 = vmul.f32 0.7978846, %v2297_v51 }
 0x911   :  { %4291 = vtanh.f32 %v2303_v54 }
 0x91c   :  { %v4290_v53 = vpop.eup %4289 }
 0x91d   :  { %v2314_v52 = vadd.f32 1.0, %v4290_v53 }
 0x91e   :  { %v4292_v16 = vpop.eup %4291 }
 0x91f   :  { %v2320_v57 = vmul.f32 %v2314_v52, %v2272_v48  ;;  %v2315_v59 = vadd.f32 1.0, %v4292_v16 }
 0x920   :  { %v2224_v24 = vpop.f32.mrf.mxu0 }
 0x921   :  { %v2225_v20 = vadd.f32 %v2224_v24, %v2050_v29  ;;  %v2321_v61 = vmul.f32 %v2315_v59, %v2273_v28  ;;  %v2328_v10 = vmul.f32 %v2320_v57, %v4813_v25 }
 0x922   :  { %v2226_v55 = vpop.f32.mrf.mxu0 }
 0x923   :  { %v2280_v2 = vmul.f32 %v2225_v20, %v2225_v20  ;;  %v2227_v8 = vadd.f32 %v2226_v55, %v2050_v29  ;;  %v2329_v12 = vmul.f32 %v2321_v61, %v4816_v26 }
 0x924   :  { %v2228_v36 = vpop.f32.mrf.mxu0 }
 0x925   :  { %v2286_v11 = vmul.f32 %v2280_v2, %v2225_v20  ;;  %v2281_v13 = vmul.f32 %v2227_v8, %v2227_v8  ;;  %v4015_v39 = vpack.c.bf16 %v2329_v12, %v2328_v10  ;;  %v2274_v2 = vmul.f32 0.5, %v2225_v20 }
 0x926   :  { %v2229_v18 = vpop.f32.mrf.mxu0 }
 0x927   :  { %v2292_v37 = vmul.f32 0.044715, %v2286_v11  ;;  %v2287_v35 = vmul.f32 %v2281_v13, %v2227_v8  ;;  %2358 = vst [vmem:[#allocation4 + $0x4] sm:$0x33] %v4015_v39  ;;  %v2275_v39 = vmul.f32 0.5, %v2227_v8 }
 0x929   :  { %v2298_v34 = vadd.f32 %v2292_v37, %v2225_v20  ;;  %v2293_v23 = vmul.f32 0.044715, %v2287_v35 }
 0x92b   :  { %v2304_v27 = vmul.f32 0.7978846, %v2298_v34  ;;  %v2299_v9 = vadd.f32 %v2293_v23, %v2227_v8 }
 0x92c   :  { %v2265_v6 = vpop.f32.mrf.mxu0 }
 0x92d   :  { %4293 = vtanh.f32 %v2304_v27  ;;  %v2305_v32 = vmul.f32 0.7978846, %v2299_v9  ;;  %v2266_v33 = vadd.f32 %v2265_v6, %v2050_v29 }
 0x92e   :  { %v2267_v38 = vpop.f32.mrf.mxu0  ;;  %v2568_v44 = vld [vmem:[#allocation4 + $0x4] sm:$0x33] }
 0x92f   :  { %4295 = vtanh.f32 %v2305_v32  ;;  %v2282_v25 = vmul.f32 %v2266_v33, %v2266_v33  ;;  %v2268_v26 = vadd.f32 %v2267_v38, %v2050_v29  ;;  %v2484_v41 = vld [vmem:[#allocation4 + $0x4] sm:$0x33]  ;;  %2574 = vrot.lane.b32.xlu0 %v2568_v44, %s4397_s25  ;;  %v2276_v27 = vmul.f32 0.5, %v2266_v33 }
 0x930   :  { %v2269_v40 = vpop.f32.mrf.mxu0  ;;  %v2490_v42 = vrot.slane %v2484_v41, 6  ;;  %v2539_v17 = vld [vmem:[#allocation4 + $0x4] sm:$0x33] }
 0x931   :  { %v2288_v22 = vmul.f32 %v2282_v25, %v2266_v33  ;;  %v2283_v45 = vmul.f32 %v2268_v26, %v2268_v26  ;;  %v2513_v51 = vld [vmem:[#allocation4 + $0x4] sm:$0x33]  ;;  %v2545_v53 = vrot.slane %v2539_v17, 6  ;;  %v2277_v38 = vmul.f32 0.5, %v2268_v26 }
 0x932   :  { %2493 = vrot.lane.b32.xlu1 %v2490_v42, %s4392_s29  ;;  %v2270_v46 = vpop.f32.mrf.mxu0  ;;  %v2478_v54 = vld [vmem:[#allocation4 + $0x4] sm:$0x33] }
 0x933   :  { %v2294_v49 = vmul.f32 0.044715, %v2288_v22  ;;  %v2289_v50 = vmul.f32 %v2283_v45, %v2268_v26  ;;  %2519 = vrot.lane.b32.xlu0 %v2513_v51, %s4398_s9  ;;  %2481 = vst [vmem:[#allocation5 + $0x30] sm:$0x33] %v2478_v54  ;;  %v2387_v52 = vld [vmem:[#allocation4] sm:$0x33] }
 0x934   :  { %v2361_v28 = vld [vmem:[#allocation4] sm:$0x33]  ;;  %v2393_v59 = vrot.slane %v2387_v52, 6 }
 0x935   :  { %v2300_v29 = vadd.f32 %v2294_v49, %v2266_v33  ;;  %v2295_v48 = vmul.f32 0.044715, %v2289_v50  ;;  %v2442_v61 = vld [vmem:[#allocation4] sm:$0x33] }
 0x936   :  { %2548 = vrot.lane.b32.xlu1 %v2545_v53, %s4401_s5  ;;  %v2416_v12 = vld [vmem:[#allocation4] sm:$0x33]  ;;  %v2450_v11 = vrot.slane %v2442_v61, 6 }
 0x937   :  { %v2306_v16 = vmul.f32 0.7978846, %v2300_v29  ;;  %v2301_v57 = vadd.f32 %v2295_v48, %v2268_v26  ;;  %2367 = vrot.lane.b32.xlu0 %v2361_v28, %s4399_s13 }
 0x939   :  { %4297 = vtanh.f32 %v2306_v16  ;;  %v2307_v24 = vmul.f32 0.7978846, %v2301_v57 }
 0x93a   :  { %v4294_v55 = vpop.eup %4293  ;;  %2396 = vrot.lane.b32.xlu1 %v2393_v59, %s4402_s1 }
 0x93b   :  { %v2316_v10 = vadd.f32 1.0, %v4294_v55  ;;  %4299 = vtanh.f32 %v2307_v24  ;;  %2422 = vrot.lane.b32.xlu0 %v2416_v12, %s4400_s30 }
 0x93c   :  { %v4296_v36 = vpop.eup %4295 }
 0x93d   :  { %v2322_v13 = vmul.f32 %v2316_v10, %v2274_v2  ;;  %v2317_v18 = vadd.f32 1.0, %v4296_v36  ;;  %v2327_v2 = vld [vmem:[%s5414_s18] sm:$0xf] }
 0x93e   :  { %2454 = vrot.lane.b32.xlu1 %v2450_v11, %s4394_s0  ;;  %v2888_v36 = vld [vmem:[%s5416_s20] sm:$0xff] }
 0x93f   :  { %v2323_v37 = vmul.f32 %v2317_v18, %v2275_v39  ;;  %v2330_v35 = vmul.f32 %v2322_v13, %v4827_v43 }
 0x941   :  { %v2331_v34 = vmul.f32 %v2323_v37, %v4830_v47 }
 0x943   :  { %v4016_v23 = vpack.c.bf16 %v2331_v34, %v2330_v35 }
 0x945   :  { %2359 = vst [vmem:[#allocation4 + $0xc] sm:$0x33] %v4016_v23 }
 0x946   :  { %v4298_v20 = vpop.eup %4297 }
 0x947   :  { %v2318_v9 = vadd.f32 1.0, %v4298_v20 }
 0x948   :  { %v4300_v6 = vpop.eup %4299 }
 0x949   :  { %v2324_v32 = vmul.f32 %v2318_v9, %v2276_v27  ;;  %v2319_v25 = vadd.f32 1.0, %v4300_v6 }
 0x94b   :  { %v2325_v44 = vmul.f32 %v2319_v25, %v2277_v38  ;;  %v2332_v40 = vmul.f32 %v2324_v32, %v4855_v63 }
 0x94c   :  { %v2569_v41 = vld [vmem:[#allocation4 + $0xc] sm:$0x33] }
 0x94d   :  { %v2485_v8 = vld [vmem:[#allocation4 + $0xc] sm:$0x33]  ;;  %v2333_v42 = vmul.f32 %v2325_v44, %v4858_v56  ;;  %2576 = vrot.lane.b32.xlu1 %v2569_v41, %s4397_s25 }
 0x94e   :  { %v2491_v43 = vrot.slane %v2485_v8, 6  ;;  %v2540_v47 = vld [vmem:[#allocation4 + $0xc] sm:$0x33] }
 0x94f   :  { %v4017_v22 = vpack.c.bf16 %v2333_v42, %v2332_v40  ;;  %v2479_v33 = vld [vmem:[#allocation4 + $0xc] sm:$0x33]  ;;  %v2546_v26 = vrot.slane %v2540_v47, 6 }
 0x950   :  { %2495 = vrot.lane.b32.xlu0 %v2491_v43, %s4392_s29  ;;  %v2514_v45 = vld [vmem:[#allocation4 + $0xc] sm:$0x33]  ;;  %2482 = vst [vmem:[#allocation5 + $0x38] sm:$0x33] %v2479_v33 }
 0x951   :  { %2360 = vst.msk [vmem:[#allocation4 + $0x14] sm:$0x33] %vm4864_vm6, %v4017_v22  ;;  %2521 = vrot.lane.b32.xlu1 %v2514_v45, %s4398_s9  ;;  %v2388_v17 = vld [vmem:[#allocation4 + $0x8] sm:$0x33] }
 0x952   :  { %v2362_v63 = vld [vmem:[#allocation4 + $0x8] sm:$0x33]  ;;  %v2394_v56 = vrot.slane %v2388_v17, 6 }
 0x953   :  { %v2417_v46 = vld [vmem:[#allocation4 + $0x8] sm:$0x33] }
 0x954   :  { %2550 = vrot.lane.b32.xlu0 %v2546_v26, %s4401_s5  ;;  %v2443_v24 = vld [vmem:[#allocation4 + $0x8] sm:$0x33] }
 0x955   :  { %2369 = vrot.lane.b32.xlu1 %v2362_v63, %s4399_s13  ;;  %v2451_v55 = vrot.slane %v2443_v24, 6 }
 0x958   :  { %2398 = vrot.lane.b32.xlu0 %v2394_v56, %s4402_s1  ;;  %v2486_v49 = vld [vmem:[#allocation4 + $0x14] sm:$0x33] }
 0x959   :  { %2424 = vrot.lane.b32.xlu1 %v2417_v46, %s4400_s30  ;;  %v2570_v50 = vld [vmem:[#allocation4 + $0x14] sm:$0x33]  ;;  %v2492_v51 = vrot.slane %v2486_v49, 6 }
 0x95a   :  { %v2541_v54 = vld [vmem:[#allocation4 + $0x14] sm:$0x33] }
 0x95b   :  { %v2480_v53 = vld [vmem:[#allocation4 + $0x14] sm:$0x33]  ;;  %v2547_v48 = vrot.slane %v2541_v54, 6 }
 0x95c   :  { %2578 = vrot.lane.b32.xlu0 %v2570_v50, %s4397_s25  ;;  %2483 = vst.msk [vmem:[#allocation5 + $0x40] sm:$0x33] %vm4864_vm6, %v2480_v53  ;;  %v2515_v29 = vld [vmem:[#allocation4 + $0x14] sm:$0x33] }
 0x95d   :  { %2497 = vrot.lane.b32.xlu1 %v2492_v51, %s4392_s29  ;;  %v2389_v52 = vld [vmem:[#allocation4 + $0x10] sm:$0x33]  ;;  %v2445_v10 = vld [vmem:[#allocation4 + $0x18] sm:$0x3] }
 0x95e   :  { %v2363_v16 = vld [vmem:[#allocation4 + $0x10] sm:$0x33]  ;;  %v2395_v57 = vrot.slane %v2389_v52, 6  ;;  %v2453_v12 = vrot.slane %v2445_v10, 6 }
 0x95f   :  { %v2444_v28 = vld [vmem:[#allocation4 + $0x10] sm:$0x33] }
 0x960   :  { %2523 = vrot.lane.b32.xlu0 %v2515_v29, %s4398_s9  ;;  %v2418_v59 = vld [vmem:[#allocation4 + $0x10] sm:$0x33]  ;;  %v2452_v61 = vrot.slane %v2444_v28, 6 }
 0x961   :  { %2552 = vrot.lane.b32.xlu1 %v2547_v48, %s4401_s5 }
 0x964   :  { %2371 = vrot.lane.b32.xlu0 %v2363_v16, %s4399_s13 }
 0x965   :  { %2400 = vrot.lane.b32.xlu1 %v2395_v57, %s4402_s1 }
 0x968   :  { %2426 = vrot.lane.b32.xlu0 %v2418_v59, %s4400_s30 }
 0x969   :  { %2458 = vrot.lane.b32.xlu1 %v2452_v61, %s4394_s0 }
 0x96c   :  { %2456 = vrot.lane.b32.xlu0 %v2451_v55, %s4394_s0 }
 0x96d   :  { %2611 = vperm.xlu1 %4042, %v2327_v2  }
 0x970   :  { %2460 = vrot.lane.b32.xlu0 %v2453_v12, %s4394_s0 }
 0x974   :  { %2897 = vperm.xlu0 %4041, %v2888_v36  }
 0x9a1   :  { %v2575_v13 = vpop.permute.xlu0 %2574 }
 0x9a2   :  { %v2580_v27 = vrot.slane %v2575_v13, 4 }
 0x9a4   :  { %v2494_v11 = vpop.permute.xlu1 %2493 }
 0x9a5   :  { %v2520_v18 = vpop.permute.xlu0 %2519  ;;  %v2499_v32 = vrot.slane %v2494_v11, 4 }
 0x9a6   :  { %v2525_v8 = vrot.slane %v2520_v18, 4 }
 0x9a8   :  { %v2549_v39 = vpop.permute.xlu1 %2548 }
 0x9a9   :  { %v2368_v35 = vpop.permute.xlu0 %2367  ;;  %v2554_v22 = vrot.slane %v2549_v39, 4 }
 0x9aa   :  { %v2373_v63 = vrot.slane %v2368_v35, 4 }
 0x9ac   :  { %v2397_v37 = vpop.permute.xlu1 %2396 }
 0x9ad   :  { %v2423_v23 = vpop.permute.xlu0 %2422  ;;  %v2402_v51 = vrot.slane %v2397_v37, 4 }
 0x9ae   :  { %v2428_v29 = vrot.slane %v2423_v23, 4 }
 0x9b0   :  { %v5058_v34 = vpop.permute.xlu1 %2454 }
 0x9bf   :  { %v2577_v20 = vpop.permute.xlu1 %2576 }
 0x9c0   :  { %v2581_v9 = vrot.slane %v2577_v20, 4 }
 0x9c2   :  { %v2496_v6 = vpop.permute.xlu0 %2495  ;;  %v2583_v38 = vsel %vm247_vm4, %v2580_v27, %v2581_v9 }
 0x9c3   :  { %v2500_v25 = vrot.slane %v2496_v6, 4  ;;  %v2584_v44 = vsel %vm2021_vm7, %v2575_v13, %v2583_v38  ;;  %v5062_v41 = vpop.permute.xlu1 %2521 }
 0x9c4   :  { %2591 = vst [vmem:[#allocation5 + $0x60] sm:$0x33] %v2584_v44  ;;  %v2526_v42 = vrot.slane %v5062_v41, 4 }
 0x9c5   :  { %v2502_v40 = vsel %vm247_vm4, %v2499_v32, %v2500_v25 }
 0x9c6   :  { %v2503_v43 = vsel %vm318_vm9, %v2494_v11, %v2502_v40  ;;  %v5067_v47 = vpop.permute.xlu0 %2550  ;;  %v2528_v33 = vsel %vm247_vm4, %v2525_v8, %v2526_v42 }
 0x9c7   :  { %2510 = vst [vmem:[#allocation5 + $0x30] sm:$0xcc] %v2503_v43  ;;  %v2555_v45 = vrot.slane %v5067_v47, 4  ;;  %v2529_v26 = vsel %vm1964_vm8, %v2520_v18, %v2528_v33  ;;  %v5072_v17 = vpop.permute.xlu1 %2369 }
 0x9c8   :  { %2536 = vst [vmem:[#allocation5 + $0x48] sm:$0x33] %v2529_v26  ;;  %v2374_v46 = vrot.slane %v5072_v17, 4 }
 0x9c9   :  { %v2557_v56 = vsel %vm247_vm4, %v2554_v22, %v2555_v45 }
 0x9ca   :  { %v2558_v49 = vsel %vm1994_vm13, %v2549_v39, %v2557_v56  ;;  %v5077_v50 = vpop.permute.xlu0 %2398  ;;  %v2376_v54 = vsel %vm247_vm4, %v2373_v63, %v2374_v46 }
 0x9cb   :  { %2565 = vst [vmem:[#allocation5 + $0x48] sm:$0xcc] %v2558_v49  ;;  %v2403_v53 = vrot.slane %v5077_v50, 4  ;;  %v2377_v48 = vsel %vm1806_vm10, %v2368_v35, %v2376_v54  ;;  %v5082_v52 = vpop.permute.xlu1 %2424  ;;  %v2606_v16 = vld [vmem:[#allocation5 + $0x60] sm:$0x33] }
 0x9cc   :  { %2384 = vst [vmem:[#allocation5] sm:$0x33] %v2377_v48  ;;  %v2429_v28 = vrot.slane %v5082_v52, 4  ;;  %v3954_v59 = vcombine.high %v2606_v16, %v2606_v16  ;;  %v3953_v24 = vcombine.low %v2606_v16, %v2606_v16 }
 0x9cd   :  { %v2405_v57 = vsel %vm247_vm4, %v2402_v51, %v2403_v53 }
 0x9ce   :  { %v2406_v61 = vsel %vm1836_vm15, %v2397_v37, %v2405_v57  ;;  %v2579_v55 = vpop.permute.xlu0 %2578  ;;  %v2431_v2 = vsel %vm247_vm4, %v2428_v29, %v2429_v28  ;;  %3959 = vmatprep.subr.msk.bf16.mxu1 %vm1786_vm3, %v3954_v59  ;;  %v2693_v12 = vsel %vm1786_vm3, %v3953_v24, 0 }
 0x9cf   :  { %2413 = vst [vmem:[#allocation5] sm:$0xcc] %v2406_v61  ;;  %v2582_v10 = vrot.slane %v2579_v55, 4  ;;  %v2432_v36 = vsel %vm1866_vm12, %v2423_v23, %v2431_v2  ;;  %v2498_v11 = vpop.permute.xlu1 %2497  ;;  %2721 = vmatpush1.bf16.msra.mxu1 %v2693_v12 }
 0x9d0   :  { %2439 = vst [vmem:[#allocation5 + $0x18] sm:$0x33] %v2432_v36  ;;  %v2501_v18 = vrot.slane %v2498_v11, 4 }
 0x9d1   :  { %v2585_v13 = vsel %vm247_vm4, %v2581_v9, %v2582_v10  ;;  %v2587_v39 = vsel %vm2021_vm7, %v2579_v55, %v2582_v10  ;;  %v2462_v55 = vrot.slane %v5058_v34, 4 }
 0x9d2   :  { %v2586_v37 = vsel %vm2021_vm7, %v2577_v20, %v2585_v13  ;;  %2593 = vst.msk [vmem:[#allocation5 + $0x70] sm:$0x33] %vm4864_vm6, %v2587_v39  ;;  %v2524_v35 = vpop.permute.xlu0 %2523  ;;  %v4209_v27 = vld [vmem:[#allocation5 + $0x34] ss:$24 sps:$4 sm:$0xff]   ;;  %v4211_v32 = vld [vmem:[#allocation5 + $0x30] ss:$24 sps:$4 sm:$0xff]   ;;  %v2504_v38 = vsel %vm247_vm4, %v2500_v25, %v2501_v18  ;;  %v2506_v23 = vsel %vm318_vm9, %v2498_v11, %v2501_v18 }
 0x9d3   :  { %2592 = vst [vmem:[#allocation5 + $0x68] sm:$0x33] %v2586_v37  ;;  %v2527_v44 = vrot.slane %v2524_v35, 4  ;;  %v2505_v8 = vsel %vm318_vm9, %v2496_v6, %v2504_v38  ;;  %2512 = vst.msk [vmem:[#allocation5 + $0x40] sm:$0xcc] %vm4944_vm14, %v2506_v23  ;;  %v2553_v9 = vpop.permute.xlu1 %2552  ;;  %2722 = vmatprep.subr.bf16.mxu1 %v4209_v27 }
 0x9d4   :  { %2511 = vst [vmem:[#allocation5 + $0x38] sm:$0xcc] %v2505_v8  ;;  %v2556_v43 = vrot.slane %v2553_v9, 4  ;;  %2723 = vmatpush1.bf16.msra.mxu1 %v4211_v32  ;;  %v2326_v8 = vld [vmem:[%s5411_s15] sm:$0x3] }
 0x9d5   :  { %v2530_v20 = vsel %vm247_vm4, %v2526_v42, %v2527_v44  ;;  %v2532_v40 = vsel %vm1964_vm8, %v2524_v35, %v2527_v44 }
 0x9d6   :  { %v2531_v25 = vsel %vm1964_vm8, %v5062_v41, %v2530_v20  ;;  %2538 = vst.msk [vmem:[#allocation5 + $0x58] sm:$0x33] %vm4864_vm6, %v2532_v40  ;;  %v2372_v22 = vpop.permute.xlu0 %2371  ;;  %v2559_v6 = vsel %vm247_vm4, %v2555_v45, %v2556_v43  ;;  %v2561_v33 = vsel %vm1994_vm13, %v2553_v9, %v2556_v43 }
 0x9d7   :  { %2537 = vst [vmem:[#allocation5 + $0x50] sm:$0x33] %v2531_v25  ;;  %v2375_v26 = vrot.slane %v2372_v22, 4  ;;  %v2560_v42 = vsel %vm1994_vm13, %v5067_v47, %v2559_v6  ;;  %2567 = vst.msk [vmem:[#allocation5 + $0x58] sm:$0xcc] %vm4944_vm14, %v2561_v33  ;;  %v2401_v63 = vpop.permute.xlu1 %2400 }
 0x9d8   :  { %2566 = vst [vmem:[#allocation5 + $0x50] sm:$0xcc] %v2560_v42  ;;  %v2404_v49 = vrot.slane %v2401_v63, 4 }
 0x9d9   :  { %v2378_v41 = vsel %vm247_vm4, %v2374_v46, %v2375_v26  ;;  %v2380_v56 = vsel %vm1806_vm10, %v2372_v22, %v2375_v26  ;;  %v2608_v35 = vld [vmem:[#allocation5 + $0x70] sm:$0x33] }
 0x9da   :  { %v2379_v51 = vsel %vm1806_vm10, %v5072_v17, %v2378_v41  ;;  %2386 = vst.msk [vmem:[#allocation5 + $0x10] sm:$0x33] %vm4864_vm6, %v2380_v56  ;;  %v2427_v45 = vpop.permute.xlu0 %2426  ;;  %v2607_v54 = vld [vmem:[#allocation5 + $0x68] sm:$0x33]  ;;  %v2407_v47 = vsel %vm247_vm4, %v2403_v53, %v2404_v49  ;;  %v2409_v29 = vsel %vm1836_vm15, %v2401_v63, %v2404_v49  ;;  %v3958_v23 = vcombine.high %v2608_v35, %v2608_v35 }
 0x9db   :  { %2385 = vst [vmem:[#allocation5 + $0x8] sm:$0x33] %v2379_v51  ;;  %v2430_v48 = vrot.slane %v2427_v45, 4  ;;  %v3956_v16 = vcombine.high %v2607_v54, %v2607_v54  ;;  %v2408_v46 = vsel %vm1836_vm15, %v5077_v50, %v2407_v47  ;;  %2415 = vst.msk [vmem:[#allocation5 + $0x10] sm:$0xcc] %vm4944_vm14, %v2409_v29  ;;  %v2459_v57 = vpop.permute.xlu1 %2458  ;;  %v3955_v17 = vcombine.low %v2607_v54, %v2607_v54 }
 0x9dc   :  { %2414 = vst [vmem:[#allocation5 + $0x8] sm:$0xcc] %v2408_v46  ;;  %v2464_v2 = vrot.slane %v2459_v57, 4  ;;  %v3957_v44 = vcombine.low %v2608_v35, %v2608_v35 }
 0x9dd   :  { %v2433_v59 = vsel %vm247_vm4, %v2429_v28, %v2430_v48  ;;  %v2435_v24 = vsel %vm1866_vm12, %v2427_v45, %v2430_v48  ;;  %3961 = vmatprep.subr.msk.bf16.mxu0 %vm1786_vm3, %v3956_v16  ;;  %v2699_v50 = vsel %vm1786_vm3, %v3955_v17, 0 }
 0x9de   :  { %v2434_v53 = vsel %vm1866_vm12, %v5082_v52, %v2433_v59  ;;  %2441 = vst.msk [vmem:[#allocation5 + $0x28] sm:$0x33] %vm4864_vm6, %v2435_v24  ;;  %v2457_v61 = vpop.permute.xlu0 %2456  ;;  %2762 = vmatpush1.bf16.msra.mxu0 %v2699_v50  ;;  %v2705_v58 = vsel %vm1786_vm3, %v3957_v44, 0  ;;  %v4225_v9 = vld [vmem:[#allocation5 + $0x44] ss:$24 sps:$4 sm:$0xff]  }
 0x9df   :  { %2440 = vst [vmem:[#allocation5 + $0x20] sm:$0x33] %v2434_v53  ;;  %v2463_v10 = vrot.slane %v2457_v61, 4  ;;  %v4214_v28 = vld [vmem:[#allocation5 + $0x3c] ss:$24 sps:$4 sm:$0xff]  }
 0x9e0   :  { %v4216_v12 = vld [vmem:[#allocation5 + $0x38] ss:$24 sps:$4 sm:$0xff]   ;;  %2763 = vmatprep.subr.bf16.mxu0 %v4214_v28 }
 0x9e1   :  { %v2466_v36 = vsel %vm247_vm4, %v2462_v55, %v2463_v10  ;;  %v2468_v11 = vsel %vm247_vm4, %v2463_v10, %v2464_v2  ;;  %v4227_v20 = vld [vmem:[#allocation5 + $0x40] ss:$24 sps:$4 sm:$0xff]  }
 0x9e2   :  { %v2467_v52 = vsel %vm307_vm11, %v5058_v34, %v2466_v36  ;;  %v2469_v60 = vsel %vm307_vm11, %v2457_v61, %v2468_v11  ;;  %v2461_v13 = vpop.permute.xlu0 %2460  ;;  %2764 = vmatpush1.bf16.msra.mxu0 %v4216_v12 }
 0x9e3   :  { %2475 = vst [vmem:[#allocation5 + $0x18] sm:$0xcc] %v2467_v52  ;;  %2476 = vst [vmem:[#allocation5 + $0x20] sm:$0xcc] %v2469_v60  ;;  %v2465_v39 = vrot.slane %v2461_v13, 4 }
 0x9e5   :  { %v2470_v18 = vsel %vm247_vm4, %v2464_v2, %v2465_v39 }
 0x9e6   :  { %v2471_v37 = vsel %vm307_vm11, %v2459_v57, %v2470_v18 }
 0x9e7   :  { %2477 = vst.msk [vmem:[#allocation5 + $0x28] sm:$0xcc] %vm4944_vm14, %v2471_v37  ;;  %vm2900_vm14 = vcmask 31744  }
 0x9e8   :  { %v2612_v25 = vpop.permute.xlu1 %2611 }
 0x9ea   :  { %v4217_v27 = vld [vmem:[#allocation5 + $0x4] ss:$24 sps:$4 sm:$0xff]   ;;  %v4221_v38 = vld [vmem:[#allocation5] ss:$24 sps:$4 sm:$0xff]  }
 0x9eb   :  { %v4219_v32 = vld [vmem:[#allocation5 + $0xc] ss:$24 sps:$4 sm:$0xff]   ;;  %v4222_v34 = vld [vmem:[#allocation5 + $0x8] ss:$24 sps:$4 sm:$0xff]   ;;  %2724 = vmatprep.subr.bf16.mxu1 %v4217_v27 }
 0x9ec   :  { %2765 = vmatprep.subr.bf16.mxu0 %v4219_v32  ;;  %2725 = vmatpush1.bf16.msra.mxu1 %v4221_v38 }
 0x9ed   :  { %2766 = vmatpush1.bf16.msra.mxu0 %v4222_v34  ;;  %3963 = vmatprep.subr.msk.bf16.mxu1 %vm1786_vm3, %v3958_v23 }
 0x9ee   :  { %v4228_v40 = vld [vmem:[#allocation5 + $0x14] ss:$24 sps:$4 sm:$0xff]   ;;  %v4230_v43 = vld [vmem:[#allocation5 + $0x10] ss:$24 sps:$4 sm:$0xff]  }
 0x9ef   :  { %3960 = vmatmul.mubr.msk.bf16.vlgmr.msra.gmra.mxu1 %vm2127_vm5, %v2326_v8 }
 0x9f0   :  { %3962 = vmatmul.mubr.msk.bf16.vlgmr.msra.gmra.mxu0 %vm2127_vm5, %v2326_v8  ;;  %2803 = vmatpush1.bf16.msra.mxu1 %v2705_v58 }
 0x9f1   :  { %2804 = vmatprep.subr.bf16.mxu1 %v4225_v9  ;;  %2824 = vmatprep.mubr.bf16.mxu1 %v4388_v1 }
 0x9f2   :  { %2954 = vmatprep.mubr.bf16.mxu0 %v4388_v1 }
 0x9f4   :  { %2805 = vmatpush1.bf16.msra.mxu1 %v4227_v20 }
 0x9f5   :  { %2806 = vmatprep.subr.bf16.mxu1 %v4228_v40 }
 0x9f8   :  { %2807 = vmatpush1.bf16.msra.mxu1 %v4230_v43 }
 0x9fb   :  { %3964 = vmatmul.mubr.msk.bf16.vlgmr.msra.gmra.mxu1 %vm2127_vm5, %v2326_v8 }
 0x9fc   :  { %2995 = vmatprep.mubr.bf16.mxu1 %v4388_v1 }
 0xaaf   :  { %v2744_v22 = vpop.f32.mrf.mxu1 }
 0xab0   :  { %v2745_v6 = vadd.f32 %v2744_v22, %v2612_v25  ;;  %v2785_v33 = vpop.f32.mrf.mxu0 }
 0xab1   :  { %v2786_v26 = vadd.f32 %v2785_v33, %v2612_v25  ;;  %v2746_v42 = vpop.f32.mrf.mxu1 }
 0xab2   :  { %v2839_v63 = vmul.f32 %v2745_v6, %v2745_v6  ;;  %v2747_v41 = vadd.f32 %v2746_v42, %v2612_v25  ;;  %v2787_v56 = vpop.f32.mrf.mxu0  ;;  %v2833_v22 = vmul.f32 0.5, %v2745_v6 }
 0xab3   :  { %v2841_v49 = vmul.f32 %v2786_v26, %v2786_v26  ;;  %v2788_v51 = vadd.f32 %v2787_v56, %v2612_v25  ;;  %v2748_v45 = vpop.f32.mrf.mxu1 }
 0xab4   :  { %v2845_v54 = vmul.f32 %v2839_v63, %v2745_v6  ;;  %v2840_v47 = vmul.f32 %v2747_v41, %v2747_v41  ;;  %v2789_v29 = vpop.f32.mrf.mxu0 }
 0xab5   :  { %v2847_v48 = vmul.f32 %v2841_v49, %v2786_v26  ;;  %v2842_v16 = vmul.f32 %v2788_v51, %v2788_v51  ;;  %v2749_v46 = vpop.f32.mrf.mxu1  ;;  %v2834_v49 = vmul.f32 0.5, %v2747_v41 }
 0xab6   :  { %v2851_v57 = vmul.f32 0.044715, %v2845_v54  ;;  %v2846_v17 = vmul.f32 %v2840_v47, %v2747_v41  ;;  %v2790_v59 = vpop.f32.mrf.mxu0  ;;  %v2836_v47 = vmul.f32 0.5, %v2788_v51 }
 0xab7   :  { %v2853_v24 = vmul.f32 0.044715, %v2847_v48  ;;  %v2848_v53 = vmul.f32 %v2842_v16, %v2788_v51 }
 0xab8   :  { %v2857_v50 = vadd.f32 %v2851_v57, %v2745_v6  ;;  %v2852_v61 = vmul.f32 0.044715, %v2846_v17 }
 0xab9   :  { %v2859_v55 = vadd.f32 %v2853_v24, %v2786_v26  ;;  %v2854_v2 = vmul.f32 0.044715, %v2848_v53 }
 0xaba   :  { %v2863_v10 = vmul.f32 0.7978846, %v2857_v50  ;;  %v2858_v28 = vadd.f32 %v2852_v61, %v2747_v41  ;;  %v2887_v41 = vld [vmem:[%s5415_s19] sm:$0xf] }
 0xabb   :  { %v2865_v12 = vmul.f32 0.7978846, %v2859_v55  ;;  %v2860_v36 = vadd.f32 %v2854_v2, %v2788_v51  ;;  %v2826_v11 = vpop.f32.mrf.mxu1 }
 0xabc   :  { %4301 = vtanh.f32 %v2863_v10  ;;  %v2864_v52 = vmul.f32 0.7978846, %v2858_v28  ;;  %v2827_v60 = vadd.f32 %v2826_v11, %v2612_v25 }
 0xabd   :  { %4303 = vtanh.f32 %v2865_v12  ;;  %v2866_v13 = vmul.f32 0.7978846, %v2860_v36  ;;  %v2828_v39 = vpop.f32.mrf.mxu1 }
 0xabe   :  { %4305 = vtanh.f32 %v2864_v52  ;;  %v2843_v18 = vmul.f32 %v2827_v60, %v2827_v60  ;;  %v2829_v37 = vadd.f32 %v2828_v39, %v2612_v25  ;;  %v2835_v25 = vmul.f32 0.5, %v2786_v26  ;;  %v3051_v52 = vld [vmem:[%s5412_s16] sm:$0x3f] }
 0xabf   :  { %4307 = vtanh.f32 %v2866_v13  ;;  %v2830_v35 = vpop.f32.mrf.mxu1  ;;  %v2837_v53 = vmul.f32 0.5, %v2827_v60 }
 0xac0   :  { %v2849_v27 = vmul.f32 %v2843_v18, %v2827_v60  ;;  %v2844_v32 = vmul.f32 %v2829_v37, %v2829_v37  ;;  %v2838_v55 = vmul.f32 0.5, %v2829_v37  ;;  %v2898_v18 = vpop.permute.xlu0 %2897 }
 0xac1   :  { %v2831_v38 = vpop.f32.mrf.mxu1 }
 0xac2   :  { %v2855_v34 = vmul.f32 0.044715, %v2849_v27  ;;  %v2850_v23 = vmul.f32 %v2844_v32, %v2829_v37 }
 0xac4   :  { %v2861_v44 = vadd.f32 %v2855_v34, %v2827_v60  ;;  %v2856_v8 = vmul.f32 0.044715, %v2850_v23  ;;  %v3054_v60 = vunpack.c.l.bf16 %v3051_v52 }
 0xac6   :  { %v2867_v58 = vmul.f32 0.7978846, %v2861_v44  ;;  %v2862_v9 = vadd.f32 %v2856_v8, %v2829_v37  ;;  %v3061_v13 = vrot.slane %v3054_v60, %v4566_v4  ;;  %v3065_v39 = vrot.slane %v3054_v60, %v4569_v5 }
 0xac7   :  { %v3069_v35 = vrot.slane %v3054_v60, %v1710_v30  ;;  %v3073_v27 = vrot.slane %v3054_v60, %v1714_v31 }
 0xac8   :  { %4309 = vtanh.f32 %v2867_v58  ;;  %v2868_v20 = vmul.f32 0.7978846, %v2862_v9  ;;  %v3091_v8 = vrot.slane %v3061_v13, %v4566_v4  ;;  %v3095_v9 = vrot.slane %v3065_v39, %v4566_v4 }
 0xac9   :  { %v4302_v40 = vpop.eup %4301 }
 0xaca   :  { %v4304_v43 = vpop.eup %4303  ;;  %4311 = vtanh.f32 %v2868_v20  ;;  %v2875_v33 = vadd.f32 1.0, %v4302_v40 }
 0xacb   :  { %v4306_v42 = vpop.eup %4305  ;;  %v2877_v63 = vadd.f32 1.0, %v4304_v43  ;;  %v3099_v43 = vrot.slane %v3069_v35, %v4566_v4 }
 0xacc   :  { %v4308_v56 = vpop.eup %4307  ;;  %v2876_v45 = vadd.f32 1.0, %v4306_v42  ;;  %v2881_v54 = vmul.f32 %v2875_v33, %v2833_v22  ;;  %v3103_v22 = vrot.slane %v3073_v27, %v4566_v4 }
 0xacd   :  { %v2878_v29 = vadd.f32 1.0, %v4308_v56  ;;  %v2883_v48 = vmul.f32 %v2877_v63, %v2835_v25 }
 0xace   :  { %v2882_v16 = vmul.f32 %v2876_v45, %v2834_v49  ;;  %v2889_v46 = vpack.c.bf16 %v2881_v54, %v2881_v54  ;;  %v3055_v45 = vunpack.c.h.bf16 %v3051_v52 }
 0xacf   :  { %v2884_v57 = vmul.f32 %v2878_v29, %v2836_v47  ;;  %v2891_v17 = vpack.c.bf16 %v2883_v48, %v2883_v48 }
 0xad0   :  { %v2890_v59 = vpack.c.bf16 %v2882_v16, %v2882_v16  ;;  %v2905_v6 = vsel %vm1786_vm3, %v2889_v46, 0  ;;  %v3077_v48 = vrot.slane %v3055_v45, %v4566_v4 }
 0xad1   :  { %v2892_v24 = vpack.c.bf16 %v2884_v57, %v2884_v57  ;;  %v2911_v26 = vsel %vm1786_vm3, %v2891_v17, 0 }
 0xad2   :  { %3965 = vmatprep.subr.msk.bf16.mxu0 %vm1786_vm3, %v2890_v59  ;;  %v3107_v17 = vrot.slane %v3077_v48, %v4566_v4 }
 0xad3   :  { %3967 = vmatprep.subr.msk.bf16.mxu1 %vm1786_vm3, %v2892_v24  ;;  %2937 = vmatpush1.bf16.msra.mxu0 %v2905_v6 }
 0xad4   :  { %2978 = vmatpush1.bf16.msra.mxu1 %v2911_v26 }
 0xad5   :  { %v4310_v51 = vpop.eup %4309 }
 0xad6   :  { %3966 = vmatmul.mubr.msk.bf16.vlgmr.msra.gmra.mxu0 %vm2900_vm14, %v2887_v41  ;;  %v2879_v50 = vadd.f32 1.0, %v4310_v51 }
 0xad7   :  { %v4312_v61 = vpop.eup %4311  ;;  %3968 = vmatmul.mubr.msk.bf16.vlgmr.msra.gmra.mxu1 %vm2900_vm14, %v2887_v41  ;;  %3036 = vmatprep.mubr.bf16.mxu0 %v4388_v1 }
 0xad8   :  { %v2880_v2 = vadd.f32 1.0, %v4312_v61  ;;  %v2885_v10 = vmul.f32 %v2879_v50, %v2837_v53  ;;  %3590 = vmatprep.mubr.bf16.mxu1 %v4388_v1 }
 0xada   :  { %v2886_v28 = vmul.f32 %v2880_v2, %v2838_v55  ;;  %v2893_v12 = vpack.c.bf16 %v2885_v10, %v2885_v10  ;;  %v3053_v10 = vld [vmem:[#allocation6] sm:$0x1] }
 0xadc   :  { %v2894_v36 = vpack.c.bf16 %v2886_v28, %v2886_v28  ;;  %v2917_v11 = vsel %vm1786_vm3, %v2893_v12, 0 }
 0xade   :  { %3969 = vmatprep.subr.msk.bf16.mxu0 %vm1786_vm3, %v2894_v36  ;;  %vm5216_vm3 = vmor %vm99_vm1, %vm247_vm4  ;;  %vm5446_vm1 = vcmask 588800  }
 0xadf   :  { %3019 = vmatpush1.bf16.msra.mxu0 %v2917_v11 }
 0xae2   :  { %3970 = vmatmul.mubr.msk.bf16.vlgmr.msra.gmra.mxu0 %vm2900_vm14, %v2887_v41 }
 0xae3   :  { %3631 = vmatprep.mubr.bf16.mxu0 %v4388_v1 }
 0xb96   :  { %v2956_v37 = vpop.f32.mrf.mxu0 }
 0xb97   :  { %v2957_v32 = vadd.f32 %v2956_v37, %v2898_v18  ;;  %v2997_v38 = vpop.f32.mrf.mxu1 }
 0xb98   :  { %v2998_v34 = vadd.f32 %v2997_v38, %v2898_v18  ;;  %v2958_v23 = vpop.f32.mrf.mxu0 }
 0xb99   :  { %v3045_v44 = vadd.f32 %v2957_v32, %v4739_v14  ;;  %v2959_v58 = vadd.f32 %v2958_v23, %v2898_v18  ;;  %v2999_v20 = vpop.f32.mrf.mxu1 }
 0xb9a   :  { %v3047_v40 = vadd.f32 %v2998_v34, %v4741_v15  ;;  %v3000_v30 = vadd.f32 %v2999_v20, %v2898_v18  ;;  %v2960_v31 = vpop.f32.mrf.mxu0 }
 0xb9b   :  { %v3046_v33 = vadd.f32 %v2959_v58, %v4747_v19  ;;  %v3001_v42 = vpop.f32.mrf.mxu1  ;;  %v3112_v63 = vmul.f32 %v3091_v8, %v3045_v44  ;;  %v3081_v19 = vrot.slane %v3055_v45, %v4569_v5 }
 0xb9c   :  { %v3048_v25 = vadd.f32 %v3000_v30, %v4749_v21  ;;  %v2961_v14 = vpop.f32.mrf.mxu0  ;;  %v3114_v54 = vmul.f32 %v3099_v43, %v3047_v40 }
 0xb9d   :  { %v3113_v56 = vmul.f32 %v3095_v9, %v3046_v33  ;;  %v3002_v49 = vpop.f32.mrf.mxu1  ;;  %v3111_v59 = vrot.slane %v3081_v19, %v4566_v4 }
 0xb9e   :  { %v3115_v47 = vmul.f32 %v3103_v22, %v3048_v25 }
 0xb9f   :  { %v5190_v29 = vpack.c.bf16 %v3113_v56, %v3112_v63 }
 0xba0   :  { %v5192_v15 = vpack.c.bf16 %v3115_v47, %v3114_v54 }
 0xba1   :  { %3142 = vst [vmem:[#allocation4 + $0x4] sm:$0xff] %v5190_v29  ;;  %3346 = vrot.lane.b32.xlu1 %v5190_v29, %s4397_s25  ;;  %3259 = vst [vmem:[#allocation5 + $0x60] sm:$0xff] %v5190_v29 }
 0xba2   :  { %3143 = vst [vmem:[#allocation4 + $0xc] sm:$0xff] %v5192_v15  ;;  %v3038_v21 = vpop.f32.mrf.mxu0  ;;  %3348 = vrot.lane.b32.xlu0 %v5192_v15, %s4397_s25  ;;  %3260 = vst [vmem:[#allocation5 + $0x68] sm:$0xff] %v5192_v15 }
 0xba3   :  { %v3039_v16 = vadd.f32 %v3038_v21, %v2898_v18 }
 0xba4   :  { %v3040_v46 = vpop.f32.mrf.mxu0 }
 0xba5   :  { %v3049_v57 = vadd.f32 %v3039_v16, %v4778_v3  ;;  %v3041_v5 = vadd.f32 %v3040_v46, %v2898_v18  ;;  %3294 = vrot.lane.b32.xlu1 %v5190_v29, %s4398_s9 }
 0xba6   :  { %3296 = vrot.lane.b32.xlu0 %v5192_v15, %s4398_s9  ;;  %v3042_v24 = vpop.f32.mrf.mxu0 }
 0xba7   :  { %v3050_v6 = vadd.f32 %v3041_v5, %v4782_v7  ;;  %v3116_v41 = vmul.f32 %v3107_v17, %v3049_v57 }
 0xba8   :  { %v3043_v26 = vpop.f32.mrf.mxu0  ;;  %v3198_v7 = vld [vmem:[#allocation4] sm:$0xff] }
 0xba9   :  { %v3117_v51 = vmul.f32 %v3111_v59, %v3050_v6  ;;  %3320 = vrot.lane.b32.xlu1 %v5190_v29, %s4401_s5  ;;  %v3199_v50 = vld [vmem:[#allocation4 + $0x8] sm:$0xff] }
 0xbaa   :  { %3322 = vrot.lane.b32.xlu0 %v5192_v15, %s4401_s5 }
 0xbab   :  { %v4020_v53 = vpack.c.bf16 %v3117_v51, %v3116_v41 }
 0xbad   :  { %3145 = vst.msk [vmem:[#allocation4 + $0x14] sm:$0xff] %vm5216_vm3, %v4020_v53  ;;  %3268 = vrot.lane.b32.xlu1 %v5190_v29, %s4392_s29 }
 0xbae   :  { %3270 = vrot.lane.b32.xlu0 %v5192_v15, %s4392_s29 }
 0xbb1   :  { %3204 = vrot.lane.b32.xlu1 %v3198_v7, %s4400_s30 }
 0xbb2   :  { %3206 = vrot.lane.b32.xlu0 %v3199_v50, %s4400_s30 }
 0xbb4   :  { %v3290_v61 = vld [vmem:[#allocation4 + $0x14] sm:$0xff] }
 0xbb5   :  { %3232 = vrot.lane.b32.xlu1 %v3198_v7, %s4394_s0  ;;  %3261 = vst.msk [vmem:[#allocation5 + $0x70] sm:$0xff] %vm5216_vm3, %v3290_v61  ;;  %v3226_v55 = vld [vmem:[#allocation4 + $0x10] sm:$0xff]  ;;  %v3227_v2 = vld [vmem:[#allocation4 + $0x18] sm:$0xf] }
 0xbb6   :  { %3234 = vrot.lane.b32.xlu0 %v3199_v50, %s4394_s0 }
 0xbb9   :  { %3152 = vrot.lane.b32.xlu1 %v3198_v7, %s4399_s13 }
 0xbba   :  { %3154 = vrot.lane.b32.xlu0 %v3199_v50, %s4399_s13 }
 0xbbd   :  { %3178 = vrot.lane.b32.xlu1 %v3198_v7, %s4402_s1 }
 0xbbe   :  { %3180 = vrot.lane.b32.xlu0 %v3199_v50, %s4402_s1 }
 0xbc1   :  { %3350 = vrot.lane.b32.xlu1 %v3290_v61, %s4397_s25 }
 0xbc2   :  { %3298 = vrot.lane.b32.xlu0 %v3290_v61, %s4398_s9 }
 0xbc5   :  { %3324 = vrot.lane.b32.xlu1 %v3290_v61, %s4401_s5 }
 0xbc6   :  { %3272 = vrot.lane.b32.xlu0 %v3290_v61, %s4392_s29 }
 0xbc9   :  { %3208 = vrot.lane.b32.xlu1 %v3226_v55, %s4400_s30 }
 0xbca   :  { %3236 = vrot.lane.b32.xlu0 %v3226_v55, %s4394_s0 }
 0xbcd   :  { %3238 = vrot.lane.b32.xlu1 %v3227_v2, %s4394_s0 }
 0xbce   :  { %3156 = vrot.lane.b32.xlu0 %v3226_v55, %s4399_s13 }
 0xbd1   :  { %3182 = vrot.lane.b32.xlu1 %v3226_v55, %s4402_s1 }
 0xbd2   :  { %3395 = vperm.xlu0 %4041, %v3053_v10  }
 0xc13   :  { %v3347_v28 = vpop.permute.xlu1 %3346 }
 0xc14   :  { %v5247_v12 = vpop.permute.xlu0 %3348  ;;  %v3352_v36 = vrot.slane %v3347_v28, 4 }
 0xc15   :  { %v3353_v11 = vrot.slane %v5247_v12, 4 }
 0xc17   :  { %v3355_v52 = vsel %vm247_vm4, %v3352_v36, %v3353_v11  ;;  %v3295_v60 = vpop.permute.xlu1 %3294 }
 0xc18   :  { %v3356_v13 = vsel %vm2021_vm7, %v3347_v28, %v3355_v52  ;;  %v5254_v39 = vpop.permute.xlu0 %3296  ;;  %v3300_v18 = vrot.slane %v3295_v60, 4 }
 0xc19   :  { %v3301_v37 = vrot.slane %v5254_v39, 4  ;;  %v3999_v35 = vcombine.high %v3356_v13, %v3356_v13  ;;  %v3998_v27 = vcombine.low %v3356_v13, %v3356_v13 }
 0xc1b   :  { %v3303_v32 = vsel %vm247_vm4, %v3300_v18, %v3301_v37  ;;  %v3321_v38 = vpop.permute.xlu1 %3320  ;;  %4004 = vmatprep.subr.msk.bf16.mxu1 %vm247_vm4, %v3999_v35  ;;  %v3541_v34 = vsel %vm247_vm4, %v3998_v27, 0 }
 0xc1c   :  { %v3304_v23 = vsel %vm1964_vm8, %v3295_v60, %v3303_v32  ;;  %v5263_v44 = vpop.permute.xlu0 %3322  ;;  %v3326_v8 = vrot.slane %v3321_v38, 4  ;;  %3565 = vmatpush1.bf16.msra.mxu1 %v3541_v34 }
 0xc1d   :  { %v3327_v58 = vrot.slane %v5263_v44, 4 }
 0xc1f   :  { %v3329_v9 = vsel %vm247_vm4, %v3326_v8, %v3327_v58  ;;  %v3269_v20 = vpop.permute.xlu1 %3268 }
 0xc20   :  { %v3330_v40 = vsel %vm1994_vm13, %v3321_v38, %v3329_v9  ;;  %v5270_v43 = vpop.permute.xlu0 %3270  ;;  %v3274_v30 = vrot.slane %v3269_v20, 4 }
 0xc21   :  { %v3275_v22 = vrot.slane %v5270_v43, 4  ;;  %v3992_v31 = vcombine.low %v3304_v23, %v3330_v40  ;;  %v3993_v33 = vcombine.high %v3304_v23, %v3330_v40 }
 0xc23   :  { %v3277_v42 = vsel %vm247_vm4, %v3274_v30, %v3275_v22  ;;  %v3205_v25 = vpop.permute.xlu1 %3204  ;;  %3566 = vmatprep.subr.bf16.mxu1 %v3993_v33 }
 0xc24   :  { %v3278_v14 = vsel %vm318_vm9, %v3269_v20, %v3277_v42  ;;  %v5277_v63 = vpop.permute.xlu0 %3206  ;;  %v3210_v56 = vrot.slane %v3205_v25, 4  ;;  %3567 = vmatpush1.bf16.msra.mxu1 %v3992_v31 }
 0xc25   :  { %v3211_v49 = vrot.slane %v5277_v63, 4  ;;  %v3986_v45 = vcombine.low %v5190_v29, %v3278_v14  ;;  %v3987_v54 = vcombine.high %v5190_v29, %v3278_v14 }
 0xc27   :  { %v3213_v47 = vsel %vm247_vm4, %v3210_v56, %v3211_v49  ;;  %v3233_v48 = vpop.permute.xlu1 %3232  ;;  %3568 = vmatprep.subr.bf16.mxu1 %v3987_v54 }
 0xc28   :  { %v3214_v19 = vsel %vm1866_vm12, %v3205_v25, %v3213_v47  ;;  %v5286_v21 = vpop.permute.xlu0 %3234  ;;  %v3240_v16 = vrot.slane %v3233_v48, 4  ;;  %3569 = vmatpush1.bf16.msra.mxu1 %v3986_v45 }
 0xc29   :  { %3221 = vst [vmem:[#allocation5 + $0x30] sm:$0xff] %v3214_v19  ;;  %v3241_v46 = vrot.slane %v5286_v21, 4 }
 0xc2b   :  { %v3244_v57 = vsel %vm247_vm4, %v3240_v16, %v3241_v46  ;;  %v3153_v29 = vpop.permute.xlu1 %3152 }
 0xc2c   :  { %v3245_v17 = vsel %vm307_vm11, %v3233_v48, %v3244_v57  ;;  %v5293_v5 = vpop.permute.xlu0 %3154  ;;  %v3158_v59 = vrot.slane %v3153_v29, 4 }
 0xc2d   :  { %3253 = vst [vmem:[#allocation5 + $0x48] sm:$0xff] %v3245_v17  ;;  %v3159_v24 = vrot.slane %v5293_v5, 4  ;;  %v3980_v6 = vcombine.low %v3214_v19, %v3245_v17  ;;  %v3981_v26 = vcombine.high %v3214_v19, %v3245_v17 }
 0xc2f   :  { %v3161_v41 = vsel %vm247_vm4, %v3158_v59, %v3159_v24  ;;  %v3179_v51 = vpop.permute.xlu1 %3178  ;;  %3570 = vmatprep.subr.bf16.mxu1 %v3981_v26 }
 0xc30   :  { %v3162_v53 = vsel %vm1806_vm10, %v3153_v29, %v3161_v41  ;;  %v5300_v7 = vpop.permute.xlu0 %3180  ;;  %v3184_v50 = vrot.slane %v3179_v51, 4  ;;  %3571 = vmatpush1.bf16.msra.mxu1 %v3980_v6 }
 0xc31   :  { %3169 = vst [vmem:[#allocation5] sm:$0xff] %v3162_v53  ;;  %v3185_v61 = vrot.slane %v5300_v7, 4 }
 0xc33   :  { %v3187_v55 = vsel %vm247_vm4, %v3184_v50, %v3185_v61  ;;  %v3351_v2 = vpop.permute.xlu1 %3350 }
 0xc34   :  { %v3188_v10 = vsel %vm1836_vm15, %v3179_v51, %v3187_v55  ;;  %v3299_v28 = vpop.permute.xlu0 %3298  ;;  %v3354_v36 = vrot.slane %v3351_v2, 4 }
 0xc35   :  { %3195 = vst [vmem:[#allocation5 + $0x18] sm:$0xff] %v3188_v10  ;;  %v3302_v52 = vrot.slane %v3299_v28, 4  ;;  %v3974_v60 = vcombine.low %v3162_v53, %v3188_v10  ;;  %v3975_v13 = vcombine.high %v3162_v53, %v3188_v10 }
 0xc36   :  { %v3357_v18 = vsel %vm247_vm4, %v3353_v11, %v3354_v36  ;;  %v3359_v35 = vsel %vm2021_vm7, %v3351_v2, %v3354_v36 }
 0xc37   :  { %v3305_v27 = vsel %vm247_vm4, %v3301_v37, %v3302_v52  ;;  %v3307_v32 = vsel %vm1964_vm8, %v3299_v28, %v3302_v52  ;;  %v3358_v38 = vsel %vm2021_vm7, %v5247_v12, %v3357_v18  ;;  %3365 = vst.msk [vmem:[#allocation5 + $0xd0] sm:$0xff] %vm5216_vm3, %v3359_v35  ;;  %v3325_v34 = vpop.permute.xlu1 %3324  ;;  %3572 = vmatprep.subr.bf16.mxu1 %v3975_v13  ;;  %v5326_v37 = vld [vmem:[%s5417_s21] sm:$0x1]  ;;  %s4404_s21 = smov [#allocation10]  }
 0xc38   :  { %v3306_v23 = vsel %vm1964_vm8, %v5254_v39, %v3305_v27  ;;  %3313 = vst.msk [vmem:[#allocation5 + $0xa0] sm:$0xff] %vm5216_vm3, %v3307_v32  ;;  %v3273_v11 = vpop.permute.xlu0 %3272  ;;  %v3328_v8 = vrot.slane %v3325_v34, 4  ;;  %3573 = vmatpush1.bf16.msra.mxu1 %v3974_v60  ;;  %v4001_v12 = vcombine.high %v3358_v38, %v3358_v38  ;;  %v4000_v9 = vcombine.low %v3358_v38, %v3358_v38  ;;  %s3781_s0 = sshll.u32 %s4404_s21, 4  ;;  %s3782_s0 = int_to_ptr.vmem [resolvable:$true] %s3781_s0 }
 0xc39   :  { %v3276_v20 = vrot.slane %v3273_v11, 4  ;;  %s4361_s3 = scalar_lea.vmem %s3782_s0, 96  ;;  %p4366_p6 = scmp.lt.s32.totalorder %s3782_s0, %s3782_s0 }
 0xc3a   :  { %v3331_v40 = vsel %vm247_vm4, %v3327_v58, %v3328_v8  ;;  %v3333_v39 = vsel %vm1994_vm13, %v3325_v34, %v3328_v8  ;;  %4006 = vmatprep.subr.msk.bf16.mxu0 %vm247_vm4, %v4001_v12  ;;  %v3547_v30 = vsel %vm247_vm4, %v4000_v9, 0  ;;  %p4362_p5 = scmp.ne.s32.totalorder %s3782_s0, %s4361_s3  ;;  %p4367_p7 = scmp.lt.s32.totalorder %s4361_s3, %s4361_s3 }
 0xc3b   :  { %v3279_v31 = vsel %vm247_vm4, %v3275_v22, %v3276_v20  ;;  %v3281_v33 = vsel %vm318_vm9, %v3273_v11, %v3276_v20  ;;  %v3332_v42 = vsel %vm1994_vm13, %v5263_v44, %v3331_v40  ;;  %3339 = vst.msk [vmem:[#allocation5 + $0xb8] sm:$0xff] %vm5216_vm3, %v3333_v39  ;;  %v3209_v25 = vpop.permute.xlu1 %3208  ;;  %4005 = vmatmul.mubr.msk.bf16.vlgmr.msra.gmra.mxu1 %vm5446_vm1, %v5326_v37 }
 0xc3c   :  { %3606 = vmatpush1.bf16.msra.mxu0 %v3547_v30  ;;  %v3280_v58 = vsel %vm318_vm9, %v5270_v43, %v3279_v31  ;;  %3287 = vst.msk [vmem:[#allocation5 + $0x88] sm:$0xff] %vm5216_vm3, %v3281_v33  ;;  %v3237_v22 = vpop.permute.xlu0 %3236  ;;  %v3212_v14 = vrot.slane %v3209_v25, 4  ;;  %v3994_v56 = vcombine.low %v3306_v23, %v3332_v42  ;;  %v3995_v45 = vcombine.high %v3306_v23, %v3332_v42  ;;  %vm5448_vm9 = vmmov %vm5446_vm1  ;;  %p4368_p8 = por %p4367_p7, %p4366_p6 }
 0xc3d   :  { %3672 = vmatprep.mubr.bf16.mxu1 %v4388_v1  ;;  %v3242_v44 = vrot.slane %v3237_v22, 4  ;;  %v3989_v43 = vcombine.high %v5192_v15, %v3280_v58 }
 0xc3e   :  { %v3215_v54 = vsel %vm247_vm4, %v3211_v49, %v3212_v14  ;;  %v3217_v47 = vsel %vm1866_vm12, %v3209_v25, %v3212_v14  ;;  %v3392_v48 = vld [vmem:[#allocation5 + $0xd0] sm:$0xff]  ;;  %3607 = vmatprep.subr.bf16.mxu0 %v3995_v45  ;;  %p4369_p9 = pnand %p4368_p8, %p4362_p5 }
 0xc3f   :  { %v3246_v19 = vsel %vm247_vm4, %v3241_v46, %v3242_v44  ;;  %v3216_v16 = vsel %vm1866_vm12, %v5277_v63, %v3215_v54  ;;  %3223 = vst.msk [vmem:[#allocation5 + $0x40] sm:$0xff] %vm5216_vm3, %v3217_v47  ;;  %v3239_v1 = vpop.permute.xlu1 %3238  ;;  %v4003_v57 = vcombine.high %v3392_v48, %v3392_v48  ;;  %v4002_v29 = vcombine.low %v3392_v48, %v3392_v48 }
 0xc40   :  { %3608 = vmatpush1.bf16.msra.mxu0 %v3994_v56  ;;  %v3247_v49 = vsel %vm307_vm11, %v5286_v21, %v3246_v19  ;;  %3222 = vst [vmem:[#allocation5 + $0x38] sm:$0xff] %v3216_v16  ;;  %v3157_v17 = vpop.permute.xlu0 %3156  ;;  %v3243_v59 = vrot.slane %v3239_v1, 4  ;;  %v3988_v46 = vcombine.low %v5192_v15, %v3280_v58 }
 0xc41   :  { %3609 = vmatprep.subr.bf16.mxu0 %v3989_v43  ;;  %3254 = vst [vmem:[#allocation5 + $0x50] sm:$0xff] %v3247_v49  ;;  %v3160_v6 = vrot.slane %v3157_v17, 4  ;;  %4008 = vmatprep.subr.msk.bf16.mxu1 %vm247_vm4, %v4003_v57  ;;  %v3553_v63 = vsel %vm247_vm4, %v4002_v29, 0  ;;  %v3983_v51 = vcombine.high %v3216_v16, %v3247_v49  ;;  %v3982_v28 = vcombine.low %v3216_v16, %v3247_v49 }
 0xc42   :  { %v3248_v26 = vsel %vm247_vm4, %v3242_v44, %v3243_v59  ;;  %3647 = vmatpush1.bf16.msra.mxu1 %v3553_v63  ;;  %v4235_v41 = vld [vmem:[#allocation5 + $0xa4] ss:$24 sps:$4 sm:$0xff]   ;;  %v4233_v10 = vld [vmem:[#allocation5 + $0xa0] ss:$24 sps:$4 sm:$0xff]  }
 0xc43   :  { %v3163_v21 = vsel %vm247_vm4, %v3159_v24, %v3160_v6  ;;  %v3165_v53 = vsel %vm1806_vm10, %v3157_v17, %v3160_v6  ;;  %v3249_v50 = vsel %vm307_vm11, %v3237_v22, %v3248_v26  ;;  %v3183_v55 = vpop.permute.xlu1 %3182  ;;  %3648 = vmatprep.subr.bf16.mxu1 %v4235_v41  ;;  %v4238_v24 = vld [vmem:[#allocation5 + $0x74] ss:$24 sps:$4 sm:$0xff]   ;;  %v4236_v60 = vld [vmem:[#allocation5 + $0x70] ss:$24 sps:$4 sm:$0xff]   ;;  %vm3772_vm11 = vcmp.lt.s32.totalorder %v219_v62, 648 }
 0xc44   :  { %3610 = vmatpush1.bf16.msra.mxu0 %v3988_v46  ;;  %v3164_v2 = vsel %vm1806_vm10, %v5293_v5, %v3163_v21  ;;  %3171 = vst.msk [vmem:[#allocation5 + $0x10] sm:$0xff] %vm5216_vm3, %v3165_v53  ;;  %3255 = vst.msk [vmem:[#allocation5 + $0x58] sm:$0xff] %vm5216_vm3, %v3249_v50  ;;  %v3186_v15 = vrot.slane %v3183_v55, 4 }
 0xc45   :  { %3611 = vmatprep.subr.bf16.mxu0 %v3983_v51  ;;  %3170 = vst [vmem:[#allocation5 + $0x8] sm:$0xff] %v3164_v2 }
 0xc46   :  { %v3189_v36 = vsel %vm247_vm4, %v3185_v61, %v3186_v15  ;;  %v3191_v52 = vsel %vm1836_vm15, %v3183_v55, %v3186_v15  ;;  %3649 = vmatpush1.bf16.msra.mxu1 %v4233_v10  ;;  %vm5447_vm4 = vmmov %vm5446_vm1  ;;  %v4403_v15 = vmov 1966171168  }
 0xc47   :  { %v3190_v5 = vsel %vm1836_vm15, %v5300_v7, %v3189_v36  ;;  %3197 = vst.msk [vmem:[#allocation5 + $0x28] sm:$0xff] %vm5216_vm3, %v3191_v52  ;;  %3650 = vmatprep.subr.bf16.mxu1 %v4238_v24  ;;  %v3733_v10 = vunpack.c.l.s4 %v4403_v15 }
 0xc48   :  { %3612 = vmatpush1.bf16.msra.mxu0 %v3982_v28  ;;  %3196 = vst [vmem:[#allocation5 + $0x20] sm:$0xff] %v3190_v5  ;;  %v3976_v13 = vcombine.low %v3164_v2, %v3190_v5  ;;  %v3977_v18 = vcombine.high %v3164_v2, %v3190_v5 }
 0xc4a   :  { %3651 = vmatpush1.bf16.msra.mxu1 %v4236_v60  ;;  %3613 = vmatprep.subr.bf16.mxu0 %v3977_v18  ;;  %v3734_v60 = vunpack.c.0.s8 %v3733_v10 }
 0xc4b   :  { %v4239_v35 = vld [vmem:[#allocation5 + $0x40] ss:$24 sps:$4 sm:$0xff]   ;;  %v4241_v27 = vld [vmem:[#allocation5 + $0x44] ss:$24 sps:$4 sm:$0xff]  }
 0xc4c   :  { %3614 = vmatpush1.bf16.msra.mxu0 %v3976_v13  ;;  %3652 = vmatprep.subr.bf16.mxu1 %v4241_v27 }
 0xc4d   :  { %v3396_v32 = vpop.permute.xlu0 %3395 }
 0xc4e   :  { %3653 = vmatpush1.bf16.msra.mxu1 %v4239_v35  ;;  %v4244_v61 = vld [vmem:[#allocation5 + $0x14] ss:$24 sps:$4 sm:$0xff]   ;;  %v4242_v7 = vld [vmem:[#allocation5 + $0x10] ss:$24 sps:$4 sm:$0xff]   ;;  %v3401_v23 = vrot.slane %v3396_v32, %v4566_v4  ;;  %v3737_v32 = vsub.s32 %v3734_v60, %v4560_v0 }
 0xc4f   :  { %4007 = vmatmul.mubr.msk.bf16.vlgmr.msra.gmra.mxu0 %vm5447_vm4, %v5326_v37  ;;  %3654 = vmatprep.subr.bf16.mxu1 %v4244_v61 }
 0xc52   :  { %3655 = vmatpush1.bf16.msra.mxu1 %v4242_v7 }
 0xc55   :  { %4009 = vmatmul.mubr.msk.bf16.vlgmr.msra.gmra.mxu1 %vm5448_vm9, %v5326_v37 }
 0xcfb   :  { %v3592_v3 = vpop.f32.mrf.mxu1 }
 0xcfc   :  { %v3593_v12 = vadd.f32 %v3592_v3, %v3401_v23 }
 0xcfd   :  { %v3594_v38 = vpop.f32.mrf.mxu1 }
 0xcfe   :  { %v3595_v8 = vadd.f32 %v3594_v38, %v3401_v23  ;;  %v3681_v20 = vsub.f32 0.0, %v3593_v12 }
 0xcff   :  { %v3596_v34 = vpop.f32.mrf.mxu1 }
 0xd00   :  { %v3682_v9 = vsub.f32 0.0, %v3595_v8  ;;  %v3687_v39 = vmul.f32 1.442695, %v3681_v20 }
 0xd01   :  { %v3597_v11 = vpop.f32.mrf.mxu1 }
 0xd02   :  { %v3689_v40 = vmul.f32 1.442695, %v3682_v9 }
 0xd04   :  { %4313 = vpow2.f32 %v3689_v40 }
 0xd05   :  { %4315 = vpow2.f32 %v3687_v39 }
 0xd0f   :  { %v3633_v30 = vpop.f32.mrf.mxu0 }
 0xd10   :  { %v3634_v31 = vadd.f32 %v3633_v30, %v3401_v23 }
 0xd11   :  { %v3635_v33 = vpop.f32.mrf.mxu0  ;;  %v4314_v16 = vpop.eup %4313 }
 0xd12   :  { %v3683_v42 = vsub.f32 0.0, %v3634_v31  ;;  %v3636_v37 = vadd.f32 %v3635_v33, %v3401_v23  ;;  %v4316_v29 = vpop.eup %4315  ;;  %v3700_v49 = vadd.f32 1.0, %v4314_v16 }
 0xd13   :  { %v3637_v25 = vpop.f32.mrf.mxu0  ;;  %v3699_v17 = vadd.f32 1.0, %v4316_v29 }
 0xd14   :  { %v3691_v58 = vmul.f32 1.442695, %v3683_v42  ;;  %v3684_v22 = vsub.f32 0.0, %v3636_v37 }
 0xd15   :  { %v3638_v14 = vpop.f32.mrf.mxu0  ;;  %v3674_v4 = vpop.f32.mrf.mxu1 }
 0xd16   :  { %4317 = vpow2.f32 %v3691_v58  ;;  %v3693_v56 = vmul.f32 1.442695, %v3684_v22  ;;  %v3675_v45 = vadd.f32 %v3674_v4, %v3401_v23 }
 0xd17   :  { %v3676_v44 = vpop.f32.mrf.mxu1 }
 0xd18   :  { %4319 = vpow2.f32 %v3693_v56  ;;  %v3685_v54 = vsub.f32 0.0, %v3675_v45  ;;  %v3677_v47 = vadd.f32 %v3676_v44, %v3401_v23 }
 0xd19   :  { %v3678_v48 = vpop.f32.mrf.mxu1 }
 0xd1a   :  { %v3695_v43 = vmul.f32 1.442695, %v3685_v54  ;;  %v3686_v19 = vsub.f32 0.0, %v3677_v47 }
 0xd1b   :  { %v3679_v1 = vpop.f32.mrf.mxu1 }
 0xd1c   :  { %4321 = vpow2.f32 %v3695_v43  ;;  %v3697_v57 = vmul.f32 1.442695, %v3686_v19 }
 0xd1e   :  { %4323 = vpow2.f32 %v3697_v57 }
 0xd1f   :  { %4325 = vrcp.f32 %v3700_v49 }
 0xd20   :  { %4327 = vrcp.f32 %v3699_v17 }
 0xd23   :  { %v4318_v59 = vpop.eup %4317 }
 0xd24   :  { %v3701_v6 = vadd.f32 1.0, %v4318_v59 }
 0xd25   :  { %v4320_v63 = vpop.eup %4319 }
 0xd26   :  { %4329 = vrcp.f32 %v3701_v6  ;;  %v3702_v46 = vadd.f32 1.0, %v4320_v63 }
 0xd28   :  { %4331 = vrcp.f32 %v3702_v46 }
 0xd29   :  { %v4322_v26 = vpop.eup %4321 }
 0xd2a   :  { %v3703_v41 = vadd.f32 1.0, %v4322_v26 }
 0xd2b   :  { %v4324_v51 = vpop.eup %4323 }
 0xd2c   :  { %4333 = vrcp.f32 %v3703_v41  ;;  %v3704_v21 = vadd.f32 1.0, %v4324_v51  ;;  %v4326_v53 = vpop.eup %4325 }
 0xd2d   :  { %v4328_v50 = vpop.eup %4327  ;;  %v3712_v2 = vmax.f32 %v4326_v53, 0.0 }
 0xd2e   :  { %4335 = vrcp.f32 %v3704_v21  ;;  %v3711_v36 = vmax.f32 %v4328_v50, 0.0 }
 0xd2f   :  { %v3718_v5 = vmin.f32 %v3712_v2, 1.0 }
 0xd30   :  { %v3717_v35 = vmin.f32 %v3711_v36, 1.0 }
 0xd32   :  { %v3729_v7 = vcombine.low %v3717_v35, %v3718_v5 }
 0xd33   :  { %v4330_v55 = vpop.eup %4329 }
 0xd34   :  { %v3713_v24 = vmax.f32 %v4330_v55, 0.0  ;;  %v3738_v12 = vrot.slane %v3729_v7, %v3737_v32 }
 0xd35   :  { %v4332_v28 = vpop.eup %4331 }
 0xd36   :  { %v3714_v52 = vmax.f32 %v4332_v28, 0.0  ;;  %v3719_v13 = vmin.f32 %v3713_v24, 1.0 }
 0xd38   :  { %v3720_v18 = vmin.f32 %v3714_v52, 1.0 }
 0xd39   :  { %v4334_v27 = vpop.eup %4333 }
 0xd3a   :  { %v3730_v61 = vcombine.low %v3719_v13, %v3720_v18  ;;  %v3715_v3 = vmax.f32 %v4334_v27, 0.0 }
 0xd3b   :  { %v4336_v38 = vpop.eup %4335 }
 0xd3c   :  { %v3716_v34 = vmax.f32 %v4336_v38, 0.0  ;;  %v3745_v23 = vrot.slane %v3730_v61, %v3737_v32  ;;  %v3721_v11 = vmin.f32 %v3715_v3, 1.0 }
 0xd3e   :  { %v3722_v8 = vmin.f32 %v3716_v34, 1.0  ;;  %v3753_v20 = vcombine.low %v3738_v12, %v3745_v23 }
 0xd40   :  { %v3731_v9 = vcombine.low %v3721_v11, %v3722_v8  ;;  %v3760_v39 = vrot.slane %v3753_v20, %v3737_v32 }
 0xd42   :  { %v3752_v40 = vrot.slane %v3731_v9, %v3737_v32 }
 0xd44   :  { %v3767_v30 = vrot.slane %v3752_v40, %v3737_v32 }
 0xd46   :  { %v3768_v31 = vcombine.low %v3760_v39, %v3767_v30 }
 0xd48   :  { %3774 = vst.msk [vmem:[#allocation10] sm:$0x3f] %vm3772_vm11, %v3768_v31 }
 0xd49   :  { %4372 = shalt.err (!%p4369_p9)
}
 0xd4a   :  { %3784 = dma.vmem_to_hbm [thread:$0]  %s3782_s0, 96, %s5419_s23, [#allocation9]  }
 0xd4b   :  { %4383 = dma.done.wait [#allocation9], 96  }
 0xd4c   :  { %4384 = vsyncadd [#allocation9], 4294967200 }
 0xd4d   :  { %3788 = vsyncpa [#allocation8], 1 }
 0xd4e   :  { %3789 = vsyncpa [#allocation9], 1 }

</bundles_post_ra>
